<compile_context>
chip_gen: v5e
topology: v5e:2x2
jax: 0.10.0
libtpu: 0.0.40
codegen_flags: <defaults>
</compile_context>

<pallas_src>
import functools
import math

import jax
import jax.numpy as jnp
import numpy as np
from jax import lax
from jax.experimental import pallas as pl
from jax.experimental.pallas import tpu as pltpu


def residual_block_kernel(
    x_ref,            # (M, d_model)   M = Bblk * L, row = b*L + t
    rmsw_ref,         # (1, d_model)
    w_in_x_ref,       # (d_model, d_inner)
    w_in_z_ref,       # (d_model, d_inner)
    conv_w_ref,       # (d_conv, d_inner)   tap-major
    conv_b_ref,       # (1, d_inner)
    w_x_ref,          # (d_inner, dt_pad + 2*d_state)  fused dt|B|C (dt zero-padded)
    w_dt_ref,         # (dt_pad, d_inner)   zero-padded past dt_rank
    b_dt_ref,         # (1, d_inner)
    A_logT_ref,       # (d_state, d_inner)
    D_ref,            # (1, d_inner)
    w_out_ref,        # (d_inner, d_model)
    out_ref,          # (M, d_model)
    dA_ref,           # (Tc, d_state, Dc) scratch: exp(delta*A)
    bx_ref,           # (Tc, d_state, Dc) scratch: delta*x*B
    cexp_ref,         # (Tc, d_state, Dc) scratch: C broadcast over lanes
    y_ref,            # (M, d_inner) scratch: scan outputs (lane-dense rows)
    *, d_inner, d_state, d_conv, dt_pad, L, Bblk, Tc, Dc, grp, eps):
  M = Bblk * L

  # ---- RMSNorm ----
  x = x_ref[...]
  xn = x * lax.rsqrt(jnp.mean(x * x, axis=-1, keepdims=True) + eps)
  xn = xn * rmsw_ref[...]

  # ---- in_proj, split into x / z halves (lane-aligned) ----
  xn_m = xn.astype(w_in_x_ref.dtype)
  xs = jnp.dot(xn_m, w_in_x_ref[...], preferred_element_type=jnp.float32)
  z = jnp.dot(xn_m, w_in_z_ref[...], preferred_element_type=jnp.float32)

  # ---- causal depthwise conv1d over t (rows are b*L + t) ----
  # Tap s is a sublane roll (XLU slot); the t-position mask kills both the
  # wrap-around rows and cross-batch leakage in the flattened row layout.
  t_idx = lax.broadcasted_iota(jnp.int32, (M, 1), 0) % L
  conv_w = conv_w_ref[...]
  conv = conv_b_ref[...]
  for k in range(d_conv):
    s = d_conv - 1 - k                          # left shift of this tap
    if s == 0:
      tap = xs
    else:
      tap = pltpu.roll(xs, shift=s, axis=0)     # tap[i] = xs[i - s]
      tap = jnp.where(t_idx >= s, tap, 0.0)
    conv = conv + tap * conv_w[k:k + 1, :]
  xc = conv * jax.nn.sigmoid(conv)              # SiLU, (M, d_inner)

  # ---- fused x_proj (dt | B | C) + dt_proj + softplus ----
  xc_m = xc.astype(w_x_ref.dtype)
  dbc = jnp.dot(xc_m, w_x_ref[...], preferred_element_type=jnp.float32)
  dt_in = dbc[:, :dt_pad]                        # lane-aligned slice
  Bm = dbc[:, dt_pad:dt_pad + d_state]
  Cm = dbc[:, dt_pad + d_state:dt_pad + 2 * d_state]
  delta = jax.nn.softplus(
      jnp.dot(dt_in.astype(w_dt_ref.dtype), w_dt_ref[...],
              preferred_element_type=jnp.float32) + b_dt_ref[...])

  A_T = -jnp.exp(A_logT_ref[...])                # (d_state, d_inner)
  dx = delta * xc                                # (M, d_inner)

  # ---- selective scan: h is (d_state, Dc); d_inner tiled in lane chunks ----
  n_chunks = L // Tc
  for l0 in range(0, d_inner, Dc):
    A_T_c = A_T[:, l0:l0 + Dc]
    for b in range(Bblk):
      h = jnp.zeros((d_state, Dc), jnp.float32)
      for c in range(n_chunks):
        row0 = b * L + c * Tc
        delta_c = delta[row0:row0 + Tc, l0:l0 + Dc]   # (Tc, Dc)
        dx_c = dx[row0:row0 + Tc, l0:l0 + Dc]
        B_c = Bm[row0:row0 + Tc, :]                   # (Tc, d_state)
        C_c = Cm[row0:row0 + Tc, :]

        # Vectorised precompute; one contiguous store per buffer per chunk.
        dA_ref[...] = jnp.exp(
            delta_c[:, None, :] * A_T_c[None, :, :]).astype(dA_ref.dtype)
        bx_ref[...] = (dx_c[:, None, :] * B_c[:, :, None]).astype(bx_ref.dtype)
        cexp_ref[...] = jnp.broadcast_to(
            C_c[:, :, None], (Tc, d_state, Dc)).astype(cexp_ref.dtype)

        # Pure-VPU recurrence; y is flushed `grp` sublane-dense rows at a time
        # instead of one masked row per step.
        def group_step(g, h, _row0=row0, _l0=l0):
          base = g * grp
          rows = []
          for u in range(grp):
            tt = base + u
            h = (dA_ref[tt].astype(jnp.float32) * h
                 + bx_ref[tt].astype(jnp.float32))
            rows.append(jnp.sum(h * cexp_ref[tt].astype(jnp.float32),
                                axis=0, keepdims=True))
          start = pl.multiple_of(_row0 + base, grp)
          y_ref[pl.ds(start, grp), _l0:_l0 + Dc] = jnp.concatenate(rows, axis=0)
          return h

        h = lax.fori_loop(0, Tc // grp, group_step, h)

  # ---- skip term, gate, out_proj, residual (fresh x_ref read: short range) --
  y = y_ref[...] + D_ref[...] * xc
  gated = y * (z * jax.nn.sigmoid(z))            # y * SiLU(z)
  out_ref[...] = (
      jnp.dot(gated.astype(w_out_ref.dtype), w_out_ref[...],
              preferred_element_type=jnp.float32) + x_ref[...])


def _pick_block_batch(Bsz, L):
  # Keep grid >= 2 so the "parallel" axis can shard across both TensorCores
  # on v7x; cap rows per grid step so the flattened M stays modest.
  best = 1
  max_cand = Bsz // 2 if Bsz >= 2 else 1
  for cand in range(max(1, max_cand), 0, -1):
    if Bsz % cand == 0 and cand * L <= 256:
      best = cand
      break
  return best


def _pick_lane_chunk(d_inner):
  if d_inner <= 512:
    return d_inner
  for cand in (512, 384, 256, 128):
    if d_inner % cand == 0:
      return cand
  return d_inner


def _pick_time_chunk(L, d_state, Dc, scratch_itemsize):
  # Largest divisor of L (preferring multiples of 8) whose three
  # (Tc, d_state, Dc) chunk buffers fit a ~6 MiB budget (v7x-safe).
  budget = 6 * 1024 * 1024
  cap = max(1, budget // (3 * d_state * Dc * scratch_itemsize))
  cap = min(cap, 128, L)
  divs = [t for t in range(1, L + 1) if L % t == 0 and t <= cap]
  mult8 = [t for t in divs if t % 8 == 0]
  return max(mult8) if mult8 else max(divs)


def residual_block_forward(x, p, *, block_batch=None, time_chunk=None,
                           lane_chunk=None, weight_dtype=jnp.float32,
                           scan_scratch_dtype=jnp.float32, eps=1e-5):
  Bsz, L, d_model = x.shape
  d_inner = p["D"].shape[-1]
  d_state = p["A_log"].shape[-1]
  dt_rank = p["w_dt"].shape[0]
  d_conv = p["conv_w"].shape[0]

  Bblk = _pick_block_batch(Bsz, L) if block_batch is None else block_batch
  assert Bsz % Bblk == 0
  Dc = _pick_lane_chunk(d_inner) if lane_chunk is None else lane_chunk
  assert d_inner % Dc == 0
  sbytes = jnp.dtype(scan_scratch_dtype).itemsize
  Tc = (_pick_time_chunk(L, d_state, Dc, sbytes)
        if time_chunk is None else time_chunk)
  assert L % Tc == 0
  grp = math.gcd(Tc, 8)

  M = Bblk * L
  dt_pad = ((dt_rank + 127) // 128) * 128

  # --- weight prep (split / pad / fuse so the kernel only slices at aligned
  #     or trivially small offsets); projections optionally in bf16 ---
  f32 = jnp.float32
  w_in = p["w_in"].astype(f32)
  w_in_x = w_in[:, :d_inner].astype(weight_dtype)
  w_in_z = w_in[:, d_inner:].astype(weight_dtype)
  w_x = p["w_x"].astype(f32)
  w_x_fused = jnp.zeros((d_inner, dt_pad + 2 * d_state), f32)
  w_x_fused = w_x_fused.at[:, :dt_rank].set(w_x[:, :dt_rank])
  w_x_fused = w_x_fused.at[:, dt_pad:].set(w_x[:, dt_rank:])
  w_x_fused = w_x_fused.astype(weight_dtype)
  w_dt = (jnp.zeros((dt_pad, d_inner), f32)
          .at[:dt_rank, :].set(p["w_dt"].astype(f32)).astype(weight_dtype))
  w_out = p["w_out"].astype(weight_dtype)
  A_logT = p["A_log"].T.astype(f32)              # (d_state, d_inner)

  kernel = functools.partial(
      residual_block_kernel, d_inner=d_inner, d_state=d_state, d_conv=d_conv,
      dt_pad=dt_pad, L=L, Bblk=Bblk, Tc=Tc, Dc=Dc, grp=grp, eps=eps)

  # --- VMEM budget -> explicit limit (v7x has only 64 MiB physical) ---
  wbytes = jnp.dtype(weight_dtype).itemsize
  weight_elems = (2 * d_model * d_inner + d_inner * (dt_pad + 2 * d_state)
                  + dt_pad * d_inner + d_inner * d_model)
  small_f32 = d_model + (d_conv + 4) * d_inner + d_state * d_inner
  est = (2 * 2 * M * d_model * 4                 # x / out windows (dbl-buffered)
         + weight_elems * wbytes
         + small_f32 * 4
         + 3 * Tc * d_state * Dc * sbytes        # dA / bx / cexp chunk scratch
         + M * d_inner * 4                       # y scratch
         + 6 * M * d_inner * 4)                  # headroom for live intermediates
  vmem_limit = int(min(100 * 2**20, max(32 * 2**20, int(est * 1.25))))

  x2d = x.reshape(Bsz * L, d_model)
  args = (x2d, p["rms_w"], w_in_x, w_in_z, p["conv_w"], p["conv_b"],
          w_x_fused, w_dt, p["b_dt"], A_logT, p["D"], w_out)

  def build(single_buffer_weights):
    def weight_spec(shape):
      n = len(shape)
      kw = {}
      if single_buffer_weights:
        kw["pipeline_mode"] = pl.Buffered(1)     # grid-invariant: single buffer
      return pl.BlockSpec(shape, lambda i, _n=n: (0,) * _n, **kw)

    grid_spec = pltpu.PrefetchScalarGridSpec(
        num_scalar_prefetch=0,
        grid=(Bsz // Bblk,),
        in_specs=[
            pl.BlockSpec((M, d_model), lambda i: (i, 0)),  # x (flattened rows)
            weight_spec((1, d_model)),                     # rms weight
            weight_spec((d_model, d_inner)),               # in_proj (x half)
            weight_spec((d_model, d_inner)),               # in_proj (z half)
            weight_spec((d_conv, d_inner)),                # conv weight
            weight_spec((1, d_inner)),                     # conv bias
            weight_spec((d_inner, dt_pad + 2 * d_state)),  # fused x_proj
            weight_spec((dt_pad, d_inner)),                # dt_proj weight
            weight_spec((1, d_inner)),                     # dt_proj bias
            weight_spec((d_state, d_inner)),               # A_log (transposed)
            weight_spec((1, d_inner)),                     # D
            weight_spec((d_inner, d_model)),               # out_proj
        ],
        out_specs=pl.BlockSpec((M, d_model), lambda i: (i, 0)),
        scratch_shapes=[
            pltpu.VMEM((Tc, d_state, Dc), scan_scratch_dtype),  # exp(delta*A)
            pltpu.VMEM((Tc, d_state, Dc), scan_scratch_dtype),  # delta*x*B
            pltpu.VMEM((Tc, d_state, Dc), scan_scratch_dtype),  # C broadcast
            pltpu.VMEM((M, d_inner), jnp.float32),              # scan outputs
        ])
    return pl.pallas_call(
        kernel,
        out_shape=jax.ShapeDtypeStruct((Bsz * L, d_model), jnp.float32),
        grid_spec=grid_spec,
        compiler_params=pltpu.CompilerParams(
            dimension_semantics=("parallel",),
            vmem_limit_bytes=vmem_limit))

  try:
    out2d = jax.block_until_ready(build(True)(*args))
  except Exception:
    # Fallback for JAX builds that reject pl.Buffered(1) on input specs.
    out2d = build(False)(*args)
  return out2d.reshape(Bsz, L, d_model)


def reference_forward(x, p, *, d_inner, d_state, dt_rank, d_conv, eps=1e-5):
  """Pure-JAX mirror of ResidualBlock.forward for correctness checking."""
  Bsz, L, _ = x.shape
  xn = x * lax.rsqrt(jnp.mean(x * x, -1, keepdims=True) + eps) * p["rms_w"][0]
  xz = xn @ p["w_in"]
  xs, z = xz[..., :d_inner], xz[..., d_inner:]
  pad = jnp.pad(xs, ((0, 0), (d_conv - 1, 0), (0, 0)))
  conv = p["conv_b"][0]
  for k in range(d_conv):
    conv = conv + pad[:, k:k + L, :] * p["conv_w"][k]
  xc = jax.nn.silu(conv)
  dbc = xc @ p["w_x"]
  dt_in = dbc[..., :dt_rank]
  Bm = dbc[..., dt_rank:dt_rank + d_state]
  Cm = dbc[..., dt_rank + d_state:]
  delta = jax.nn.softplus(dt_in @ p["w_dt"] + p["b_dt"][0])
  A = -jnp.exp(p["A_log"])
  h = jnp.zeros((Bsz, d_inner, d_state), jnp.float32)
  ys = []
  for t in range(L):
    dA = jnp.exp(delta[:, t, :, None] * A[None])
    BX = delta[:, t, :, None] * Bm[:, t, None, :] * xc[:, t, :, None]
    h = dA * h + BX
    ys.append(jnp.einsum("bds,bs->bd", h, Cm[:, t, :]))
  y = jnp.stack(ys, axis=1) + p["D"][0] * xc
  return (y * jax.nn.silu(z)) @ p["w_out"] + x


def make_params(key, d_model, d_state, d_conv, expand):
  d_inner = expand * d_model
  dt_rank = math.ceil(d_model / 16)
  ks = jax.random.split(key, 8)
  u = lambda k, shape, s: jax.random.uniform(k, shape, jnp.float32, -s, s)
  dt_min, dt_max, dt_floor = 0.001, 0.1, 1e-4
  dt = jnp.exp(jax.random.uniform(ks[5], (d_inner,), jnp.float32)
               * (math.log(dt_max) - math.log(dt_min)) + math.log(dt_min))
  dt = jnp.maximum(dt, dt_floor)
  inv_dt = dt + jnp.log(-jnp.expm1(-dt))
  params = {
      "rms_w": jnp.ones((1, d_model), jnp.float32),
      "w_in": u(ks[0], (d_model, 2 * d_inner), 1.0 / math.sqrt(d_model)),
      "conv_w": u(ks[1], (d_conv, d_inner), 1.0 / math.sqrt(d_conv)),
      "conv_b": u(ks[2], (1, d_inner), 1.0 / math.sqrt(d_conv)),
      "w_x": u(ks[3], (d_inner, dt_rank + 2 * d_state), 1.0 / math.sqrt(d_inner)),
      "w_dt": u(ks[4], (dt_rank, d_inner), dt_rank ** -0.5),
      "b_dt": inv_dt.reshape(1, d_inner),
      "A_log": jnp.log(jnp.tile(jnp.arange(1, d_state + 1, dtype=jnp.float32),
                                (d_inner, 1))),
      "D": jnp.ones((1, d_inner), jnp.float32),
      "w_out": u(ks[6], (d_inner, d_model), 1.0 / math.sqrt(d_inner)),
  }
  return params, dict(d_inner=d_inner, d_state=d_state, dt_rank=dt_rank, d_conv=d_conv)


if __name__ == "__main__":
  B, L, d_model = 4, 8, 16
  d_state, d_conv, expand = 16, 4, 2

  key = jax.random.PRNGKey(0)
  kp, kx = jax.random.split(key)
  params, dims = make_params(kp, d_model, d_state, d_conv, expand)
  x = jax.random.normal(kx, (B, L, d_model), dtype=jnp.float32)

  ref = reference_forward(x, params, **dims)

  # f32 path (v5e-safe): tight tolerance.
  out = jax.block_until_ready(residual_block_forward(x, params))
  np.testing.assert_allclose(np.asarray(out), np.asarray(ref), rtol=2e-3, atol=2e-3)

  # bf16 projection-weight path (v6e/v7x MXU): looser tolerance.
  out_bf16 = jax.block_until_ready(
      residual_block_forward(x, params, weight_dtype=jnp.bfloat16))
  np.testing.assert_allclose(np.asarray(out_bf16), np.asarray(ref),
                             rtol=5e-2, atol=5e-2)

  print("KERNEL_OK")
</pallas_src>

<mosaic_0001>
module attributes {stable_mosaic.version = 11 : i64} {
  func.func @residual_block_kernel(%arg0: i32, %arg1: memref<16x16xf32, #tpu.memory_space<vmem>>, %arg2: memref<1x16xf32, #tpu.memory_space<vmem>>, %arg3: memref<16x32xf32, #tpu.memory_space<vmem>>, %arg4: memref<16x32xf32, #tpu.memory_space<vmem>>, %arg5: memref<4x32xf32, #tpu.memory_space<vmem>>, %arg6: memref<1x32xf32, #tpu.memory_space<vmem>>, %arg7: memref<32x160xf32, #tpu.memory_space<vmem>>, %arg8: memref<128x32xf32, #tpu.memory_space<vmem>>, %arg9: memref<1x32xf32, #tpu.memory_space<vmem>>, %arg10: memref<16x32xf32, #tpu.memory_space<vmem>>, %arg11: memref<1x32xf32, #tpu.memory_space<vmem>>, %arg12: memref<32x16xf32, #tpu.memory_space<vmem>>, %arg13: memref<16x16xf32, #tpu.memory_space<vmem>>, %arg14: memref<8x16x32xf32, #tpu.memory_space<vmem>>, %arg15: memref<8x16x32xf32, #tpu.memory_space<vmem>>, %arg16: memref<8x16x32xf32, #tpu.memory_space<vmem>>, %arg17: memref<16x32xf32, #tpu.memory_space<vmem>>) attributes {dimension_semantics = [#tpu.dimension_semantics<parallel>], iteration_bounds = array<i64: 2>, scalar_prefetch = 0 : i64, scratch_operands = 4 : i64, tpu.core_type = #tpu.core_type<tc>, window_params = [{transform_indices = @transform_0, window_bounds = array<i64: 16, 16>}, {pipeline_mode = #tpu.pipeline_mode<synchronous>, transform_indices = @transform_1, window_bounds = array<i64: 1, 16>}, {pipeline_mode = #tpu.pipeline_mode<synchronous>, transform_indices = @transform_2, window_bounds = array<i64: 16, 32>}, {pipeline_mode = #tpu.pipeline_mode<synchronous>, transform_indices = @transform_3, window_bounds = array<i64: 16, 32>}, {pipeline_mode = #tpu.pipeline_mode<synchronous>, transform_indices = @transform_4, window_bounds = array<i64: 4, 32>}, {pipeline_mode = #tpu.pipeline_mode<synchronous>, transform_indices = @transform_5, window_bounds = array<i64: 1, 32>}, {pipeline_mode = #tpu.pipeline_mode<synchronous>, transform_indices = @transform_6, window_bounds = array<i64: 32, 160>}, {pipeline_mode = #tpu.pipeline_mode<synchronous>, transform_indices = @transform_7, window_bounds = array<i64: 128, 32>}, {pipeline_mode = #tpu.pipeline_mode<synchronous>, transform_indices = @transform_8, window_bounds = array<i64: 1, 32>}, {pipeline_mode = #tpu.pipeline_mode<synchronous>, transform_indices = @transform_9, window_bounds = array<i64: 16, 32>}, {pipeline_mode = #tpu.pipeline_mode<synchronous>, transform_indices = @transform_10, window_bounds = array<i64: 1, 32>}, {pipeline_mode = #tpu.pipeline_mode<synchronous>, transform_indices = @transform_11, window_bounds = array<i64: 32, 16>}, {transform_indices = @transform_12, window_bounds = array<i64: 16, 16>}]} {
    %c0 = arith.constant 0 : index
    %c0_0 = arith.constant 0 : index
    %0 = vector.load %arg1[%c0, %c0_0] : memref<16x16xf32, #tpu.memory_space<vmem>>, vector<16x16xf32>
    %1 = arith.mulf %0, %0 : vector<16x16xf32>
    %cst = arith.constant dense<0.000000e+00> : vector<16xf32>
    %2 = vector.multi_reduction <add>, %1, %cst [1] : vector<16x16xf32> to vector<16xf32>
    %3 = vector.shape_cast %2 : vector<16xf32> to vector<16x1xf32>
    %cst_1 = arith.constant 1.600000e+01 : f32
    %4 = vector.broadcast %cst_1 : f32 to vector<16x1xf32>
    %5 = arith.divf %3, %4 : vector<16x1xf32>
    %cst_2 = arith.constant 9.99999974E-6 : f32
    %6 = vector.broadcast %cst_2 : f32 to vector<16x1xf32>
    %7 = arith.addf %5, %6 : vector<16x1xf32>
    %8 = math.rsqrt %7 : vector<16x1xf32>
    %9 = vector.broadcast %8 : vector<16x1xf32> to vector<16x16xf32>
    %10 = arith.mulf %0, %9 : vector<16x16xf32>
    %c0_3 = arith.constant 0 : index
    %c0_4 = arith.constant 0 : index
    %11 = vector.load %arg2[%c0_3, %c0_4] : memref<1x16xf32, #tpu.memory_space<vmem>>, vector<1x16xf32>
    %12 = vector.broadcast %11 : vector<1x16xf32> to vector<16x16xf32>
    %13 = arith.mulf %10, %12 : vector<16x16xf32>
    %c0_5 = arith.constant 0 : index
    %c0_6 = arith.constant 0 : index
    %14 = vector.load %arg3[%c0_5, %c0_6] : memref<16x32xf32, #tpu.memory_space<vmem>>, vector<16x32xf32>
    %cst_7 = arith.constant dense<0.000000e+00> : vector<16x32xf32>
    %15 = tpu.matmul %13, %14, %cst_7 {dimension_numbers = #tpu.dot_dimension_numbers<[1], [0], [0], [1], [0, 0, 1, 1], [], []>} : vector<16x16xf32>, vector<16x32xf32>, vector<16x32xf32> -> vector<16x32xf32>
    %c0_8 = arith.constant 0 : index
    %c0_9 = arith.constant 0 : index
    %16 = vector.load %arg4[%c0_8, %c0_9] : memref<16x32xf32, #tpu.memory_space<vmem>>, vector<16x32xf32>
    %cst_10 = arith.constant dense<0.000000e+00> : vector<16x32xf32>
    %17 = tpu.matmul %13, %16, %cst_10 {dimension_numbers = #tpu.dot_dimension_numbers<[1], [0], [0], [1], [0, 0, 1, 1], [], []>} : vector<16x16xf32>, vector<16x32xf32>, vector<16x32xf32> -> vector<16x32xf32>
    %18 = tpu.iota {dimensions = array<i32: 0>} : vector<16x1xi32>
    %c8_i32 = arith.constant 8 : i32
    %c0_i32 = arith.constant 0 : i32
    %19 = arith.cmpi eq, %c8_i32, %c0_i32 : i32
    %c1_i32 = arith.constant 1 : i32
    %20 = arith.select %19, %c1_i32, %c8_i32 : i32
    %21 = vector.broadcast %20 : i32 to vector<16x1xi32>
    %22 = arith.remsi %18, %21 : vector<16x1xi32>
    %c0_i32_11 = arith.constant 0 : i32
    %23 = vector.broadcast %c0_i32_11 : i32 to vector<16x1xi32>
    %24 = arith.cmpi ne, %22, %23 : vector<16x1xi32>
    %c0_i32_12 = arith.constant 0 : i32
    %25 = vector.broadcast %c0_i32_12 : i32 to vector<16x1xi32>
    %26 = arith.cmpi slt, %22, %25 : vector<16x1xi32>
    %c0_i32_13 = arith.constant 0 : i32
    %27 = arith.cmpi slt, %20, %c0_i32_13 : i32
    %28 = vector.broadcast %27 : i1 to vector<16x1xi1>
    %29 = vector.broadcast %28 : vector<16x1xi1> to vector<16x1xi1>
    %30 = arith.xori %26, %29 : vector<16x1xi1>
    %31 = arith.andi %30, %24 : vector<16x1xi1>
    %32 = vector.broadcast %20 : i32 to vector<16x1xi32>
    %33 = arith.addi %22, %32 : vector<16x1xi32>
    %34 = arith.select %31, %33, %22 : vector<16x1xi1>, vector<16x1xi32>
    %c0_14 = arith.constant 0 : index
    %c0_15 = arith.constant 0 : index
    %35 = vector.load %arg5[%c0_14, %c0_15] : memref<4x32xf32, #tpu.memory_space<vmem>>, vector<4x32xf32>
    %c0_16 = arith.constant 0 : index
    %c0_17 = arith.constant 0 : index
    %36 = vector.load %arg6[%c0_16, %c0_17] : memref<1x32xf32, #tpu.memory_space<vmem>>, vector<1x32xf32>
    %c3_i32 = arith.constant 3 : i32
    %37 = tpu.dynamic_rotate %15 by %c3_i32 dim 0 : vector<16x32xf32>, i32 -> vector<16x32xf32>
    %c3_i32_18 = arith.constant 3 : i32
    %38 = vector.broadcast %c3_i32_18 : i32 to vector<16x1xi32>
    %39 = arith.cmpi sge, %34, %38 : vector<16x1xi32>
    %cst_19 = arith.constant 0.000000e+00 : f32
    %40 = vector.shape_cast %39 : vector<16x1xi1> to vector<16x1xi1>
    %41 = vector.broadcast %40 : vector<16x1xi1> to vector<16x32xi1>
    %42 = vector.broadcast %cst_19 : f32 to vector<16x32xf32>
    %43 = arith.select %41, %37, %42 : vector<16x32xi1>, vector<16x32xf32>
    %44 = vector.extract_strided_slice %35 {offsets = [0, 0], sizes = [1, 32], strides = [1, 1]} : vector<4x32xf32> to vector<1x32xf32>
    %45 = vector.broadcast %44 : vector<1x32xf32> to vector<16x32xf32>
    %46 = arith.mulf %43, %45 : vector<16x32xf32>
    %47 = vector.broadcast %36 : vector<1x32xf32> to vector<16x32xf32>
    %48 = arith.addf %47, %46 : vector<16x32xf32>
    %c2_i32 = arith.constant 2 : i32
    %49 = tpu.dynamic_rotate %15 by %c2_i32 dim 0 : vector<16x32xf32>, i32 -> vector<16x32xf32>
    %c2_i32_20 = arith.constant 2 : i32
    %50 = vector.broadcast %c2_i32_20 : i32 to vector<16x1xi32>
    %51 = arith.cmpi sge, %34, %50 : vector<16x1xi32>
    %cst_21 = arith.constant 0.000000e+00 : f32
    %52 = vector.shape_cast %51 : vector<16x1xi1> to vector<16x1xi1>
    %53 = vector.broadcast %52 : vector<16x1xi1> to vector<16x32xi1>
    %54 = vector.broadcast %cst_21 : f32 to vector<16x32xf32>
    %55 = arith.select %53, %49, %54 : vector<16x32xi1>, vector<16x32xf32>
    %56 = vector.extract_strided_slice %35 {offsets = [1, 0], sizes = [1, 32], strides = [1, 1]} : vector<4x32xf32> to vector<1x32xf32>
    %57 = vector.broadcast %56 : vector<1x32xf32> to vector<16x32xf32>
    %58 = arith.mulf %55, %57 : vector<16x32xf32>
    %59 = arith.addf %48, %58 : vector<16x32xf32>
    %c1_i32_22 = arith.constant 1 : i32
    %60 = tpu.dynamic_rotate %15 by %c1_i32_22 dim 0 : vector<16x32xf32>, i32 -> vector<16x32xf32>
    %c1_i32_23 = arith.constant 1 : i32
    %61 = vector.broadcast %c1_i32_23 : i32 to vector<16x1xi32>
    %62 = arith.cmpi sge, %34, %61 : vector<16x1xi32>
    %cst_24 = arith.constant 0.000000e+00 : f32
    %63 = vector.shape_cast %62 : vector<16x1xi1> to vector<16x1xi1>
    %64 = vector.broadcast %63 : vector<16x1xi1> to vector<16x32xi1>
    %65 = vector.broadcast %cst_24 : f32 to vector<16x32xf32>
    %66 = arith.select %64, %60, %65 : vector<16x32xi1>, vector<16x32xf32>
    %67 = vector.extract_strided_slice %35 {offsets = [2, 0], sizes = [1, 32], strides = [1, 1]} : vector<4x32xf32> to vector<1x32xf32>
    %68 = vector.broadcast %67 : vector<1x32xf32> to vector<16x32xf32>
    %69 = arith.mulf %66, %68 : vector<16x32xf32>
    %70 = arith.addf %59, %69 : vector<16x32xf32>
    %71 = vector.extract_strided_slice %35 {offsets = [3, 0], sizes = [1, 32], strides = [1, 1]} : vector<4x32xf32> to vector<1x32xf32>
    %72 = vector.broadcast %71 : vector<1x32xf32> to vector<16x32xf32>
    %73 = arith.mulf %15, %72 : vector<16x32xf32>
    %74 = arith.addf %70, %73 : vector<16x32xf32>
    %75 = arith.negf %74 : vector<16x32xf32>
    %76 = math.exp %75 : vector<16x32xf32>
    %cst_25 = arith.constant 1.000000e+00 : f32
    %77 = vector.broadcast %cst_25 : f32 to vector<16x32xf32>
    %78 = arith.addf %77, %76 : vector<16x32xf32>
    %79 = arith.divf %77, %78 : vector<16x32xf32>
    %80 = arith.mulf %74, %79 : vector<16x32xf32>
    %c0_26 = arith.constant 0 : index
    %c0_27 = arith.constant 0 : index
    %81 = vector.load %arg7[%c0_26, %c0_27] : memref<32x160xf32, #tpu.memory_space<vmem>>, vector<32x160xf32>
    %cst_28 = arith.constant dense<0.000000e+00> : vector<16x160xf32>
    %82 = tpu.matmul %80, %81, %cst_28 {dimension_numbers = #tpu.dot_dimension_numbers<[1], [0], [0], [1], [0, 0, 1, 1], [], []>} : vector<16x32xf32>, vector<32x160xf32>, vector<16x160xf32> -> vector<16x160xf32>
    %83 = vector.extract_strided_slice %82 {offsets = [0, 0], sizes = [16, 128], strides = [1, 1]} : vector<16x160xf32> to vector<16x128xf32>
    %84 = vector.extract_strided_slice %82 {offsets = [0, 128], sizes = [16, 16], strides = [1, 1]} : vector<16x160xf32> to vector<16x16xf32>
    %85 = vector.extract_strided_slice %82 {offsets = [0, 144], sizes = [16, 16], strides = [1, 1]} : vector<16x160xf32> to vector<16x16xf32>
    %c0_29 = arith.constant 0 : index
    %c0_30 = arith.constant 0 : index
    %86 = vector.load %arg8[%c0_29, %c0_30] : memref<128x32xf32, #tpu.memory_space<vmem>>, vector<128x32xf32>
    %cst_31 = arith.constant dense<0.000000e+00> : vector<16x32xf32>
    %87 = tpu.matmul %83, %86, %cst_31 {dimension_numbers = #tpu.dot_dimension_numbers<[1], [0], [0], [1], [0, 0, 1, 1], [], []>} : vector<16x128xf32>, vector<128x32xf32>, vector<16x32xf32> -> vector<16x32xf32>
    %c0_32 = arith.constant 0 : index
    %c0_33 = arith.constant 0 : index
    %88 = vector.load %arg9[%c0_32, %c0_33] : memref<1x32xf32, #tpu.memory_space<vmem>>, vector<1x32xf32>
    %89 = vector.broadcast %88 : vector<1x32xf32> to vector<16x32xf32>
    %90 = arith.addf %87, %89 : vector<16x32xf32>
    %cst_34 = arith.constant 0.000000e+00 : f32
    %91 = vector.broadcast %cst_34 : f32 to vector<16x32xf32>
    %92 = arith.maximumf %90, %91 : vector<16x32xf32>
    %93 = vector.broadcast %cst_34 : f32 to vector<16x32xf32>
    %94 = arith.subf %90, %93 : vector<16x32xf32>
    %95 = arith.cmpf one, %94, %94 : vector<16x32xf32>
    %96 = vector.broadcast %cst_34 : f32 to vector<16x32xf32>
    %97 = arith.addf %90, %96 : vector<16x32xf32>
    %98 = math.absf %94 : vector<16x32xf32>
    %cst_35 = arith.constant 0.000000e+00 : f32
    %99 = vector.broadcast %cst_35 : f32 to vector<16x32xf32>
    %100 = arith.subf %99, %98 : vector<16x32xf32>
    %101 = math.exp %100 : vector<16x32xf32>
    %102 = math.log1p %101 : vector<16x32xf32>
    %103 = arith.addf %92, %102 : vector<16x32xf32>
    %104 = arith.select %95, %97, %103 : vector<16x32xi1>, vector<16x32xf32>
    %c0_36 = arith.constant 0 : index
    %c0_37 = arith.constant 0 : index
    %105 = vector.load %arg10[%c0_36, %c0_37] : memref<16x32xf32, #tpu.memory_space<vmem>>, vector<16x32xf32>
    %106 = math.exp %105 : vector<16x32xf32>
    %cst_38 = arith.constant 0.000000e+00 : f32
    %107 = vector.broadcast %cst_38 : f32 to vector<16x32xf32>
    %108 = arith.subf %107, %106 : vector<16x32xf32>
    %109 = arith.mulf %104, %80 : vector<16x32xf32>
    %cst_39 = arith.constant 0.000000e+00 : f32
    %110 = vector.broadcast %cst_39 : f32 to vector<16x32xf32>
    %111 = vector.extract_strided_slice %104 {offsets = [0, 0], sizes = [8, 32], strides = [1, 1]} : vector<16x32xf32> to vector<8x32xf32>
    %112 = vector.extract_strided_slice %109 {offsets = [0, 0], sizes = [8, 32], strides = [1, 1]} : vector<16x32xf32> to vector<8x32xf32>
    %113 = vector.extract_strided_slice %84 {offsets = [0, 0], sizes = [8, 16], strides = [1, 1]} : vector<16x16xf32> to vector<8x16xf32>
    %114 = vector.extract_strided_slice %85 {offsets = [0, 0], sizes = [8, 16], strides = [1, 1]} : vector<16x16xf32> to vector<8x16xf32>
    %115 = vector.shape_cast %111 : vector<8x32xf32> to vector<8x1x32xf32>
    %116 = vector.shape_cast %108 : vector<16x32xf32> to vector<1x16x32xf32>
    %117 = vector.broadcast %115 : vector<8x1x32xf32> to vector<8x16x32xf32>
    %118 = vector.broadcast %116 : vector<1x16x32xf32> to vector<8x16x32xf32>
    %119 = arith.mulf %117, %118 : vector<8x16x32xf32>
    %120 = math.exp %119 : vector<8x16x32xf32>
    %c0_40 = arith.constant 0 : index
    %c0_41 = arith.constant 0 : index
    %c0_42 = arith.constant 0 : index
    %121 = vector.load %arg14[%c0_40, %c0_41, %c0_42] : memref<8x16x32xf32, #tpu.memory_space<vmem>>, vector<8x16x32xf32>
    tpu.vector_store %arg14[%c0_40, %c0_41, %c0_42], %120 {strides = array<i32>} : memref<8x16x32xf32, #tpu.memory_space<vmem>>, vector<8x16x32xf32>,
    %122 = vector.shape_cast %112 : vector<8x32xf32> to vector<8x1x32xf32>
    %123 = vector.shape_cast %113 : vector<8x16xf32> to vector<8x16x1xf32>
    %124 = vector.broadcast %122 : vector<8x1x32xf32> to vector<8x16x32xf32>
    %125 = vector.broadcast %123 : vector<8x16x1xf32> to vector<8x16x32xf32>
    %126 = arith.mulf %124, %125 : vector<8x16x32xf32>
    %c0_43 = arith.constant 0 : index
    %c0_44 = arith.constant 0 : index
    %c0_45 = arith.constant 0 : index
    %127 = vector.load %arg15[%c0_43, %c0_44, %c0_45] : memref<8x16x32xf32, #tpu.memory_space<vmem>>, vector<8x16x32xf32>
    tpu.vector_store %arg15[%c0_43, %c0_44, %c0_45], %126 {strides = array<i32>} : memref<8x16x32xf32, #tpu.memory_space<vmem>>, vector<8x16x32xf32>,
    %128 = vector.shape_cast %114 : vector<8x16xf32> to vector<8x16x1xf32>
    %129 = vector.shape_cast %128 : vector<8x16x1xf32> to vector<8x16x1xf32>
    %130 = vector.broadcast %129 : vector<8x16x1xf32> to vector<8x16x32xf32>
    %c0_46 = arith.constant 0 : index
    %c0_47 = arith.constant 0 : index
    %c0_48 = arith.constant 0 : index
    %131 = vector.load %arg16[%c0_46, %c0_47, %c0_48] : memref<8x16x32xf32, #tpu.memory_space<vmem>>, vector<8x16x32xf32>
    tpu.vector_store %arg16[%c0_46, %c0_47, %c0_48], %130 {strides = array<i32>} : memref<8x16x32xf32, #tpu.memory_space<vmem>>, vector<8x16x32xf32>,
    %c0_i32_49 = arith.constant 0 : i32
    %c8_i32_50 = arith.constant 8 : i32
    %132 = arith.muli %c0_i32_49, %c8_i32_50 : i32
    %c0_i32_51 = arith.constant 0 : i32
    %133 = arith.addi %132, %c0_i32_51 : i32
    %134 = arith.index_cast %133 : i32 to index
    %c0_52 = arith.constant 0 : index
    %c0_53 = arith.constant 0 : index
    %135 = vector.load %arg14[%134, %c0_52, %c0_53] : memref<8x16x32xf32, #tpu.memory_space<vmem>>, vector<1x16x32xf32>
    %136 = vector.shape_cast %135 : vector<1x16x32xf32> to vector<16x32xf32>
    %137 = arith.mulf %136, %110 : vector<16x32xf32>
    %138 = arith.index_cast %133 : i32 to index
    %c0_54 = arith.constant 0 : index
    %c0_55 = arith.constant 0 : index
    %139 = vector.load %arg15[%138, %c0_54, %c0_55] : memref<8x16x32xf32, #tpu.memory_space<vmem>>, vector<1x16x32xf32>
    %140 = vector.shape_cast %139 : vector<1x16x32xf32> to vector<16x32xf32>
    %141 = arith.addf %137, %140 : vector<16x32xf32>
    %142 = arith.index_cast %133 : i32 to index
    %c0_56 = arith.constant 0 : index
    %c0_57 = arith.constant 0 : index
    %143 = vector.load %arg16[%142, %c0_56, %c0_57] : memref<8x16x32xf32, #tpu.memory_space<vmem>>, vector<1x16x32xf32>
    %144 = vector.shape_cast %143 : vector<1x16x32xf32> to vector<16x32xf32>
    %145 = arith.mulf %141, %144 : vector<16x32xf32>
    %cst_58 = arith.constant dense<0.000000e+00> : vector<32xf32>
    %146 = vector.multi_reduction <add>, %145, %cst_58 [0] : vector<16x32xf32> to vector<32xf32>
    %147 = vector.shape_cast %146 : vector<32xf32> to vector<1x32xf32>
    %c1_i32_59 = arith.constant 1 : i32
    %148 = arith.addi %132, %c1_i32_59 : i32
    %149 = arith.index_cast %148 : i32 to index
    %c0_60 = arith.constant 0 : index
    %c0_61 = arith.constant 0 : index
    %150 = vector.load %arg14[%149, %c0_60, %c0_61] : memref<8x16x32xf32, #tpu.memory_space<vmem>>, vector<1x16x32xf32>
    %151 = vector.shape_cast %150 : vector<1x16x32xf32> to vector<16x32xf32>
    %152 = arith.mulf %151, %141 : vector<16x32xf32>
    %153 = arith.index_cast %148 : i32 to index
    %c0_62 = arith.constant 0 : index
    %c0_63 = arith.constant 0 : index
    %154 = vector.load %arg15[%153, %c0_62, %c0_63] : memref<8x16x32xf32, #tpu.memory_space<vmem>>, vector<1x16x32xf32>
    %155 = vector.shape_cast %154 : vector<1x16x32xf32> to vector<16x32xf32>
    %156 = arith.addf %152, %155 : vector<16x32xf32>
    %157 = arith.index_cast %148 : i32 to index
    %c0_64 = arith.constant 0 : index
    %c0_65 = arith.constant 0 : index
    %158 = vector.load %arg16[%157, %c0_64, %c0_65] : memref<8x16x32xf32, #tpu.memory_space<vmem>>, vector<1x16x32xf32>
    %159 = vector.shape_cast %158 : vector<1x16x32xf32> to vector<16x32xf32>
    %160 = arith.mulf %156, %159 : vector<16x32xf32>
    %cst_66 = arith.constant dense<0.000000e+00> : vector<32xf32>
    %161 = vector.multi_reduction <add>, %160, %cst_66 [0] : vector<16x32xf32> to vector<32xf32>
    %162 = vector.shape_cast %161 : vector<32xf32> to vector<1x32xf32>
    %c2_i32_67 = arith.constant 2 : i32
    %163 = arith.addi %132, %c2_i32_67 : i32
    %164 = arith.index_cast %163 : i32 to index
    %c0_68 = arith.constant 0 : index
    %c0_69 = arith.constant 0 : index
    %165 = vector.load %arg14[%164, %c0_68, %c0_69] : memref<8x16x32xf32, #tpu.memory_space<vmem>>, vector<1x16x32xf32>
    %166 = vector.shape_cast %165 : vector<1x16x32xf32> to vector<16x32xf32>
    %167 = arith.mulf %166, %156 : vector<16x32xf32>
    %168 = arith.index_cast %163 : i32 to index
    %c0_70 = arith.constant 0 : index
    %c0_71 = arith.constant 0 : index
    %169 = vector.load %arg15[%168, %c0_70, %c0_71] : memref<8x16x32xf32, #tpu.memory_space<vmem>>, vector<1x16x32xf32>
    %170 = vector.shape_cast %169 : vector<1x16x32xf32> to vector<16x32xf32>
    %171 = arith.addf %167, %170 : vector<16x32xf32>
    %172 = arith.index_cast %163 : i32 to index
    %c0_72 = arith.constant 0 : index
    %c0_73 = arith.constant 0 : index
    %173 = vector.load %arg16[%172, %c0_72, %c0_73] : memref<8x16x32xf32, #tpu.memory_space<vmem>>, vector<1x16x32xf32>
    %174 = vector.shape_cast %173 : vector<1x16x32xf32> to vector<16x32xf32>
    %175 = arith.mulf %171, %174 : vector<16x32xf32>
    %cst_74 = arith.constant dense<0.000000e+00> : vector<32xf32>
    %176 = vector.multi_reduction <add>, %175, %cst_74 [0] : vector<16x32xf32> to vector<32xf32>
    %177 = vector.shape_cast %176 : vector<32xf32> to vector<1x32xf32>
    %c3_i32_75 = arith.constant 3 : i32
    %178 = arith.addi %132, %c3_i32_75 : i32
    %179 = arith.index_cast %178 : i32 to index
    %c0_76 = arith.constant 0 : index
    %c0_77 = arith.constant 0 : index
    %180 = vector.load %arg14[%179, %c0_76, %c0_77] : memref<8x16x32xf32, #tpu.memory_space<vmem>>, vector<1x16x32xf32>
    %181 = vector.shape_cast %180 : vector<1x16x32xf32> to vector<16x32xf32>
    %182 = arith.mulf %181, %171 : vector<16x32xf32>
    %183 = arith.index_cast %178 : i32 to index
    %c0_78 = arith.constant 0 : index
    %c0_79 = arith.constant 0 : index
    %184 = vector.load %arg15[%183, %c0_78, %c0_79] : memref<8x16x32xf32, #tpu.memory_space<vmem>>, vector<1x16x32xf32>
    %185 = vector.shape_cast %184 : vector<1x16x32xf32> to vector<16x32xf32>
    %186 = arith.addf %182, %185 : vector<16x32xf32>
    %187 = arith.index_cast %178 : i32 to index
    %c0_80 = arith.constant 0 : index
    %c0_81 = arith.constant 0 : index
    %188 = vector.load %arg16[%187, %c0_80, %c0_81] : memref<8x16x32xf32, #tpu.memory_space<vmem>>, vector<1x16x32xf32>
    %189 = vector.shape_cast %188 : vector<1x16x32xf32> to vector<16x32xf32>
    %190 = arith.mulf %186, %189 : vector<16x32xf32>
    %cst_82 = arith.constant dense<0.000000e+00> : vector<32xf32>
    %191 = vector.multi_reduction <add>, %190, %cst_82 [0] : vector<16x32xf32> to vector<32xf32>
    %192 = vector.shape_cast %191 : vector<32xf32> to vector<1x32xf32>
    %c4_i32 = arith.constant 4 : i32
    %193 = arith.addi %132, %c4_i32 : i32
    %194 = arith.index_cast %193 : i32 to index
    %c0_83 = arith.constant 0 : index
    %c0_84 = arith.constant 0 : index
    %195 = vector.load %arg14[%194, %c0_83, %c0_84] : memref<8x16x32xf32, #tpu.memory_space<vmem>>, vector<1x16x32xf32>
    %196 = vector.shape_cast %195 : vector<1x16x32xf32> to vector<16x32xf32>
    %197 = arith.mulf %196, %186 : vector<16x32xf32>
    %198 = arith.index_cast %193 : i32 to index
    %c0_85 = arith.constant 0 : index
    %c0_86 = arith.constant 0 : index
    %199 = vector.load %arg15[%198, %c0_85, %c0_86] : memref<8x16x32xf32, #tpu.memory_space<vmem>>, vector<1x16x32xf32>
    %200 = vector.shape_cast %199 : vector<1x16x32xf32> to vector<16x32xf32>
    %201 = arith.addf %197, %200 : vector<16x32xf32>
    %202 = arith.index_cast %193 : i32 to index
    %c0_87 = arith.constant 0 : index
    %c0_88 = arith.constant 0 : index
    %203 = vector.load %arg16[%202, %c0_87, %c0_88] : memref<8x16x32xf32, #tpu.memory_space<vmem>>, vector<1x16x32xf32>
    %204 = vector.shape_cast %203 : vector<1x16x32xf32> to vector<16x32xf32>
    %205 = arith.mulf %201, %204 : vector<16x32xf32>
    %cst_89 = arith.constant dense<0.000000e+00> : vector<32xf32>
    %206 = vector.multi_reduction <add>, %205, %cst_89 [0] : vector<16x32xf32> to vector<32xf32>
    %207 = vector.shape_cast %206 : vector<32xf32> to vector<1x32xf32>
    %c5_i32 = arith.constant 5 : i32
    %208 = arith.addi %132, %c5_i32 : i32
    %209 = arith.index_cast %208 : i32 to index
    %c0_90 = arith.constant 0 : index
    %c0_91 = arith.constant 0 : index
    %210 = vector.load %arg14[%209, %c0_90, %c0_91] : memref<8x16x32xf32, #tpu.memory_space<vmem>>, vector<1x16x32xf32>
    %211 = vector.shape_cast %210 : vector<1x16x32xf32> to vector<16x32xf32>
    %212 = arith.mulf %211, %201 : vector<16x32xf32>
    %213 = arith.index_cast %208 : i32 to index
    %c0_92 = arith.constant 0 : index
    %c0_93 = arith.constant 0 : index
    %214 = vector.load %arg15[%213, %c0_92, %c0_93] : memref<8x16x32xf32, #tpu.memory_space<vmem>>, vector<1x16x32xf32>
    %215 = vector.shape_cast %214 : vector<1x16x32xf32> to vector<16x32xf32>
    %216 = arith.addf %212, %215 : vector<16x32xf32>
    %217 = arith.index_cast %208 : i32 to index
    %c0_94 = arith.constant 0 : index
    %c0_95 = arith.constant 0 : index
    %218 = vector.load %arg16[%217, %c0_94, %c0_95] : memref<8x16x32xf32, #tpu.memory_space<vmem>>, vector<1x16x32xf32>
    %219 = vector.shape_cast %218 : vector<1x16x32xf32> to vector<16x32xf32>
    %220 = arith.mulf %216, %219 : vector<16x32xf32>
    %cst_96 = arith.constant dense<0.000000e+00> : vector<32xf32>
    %221 = vector.multi_reduction <add>, %220, %cst_96 [0] : vector<16x32xf32> to vector<32xf32>
    %222 = vector.shape_cast %221 : vector<32xf32> to vector<1x32xf32>
    %c6_i32 = arith.constant 6 : i32
    %223 = arith.addi %132, %c6_i32 : i32
    %224 = arith.index_cast %223 : i32 to index
    %c0_97 = arith.constant 0 : index
    %c0_98 = arith.constant 0 : index
    %225 = vector.load %arg14[%224, %c0_97, %c0_98] : memref<8x16x32xf32, #tpu.memory_space<vmem>>, vector<1x16x32xf32>
    %226 = vector.shape_cast %225 : vector<1x16x32xf32> to vector<16x32xf32>
    %227 = arith.mulf %226, %216 : vector<16x32xf32>
    %228 = arith.index_cast %223 : i32 to index
    %c0_99 = arith.constant 0 : index
    %c0_100 = arith.constant 0 : index
    %229 = vector.load %arg15[%228, %c0_99, %c0_100] : memref<8x16x32xf32, #tpu.memory_space<vmem>>, vector<1x16x32xf32>
    %230 = vector.shape_cast %229 : vector<1x16x32xf32> to vector<16x32xf32>
    %231 = arith.addf %227, %230 : vector<16x32xf32>
    %232 = arith.index_cast %223 : i32 to index
    %c0_101 = arith.constant 0 : index
    %c0_102 = arith.constant 0 : index
    %233 = vector.load %arg16[%232, %c0_101, %c0_102] : memref<8x16x32xf32, #tpu.memory_space<vmem>>, vector<1x16x32xf32>
    %234 = vector.shape_cast %233 : vector<1x16x32xf32> to vector<16x32xf32>
    %235 = arith.mulf %231, %234 : vector<16x32xf32>
    %cst_103 = arith.constant dense<0.000000e+00> : vector<32xf32>
    %236 = vector.multi_reduction <add>, %235, %cst_103 [0] : vector<16x32xf32> to vector<32xf32>
    %237 = vector.shape_cast %236 : vector<32xf32> to vector<1x32xf32>
    %c7_i32 = arith.constant 7 : i32
    %238 = arith.addi %132, %c7_i32 : i32
    %239 = arith.index_cast %238 : i32 to index
    %c0_104 = arith.constant 0 : index
    %c0_105 = arith.constant 0 : index
    %240 = vector.load %arg14[%239, %c0_104, %c0_105] : memref<8x16x32xf32, #tpu.memory_space<vmem>>, vector<1x16x32xf32>
    %241 = vector.shape_cast %240 : vector<1x16x32xf32> to vector<16x32xf32>
    %242 = arith.mulf %241, %231 : vector<16x32xf32>
    %243 = arith.index_cast %238 : i32 to index
    %c0_106 = arith.constant 0 : index
    %c0_107 = arith.constant 0 : index
    %244 = vector.load %arg15[%243, %c0_106, %c0_107] : memref<8x16x32xf32, #tpu.memory_space<vmem>>, vector<1x16x32xf32>
    %245 = vector.shape_cast %244 : vector<1x16x32xf32> to vector<16x32xf32>
    %246 = arith.addf %242, %245 : vector<16x32xf32>
    %247 = arith.index_cast %238 : i32 to index
    %c0_108 = arith.constant 0 : index
    %c0_109 = arith.constant 0 : index
    %248 = vector.load %arg16[%247, %c0_108, %c0_109] : memref<8x16x32xf32, #tpu.memory_space<vmem>>, vector<1x16x32xf32>
    %249 = vector.shape_cast %248 : vector<1x16x32xf32> to vector<16x32xf32>
    %250 = arith.mulf %246, %249 : vector<16x32xf32>
    %cst_110 = arith.constant dense<0.000000e+00> : vector<32xf32>
    %251 = vector.multi_reduction <add>, %250, %cst_110 [0] : vector<16x32xf32> to vector<32xf32>
    %252 = vector.shape_cast %251 : vector<32xf32> to vector<1x32xf32>
    %c0_i32_111 = arith.constant 0 : i32
    %253 = arith.addi %c0_i32_111, %132 : i32
    %254 = tpu.assume_multiple %253, 8 : i32
    %255 = tpu.concatenate %147, %162, %177, %192, %207, %222, %237, %252 in 0 : vector<1x32xf32>, vector<1x32xf32>, vector<1x32xf32>, vector<1x32xf32>, vector<1x32xf32>, vector<1x32xf32>, vector<1x32xf32>, vector<1x32xf32> -> vector<8x32xf32>
    %256 = arith.index_cast %254 : i32 to index
    %c0_112 = arith.constant 0 : index
    %257 = vector.load %arg17[%256, %c0_112] : memref<16x32xf32, #tpu.memory_space<vmem>>, vector<8x32xf32>
    tpu.vector_store %arg17[%256, %c0_112], %255 {strides = array<i32>} : memref<16x32xf32, #tpu.memory_space<vmem>>, vector<8x32xf32>,
    %c1_i32_113 = arith.constant 1 : i32
    %cst_114 = arith.constant 0.000000e+00 : f32
    %258 = vector.broadcast %cst_114 : f32 to vector<16x32xf32>
    %259 = vector.extract_strided_slice %104 {offsets = [8, 0], sizes = [8, 32], strides = [1, 1]} : vector<16x32xf32> to vector<8x32xf32>
    %260 = vector.extract_strided_slice %109 {offsets = [8, 0], sizes = [8, 32], strides = [1, 1]} : vector<16x32xf32> to vector<8x32xf32>
    %261 = vector.extract_strided_slice %84 {offsets = [8, 0], sizes = [8, 16], strides = [1, 1]} : vector<16x16xf32> to vector<8x16xf32>
    %262 = vector.extract_strided_slice %85 {offsets = [8, 0], sizes = [8, 16], strides = [1, 1]} : vector<16x16xf32> to vector<8x16xf32>
    %263 = vector.shape_cast %259 : vector<8x32xf32> to vector<8x1x32xf32>
    %264 = vector.shape_cast %108 : vector<16x32xf32> to vector<1x16x32xf32>
    %265 = vector.broadcast %263 : vector<8x1x32xf32> to vector<8x16x32xf32>
    %266 = vector.broadcast %264 : vector<1x16x32xf32> to vector<8x16x32xf32>
    %267 = arith.mulf %265, %266 : vector<8x16x32xf32>
    %268 = math.exp %267 : vector<8x16x32xf32>
    %c0_115 = arith.constant 0 : index
    %c0_116 = arith.constant 0 : index
    %c0_117 = arith.constant 0 : index
    %269 = vector.load %arg14[%c0_115, %c0_116, %c0_117] : memref<8x16x32xf32, #tpu.memory_space<vmem>>, vector<8x16x32xf32>
    tpu.vector_store %arg14[%c0_115, %c0_116, %c0_117], %268 {strides = array<i32>} : memref<8x16x32xf32, #tpu.memory_space<vmem>>, vector<8x16x32xf32>,
    %270 = vector.shape_cast %260 : vector<8x32xf32> to vector<8x1x32xf32>
    %271 = vector.shape_cast %261 : vector<8x16xf32> to vector<8x16x1xf32>
    %272 = vector.broadcast %270 : vector<8x1x32xf32> to vector<8x16x32xf32>
    %273 = vector.broadcast %271 : vector<8x16x1xf32> to vector<8x16x32xf32>
    %274 = arith.mulf %272, %273 : vector<8x16x32xf32>
    %c0_118 = arith.constant 0 : index
    %c0_119 = arith.constant 0 : index
    %c0_120 = arith.constant 0 : index
    %275 = vector.load %arg15[%c0_118, %c0_119, %c0_120] : memref<8x16x32xf32, #tpu.memory_space<vmem>>, vector<8x16x32xf32>
    tpu.vector_store %arg15[%c0_118, %c0_119, %c0_120], %274 {strides = array<i32>} : memref<8x16x32xf32, #tpu.memory_space<vmem>>, vector<8x16x32xf32>,
    %276 = vector.shape_cast %262 : vector<8x16xf32> to vector<8x16x1xf32>
    %277 = vector.shape_cast %276 : vector<8x16x1xf32> to vector<8x16x1xf32>
    %278 = vector.broadcast %277 : vector<8x16x1xf32> to vector<8x16x32xf32>
    %c0_121 = arith.constant 0 : index
    %c0_122 = arith.constant 0 : index
    %c0_123 = arith.constant 0 : index
    %279 = vector.load %arg16[%c0_121, %c0_122, %c0_123] : memref<8x16x32xf32, #tpu.memory_space<vmem>>, vector<8x16x32xf32>
    tpu.vector_store %arg16[%c0_121, %c0_122, %c0_123], %278 {strides = array<i32>} : memref<8x16x32xf32, #tpu.memory_space<vmem>>, vector<8x16x32xf32>,
    %c0_i32_124 = arith.constant 0 : i32
    %c8_i32_125 = arith.constant 8 : i32
    %280 = arith.muli %c0_i32_124, %c8_i32_125 : i32
    %c0_i32_126 = arith.constant 0 : i32
    %281 = arith.addi %280, %c0_i32_126 : i32
    %282 = arith.index_cast %281 : i32 to index
    %c0_127 = arith.constant 0 : index
    %c0_128 = arith.constant 0 : index
    %283 = vector.load %arg14[%282, %c0_127, %c0_128] : memref<8x16x32xf32, #tpu.memory_space<vmem>>, vector<1x16x32xf32>
    %284 = vector.shape_cast %283 : vector<1x16x32xf32> to vector<16x32xf32>
    %285 = arith.mulf %284, %258 : vector<16x32xf32>
    %286 = arith.index_cast %281 : i32 to index
    %c0_129 = arith.constant 0 : index
    %c0_130 = arith.constant 0 : index
    %287 = vector.load %arg15[%286, %c0_129, %c0_130] : memref<8x16x32xf32, #tpu.memory_space<vmem>>, vector<1x16x32xf32>
    %288 = vector.shape_cast %287 : vector<1x16x32xf32> to vector<16x32xf32>
    %289 = arith.addf %285, %288 : vector<16x32xf32>
    %290 = arith.index_cast %281 : i32 to index
    %c0_131 = arith.constant 0 : index
    %c0_132 = arith.constant 0 : index
    %291 = vector.load %arg16[%290, %c0_131, %c0_132] : memref<8x16x32xf32, #tpu.memory_space<vmem>>, vector<1x16x32xf32>
    %292 = vector.shape_cast %291 : vector<1x16x32xf32> to vector<16x32xf32>
    %293 = arith.mulf %289, %292 : vector<16x32xf32>
    %cst_133 = arith.constant dense<0.000000e+00> : vector<32xf32>
    %294 = vector.multi_reduction <add>, %293, %cst_133 [0] : vector<16x32xf32> to vector<32xf32>
    %295 = vector.shape_cast %294 : vector<32xf32> to vector<1x32xf32>
    %c1_i32_134 = arith.constant 1 : i32
    %296 = arith.addi %280, %c1_i32_134 : i32
    %297 = arith.index_cast %296 : i32 to index
    %c0_135 = arith.constant 0 : index
    %c0_136 = arith.constant 0 : index
    %298 = vector.load %arg14[%297, %c0_135, %c0_136] : memref<8x16x32xf32, #tpu.memory_space<vmem>>, vector<1x16x32xf32>
    %299 = vector.shape_cast %298 : vector<1x16x32xf32> to vector<16x32xf32>
    %300 = arith.mulf %299, %289 : vector<16x32xf32>
    %301 = arith.index_cast %296 : i32 to index
    %c0_137 = arith.constant 0 : index
    %c0_138 = arith.constant 0 : index
    %302 = vector.load %arg15[%301, %c0_137, %c0_138] : memref<8x16x32xf32, #tpu.memory_space<vmem>>, vector<1x16x32xf32>
    %303 = vector.shape_cast %302 : vector<1x16x32xf32> to vector<16x32xf32>
    %304 = arith.addf %300, %303 : vector<16x32xf32>
    %305 = arith.index_cast %296 : i32 to index
    %c0_139 = arith.constant 0 : index
    %c0_140 = arith.constant 0 : index
    %306 = vector.load %arg16[%305, %c0_139, %c0_140] : memref<8x16x32xf32, #tpu.memory_space<vmem>>, vector<1x16x32xf32>
    %307 = vector.shape_cast %306 : vector<1x16x32xf32> to vector<16x32xf32>
    %308 = arith.mulf %304, %307 : vector<16x32xf32>
    %cst_141 = arith.constant dense<0.000000e+00> : vector<32xf32>
    %309 = vector.multi_reduction <add>, %308, %cst_141 [0] : vector<16x32xf32> to vector<32xf32>
    %310 = vector.shape_cast %309 : vector<32xf32> to vector<1x32xf32>
    %c2_i32_142 = arith.constant 2 : i32
    %311 = arith.addi %280, %c2_i32_142 : i32
    %312 = arith.index_cast %311 : i32 to index
    %c0_143 = arith.constant 0 : index
    %c0_144 = arith.constant 0 : index
    %313 = vector.load %arg14[%312, %c0_143, %c0_144] : memref<8x16x32xf32, #tpu.memory_space<vmem>>, vector<1x16x32xf32>
    %314 = vector.shape_cast %313 : vector<1x16x32xf32> to vector<16x32xf32>
    %315 = arith.mulf %314, %304 : vector<16x32xf32>
    %316 = arith.index_cast %311 : i32 to index
    %c0_145 = arith.constant 0 : index
    %c0_146 = arith.constant 0 : index
    %317 = vector.load %arg15[%316, %c0_145, %c0_146] : memref<8x16x32xf32, #tpu.memory_space<vmem>>, vector<1x16x32xf32>
    %318 = vector.shape_cast %317 : vector<1x16x32xf32> to vector<16x32xf32>
    %319 = arith.addf %315, %318 : vector<16x32xf32>
    %320 = arith.index_cast %311 : i32 to index
    %c0_147 = arith.constant 0 : index
    %c0_148 = arith.constant 0 : index
    %321 = vector.load %arg16[%320, %c0_147, %c0_148] : memref<8x16x32xf32, #tpu.memory_space<vmem>>, vector<1x16x32xf32>
    %322 = vector.shape_cast %321 : vector<1x16x32xf32> to vector<16x32xf32>
    %323 = arith.mulf %319, %322 : vector<16x32xf32>
    %cst_149 = arith.constant dense<0.000000e+00> : vector<32xf32>
    %324 = vector.multi_reduction <add>, %323, %cst_149 [0] : vector<16x32xf32> to vector<32xf32>
    %325 = vector.shape_cast %324 : vector<32xf32> to vector<1x32xf32>
    %c3_i32_150 = arith.constant 3 : i32
    %326 = arith.addi %280, %c3_i32_150 : i32
    %327 = arith.index_cast %326 : i32 to index
    %c0_151 = arith.constant 0 : index
    %c0_152 = arith.constant 0 : index
    %328 = vector.load %arg14[%327, %c0_151, %c0_152] : memref<8x16x32xf32, #tpu.memory_space<vmem>>, vector<1x16x32xf32>
    %329 = vector.shape_cast %328 : vector<1x16x32xf32> to vector<16x32xf32>
    %330 = arith.mulf %329, %319 : vector<16x32xf32>
    %331 = arith.index_cast %326 : i32 to index
    %c0_153 = arith.constant 0 : index
    %c0_154 = arith.constant 0 : index
    %332 = vector.load %arg15[%331, %c0_153, %c0_154] : memref<8x16x32xf32, #tpu.memory_space<vmem>>, vector<1x16x32xf32>
    %333 = vector.shape_cast %332 : vector<1x16x32xf32> to vector<16x32xf32>
    %334 = arith.addf %330, %333 : vector<16x32xf32>
    %335 = arith.index_cast %326 : i32 to index
    %c0_155 = arith.constant 0 : index
    %c0_156 = arith.constant 0 : index
    %336 = vector.load %arg16[%335, %c0_155, %c0_156] : memref<8x16x32xf32, #tpu.memory_space<vmem>>, vector<1x16x32xf32>
    %337 = vector.shape_cast %336 : vector<1x16x32xf32> to vector<16x32xf32>
    %338 = arith.mulf %334, %337 : vector<16x32xf32>
    %cst_157 = arith.constant dense<0.000000e+00> : vector<32xf32>
    %339 = vector.multi_reduction <add>, %338, %cst_157 [0] : vector<16x32xf32> to vector<32xf32>
    %340 = vector.shape_cast %339 : vector<32xf32> to vector<1x32xf32>
    %c4_i32_158 = arith.constant 4 : i32
    %341 = arith.addi %280, %c4_i32_158 : i32
    %342 = arith.index_cast %341 : i32 to index
    %c0_159 = arith.constant 0 : index
    %c0_160 = arith.constant 0 : index
    %343 = vector.load %arg14[%342, %c0_159, %c0_160] : memref<8x16x32xf32, #tpu.memory_space<vmem>>, vector<1x16x32xf32>
    %344 = vector.shape_cast %343 : vector<1x16x32xf32> to vector<16x32xf32>
    %345 = arith.mulf %344, %334 : vector<16x32xf32>
    %346 = arith.index_cast %341 : i32 to index
    %c0_161 = arith.constant 0 : index
    %c0_162 = arith.constant 0 : index
    %347 = vector.load %arg15[%346, %c0_161, %c0_162] : memref<8x16x32xf32, #tpu.memory_space<vmem>>, vector<1x16x32xf32>
    %348 = vector.shape_cast %347 : vector<1x16x32xf32> to vector<16x32xf32>
    %349 = arith.addf %345, %348 : vector<16x32xf32>
    %350 = arith.index_cast %341 : i32 to index
    %c0_163 = arith.constant 0 : index
    %c0_164 = arith.constant 0 : index
    %351 = vector.load %arg16[%350, %c0_163, %c0_164] : memref<8x16x32xf32, #tpu.memory_space<vmem>>, vector<1x16x32xf32>
    %352 = vector.shape_cast %351 : vector<1x16x32xf32> to vector<16x32xf32>
    %353 = arith.mulf %349, %352 : vector<16x32xf32>
    %cst_165 = arith.constant dense<0.000000e+00> : vector<32xf32>
    %354 = vector.multi_reduction <add>, %353, %cst_165 [0] : vector<16x32xf32> to vector<32xf32>
    %355 = vector.shape_cast %354 : vector<32xf32> to vector<1x32xf32>
    %c5_i32_166 = arith.constant 5 : i32
    %356 = arith.addi %280, %c5_i32_166 : i32
    %357 = arith.index_cast %356 : i32 to index
    %c0_167 = arith.constant 0 : index
    %c0_168 = arith.constant 0 : index
    %358 = vector.load %arg14[%357, %c0_167, %c0_168] : memref<8x16x32xf32, #tpu.memory_space<vmem>>, vector<1x16x32xf32>
    %359 = vector.shape_cast %358 : vector<1x16x32xf32> to vector<16x32xf32>
    %360 = arith.mulf %359, %349 : vector<16x32xf32>
    %361 = arith.index_cast %356 : i32 to index
    %c0_169 = arith.constant 0 : index
    %c0_170 = arith.constant 0 : index
    %362 = vector.load %arg15[%361, %c0_169, %c0_170] : memref<8x16x32xf32, #tpu.memory_space<vmem>>, vector<1x16x32xf32>
    %363 = vector.shape_cast %362 : vector<1x16x32xf32> to vector<16x32xf32>
    %364 = arith.addf %360, %363 : vector<16x32xf32>
    %365 = arith.index_cast %356 : i32 to index
    %c0_171 = arith.constant 0 : index
    %c0_172 = arith.constant 0 : index
    %366 = vector.load %arg16[%365, %c0_171, %c0_172] : memref<8x16x32xf32, #tpu.memory_space<vmem>>, vector<1x16x32xf32>
    %367 = vector.shape_cast %366 : vector<1x16x32xf32> to vector<16x32xf32>
    %368 = arith.mulf %364, %367 : vector<16x32xf32>
    %cst_173 = arith.constant dense<0.000000e+00> : vector<32xf32>
    %369 = vector.multi_reduction <add>, %368, %cst_173 [0] : vector<16x32xf32> to vector<32xf32>
    %370 = vector.shape_cast %369 : vector<32xf32> to vector<1x32xf32>
    %c6_i32_174 = arith.constant 6 : i32
    %371 = arith.addi %280, %c6_i32_174 : i32
    %372 = arith.index_cast %371 : i32 to index
    %c0_175 = arith.constant 0 : index
    %c0_176 = arith.constant 0 : index
    %373 = vector.load %arg14[%372, %c0_175, %c0_176] : memref<8x16x32xf32, #tpu.memory_space<vmem>>, vector<1x16x32xf32>
    %374 = vector.shape_cast %373 : vector<1x16x32xf32> to vector<16x32xf32>
    %375 = arith.mulf %374, %364 : vector<16x32xf32>
    %376 = arith.index_cast %371 : i32 to index
    %c0_177 = arith.constant 0 : index
    %c0_178 = arith.constant 0 : index
    %377 = vector.load %arg15[%376, %c0_177, %c0_178] : memref<8x16x32xf32, #tpu.memory_space<vmem>>, vector<1x16x32xf32>
    %378 = vector.shape_cast %377 : vector<1x16x32xf32> to vector<16x32xf32>
    %379 = arith.addf %375, %378 : vector<16x32xf32>
    %380 = arith.index_cast %371 : i32 to index
    %c0_179 = arith.constant 0 : index
    %c0_180 = arith.constant 0 : index
    %381 = vector.load %arg16[%380, %c0_179, %c0_180] : memref<8x16x32xf32, #tpu.memory_space<vmem>>, vector<1x16x32xf32>
    %382 = vector.shape_cast %381 : vector<1x16x32xf32> to vector<16x32xf32>
    %383 = arith.mulf %379, %382 : vector<16x32xf32>
    %cst_181 = arith.constant dense<0.000000e+00> : vector<32xf32>
    %384 = vector.multi_reduction <add>, %383, %cst_181 [0] : vector<16x32xf32> to vector<32xf32>
    %385 = vector.shape_cast %384 : vector<32xf32> to vector<1x32xf32>
    %c7_i32_182 = arith.constant 7 : i32
    %386 = arith.addi %280, %c7_i32_182 : i32
    %387 = arith.index_cast %386 : i32 to index
    %c0_183 = arith.constant 0 : index
    %c0_184 = arith.constant 0 : index
    %388 = vector.load %arg14[%387, %c0_183, %c0_184] : memref<8x16x32xf32, #tpu.memory_space<vmem>>, vector<1x16x32xf32>
    %389 = vector.shape_cast %388 : vector<1x16x32xf32> to vector<16x32xf32>
    %390 = arith.mulf %389, %379 : vector<16x32xf32>
    %391 = arith.index_cast %386 : i32 to index
    %c0_185 = arith.constant 0 : index
    %c0_186 = arith.constant 0 : index
    %392 = vector.load %arg15[%391, %c0_185, %c0_186] : memref<8x16x32xf32, #tpu.memory_space<vmem>>, vector<1x16x32xf32>
    %393 = vector.shape_cast %392 : vector<1x16x32xf32> to vector<16x32xf32>
    %394 = arith.addf %390, %393 : vector<16x32xf32>
    %395 = arith.index_cast %386 : i32 to index
    %c0_187 = arith.constant 0 : index
    %c0_188 = arith.constant 0 : index
    %396 = vector.load %arg16[%395, %c0_187, %c0_188] : memref<8x16x32xf32, #tpu.memory_space<vmem>>, vector<1x16x32xf32>
    %397 = vector.shape_cast %396 : vector<1x16x32xf32> to vector<16x32xf32>
    %398 = arith.mulf %394, %397 : vector<16x32xf32>
    %cst_189 = arith.constant dense<0.000000e+00> : vector<32xf32>
    %399 = vector.multi_reduction <add>, %398, %cst_189 [0] : vector<16x32xf32> to vector<32xf32>
    %400 = vector.shape_cast %399 : vector<32xf32> to vector<1x32xf32>
    %c8_i32_190 = arith.constant 8 : i32
    %401 = arith.addi %c8_i32_190, %280 : i32
    %402 = tpu.assume_multiple %401, 8 : i32
    %403 = tpu.concatenate %295, %310, %325, %340, %355, %370, %385, %400 in 0 : vector<1x32xf32>, vector<1x32xf32>, vector<1x32xf32>, vector<1x32xf32>, vector<1x32xf32>, vector<1x32xf32>, vector<1x32xf32>, vector<1x32xf32> -> vector<8x32xf32>
    %404 = arith.index_cast %402 : i32 to index
    %c0_191 = arith.constant 0 : index
    %405 = vector.load %arg17[%404, %c0_191] : memref<16x32xf32, #tpu.memory_space<vmem>>, vector<8x32xf32>
    tpu.vector_store %arg17[%404, %c0_191], %403 {strides = array<i32>} : memref<16x32xf32, #tpu.memory_space<vmem>>, vector<8x32xf32>,
    %c1_i32_192 = arith.constant 1 : i32
    %c0_193 = arith.constant 0 : index
    %c0_194 = arith.constant 0 : index
    %406 = vector.load %arg17[%c0_193, %c0_194] : memref<16x32xf32, #tpu.memory_space<vmem>>, vector<16x32xf32>
    %c0_195 = arith.constant 0 : index
    %c0_196 = arith.constant 0 : index
    %407 = vector.load %arg11[%c0_195, %c0_196] : memref<1x32xf32, #tpu.memory_space<vmem>>, vector<1x32xf32>
    %408 = vector.broadcast %407 : vector<1x32xf32> to vector<16x32xf32>
    %409 = arith.mulf %408, %80 : vector<16x32xf32>
    %410 = arith.addf %406, %409 : vector<16x32xf32>
    %411 = arith.negf %17 : vector<16x32xf32>
    %412 = math.exp %411 : vector<16x32xf32>
    %cst_197 = arith.constant 1.000000e+00 : f32
    %413 = vector.broadcast %cst_197 : f32 to vector<16x32xf32>
    %414 = arith.addf %413, %412 : vector<16x32xf32>
    %415 = arith.divf %413, %414 : vector<16x32xf32>
    %416 = arith.mulf %17, %415 : vector<16x32xf32>
    %417 = arith.mulf %410, %416 : vector<16x32xf32>
    %c0_198 = arith.constant 0 : index
    %c0_199 = arith.constant 0 : index
    %418 = vector.load %arg12[%c0_198, %c0_199] : memref<32x16xf32, #tpu.memory_space<vmem>>, vector<32x16xf32>
    %cst_200 = arith.constant dense<0.000000e+00> : vector<16x16xf32>
    %419 = tpu.matmul %417, %418, %cst_200 {dimension_numbers = #tpu.dot_dimension_numbers<[1], [0], [0], [1], [0, 0, 1, 1], [], []>} : vector<16x32xf32>, vector<32x16xf32>, vector<16x16xf32> -> vector<16x16xf32>
    %c0_201 = arith.constant 0 : index
    %c0_202 = arith.constant 0 : index
    %420 = vector.load %arg1[%c0_201, %c0_202] : memref<16x16xf32, #tpu.memory_space<vmem>>, vector<16x16xf32>
    %421 = arith.addf %419, %420 : vector<16x16xf32>
    %c0_203 = arith.constant 0 : index
    %c0_204 = arith.constant 0 : index
    %422 = vector.load %arg13[%c0_203, %c0_204] : memref<16x16xf32, #tpu.memory_space<vmem>>, vector<16x16xf32>
    tpu.vector_store %arg13[%c0_203, %c0_204], %421 {strides = array<i32>} : memref<16x16xf32, #tpu.memory_space<vmem>>, vector<16x16xf32>,
    return
  }
  func.func @transform_0(%arg0: i32) -> (i32, i32) {
    %c0_i32 = arith.constant 0 : i32
    %c0_i32_0 = arith.constant 0 : i32
    return %arg0, %c0_i32 : i32, i32
  }
  func.func @transform_1(%arg0: i32) -> (i32, i32) {
    %c0_i32 = arith.constant 0 : i32
    %c0_i32_0 = arith.constant 0 : i32
    %c0_i32_1 = arith.constant 0 : i32
    return %c0_i32, %c0_i32_0 : i32, i32
  }
  func.func @transform_2(%arg0: i32) -> (i32, i32) {
    %c0_i32 = arith.constant 0 : i32
    %c0_i32_0 = arith.constant 0 : i32
    %c0_i32_1 = arith.constant 0 : i32
    return %c0_i32, %c0_i32_0 : i32, i32
  }
  func.func @transform_3(%arg0: i32) -> (i32, i32) {
    %c0_i32 = arith.constant 0 : i32
    %c0_i32_0 = arith.constant 0 : i32
    %c0_i32_1 = arith.constant 0 : i32
    return %c0_i32, %c0_i32_0 : i32, i32
  }
  func.func @transform_4(%arg0: i32) -> (i32, i32) {
    %c0_i32 = arith.constant 0 : i32
    %c0_i32_0 = arith.constant 0 : i32
    %c0_i32_1 = arith.constant 0 : i32
    return %c0_i32, %c0_i32_0 : i32, i32
  }
  func.func @transform_5(%arg0: i32) -> (i32, i32) {
    %c0_i32 = arith.constant 0 : i32
    %c0_i32_0 = arith.constant 0 : i32
    %c0_i32_1 = arith.constant 0 : i32
    return %c0_i32, %c0_i32_0 : i32, i32
  }
  func.func @transform_6(%arg0: i32) -> (i32, i32) {
    %c0_i32 = arith.constant 0 : i32
    %c0_i32_0 = arith.constant 0 : i32
    %c0_i32_1 = arith.constant 0 : i32
    return %c0_i32, %c0_i32_0 : i32, i32
  }
  func.func @transform_7(%arg0: i32) -> (i32, i32) {
    %c0_i32 = arith.constant 0 : i32
    %c0_i32_0 = arith.constant 0 : i32
    %c0_i32_1 = arith.constant 0 : i32
    return %c0_i32, %c0_i32_0 : i32, i32
  }
  func.func @transform_8(%arg0: i32) -> (i32, i32) {
    %c0_i32 = arith.constant 0 : i32
    %c0_i32_0 = arith.constant 0 : i32
    %c0_i32_1 = arith.constant 0 : i32
    return %c0_i32, %c0_i32_0 : i32, i32
  }
  func.func @transform_9(%arg0: i32) -> (i32, i32) {
    %c0_i32 = arith.constant 0 : i32
    %c0_i32_0 = arith.constant 0 : i32
    %c0_i32_1 = arith.constant 0 : i32
    return %c0_i32, %c0_i32_0 : i32, i32
  }
  func.func @transform_10(%arg0: i32) -> (i32, i32) {
    %c0_i32 = arith.constant 0 : i32
    %c0_i32_0 = arith.constant 0 : i32
    %c0_i32_1 = arith.constant 0 : i32
    return %c0_i32, %c0_i32_0 : i32, i32
  }
  func.func @transform_11(%arg0: i32) -> (i32, i32) {
    %c0_i32 = arith.constant 0 : i32
    %c0_i32_0 = arith.constant 0 : i32
    %c0_i32_1 = arith.constant 0 : i32
    return %c0_i32, %c0_i32_0 : i32, i32
  }
  func.func @transform_12(%arg0: i32) -> (i32, i32) {
    %c0_i32 = arith.constant 0 : i32
    %c0_i32_0 = arith.constant 0 : i32
    return %arg0, %c0_i32 : i32, i32
  }
}

module attributes {stable_mosaic.version = 11 : i64} {
  func.func @residual_block_kernel(%arg0: i32, %arg1: memref<16x16xf32, #tpu.memory_space<vmem>>, %arg2: memref<1x16xf32, #tpu.memory_space<vmem>>, %arg3: memref<16x32xf32, #tpu.memory_space<vmem>>, %arg4: memref<16x32xf32, #tpu.memory_space<vmem>>, %arg5: memref<4x32xf32, #tpu.memory_space<vmem>>, %arg6: memref<1x32xf32, #tpu.memory_space<vmem>>, %arg7: memref<32x160xf32, #tpu.memory_space<vmem>>, %arg8: memref<128x32xf32, #tpu.memory_space<vmem>>, %arg9: memref<1x32xf32, #tpu.memory_space<vmem>>, %arg10: memref<16x32xf32, #tpu.memory_space<vmem>>, %arg11: memref<1x32xf32, #tpu.memory_space<vmem>>, %arg12: memref<32x16xf32, #tpu.memory_space<vmem>>, %arg13: memref<16x16xf32, #tpu.memory_space<vmem>>, %arg14: memref<8x16x32xf32, #tpu.memory_space<vmem>>, %arg15: memref<8x16x32xf32, #tpu.memory_space<vmem>>, %arg16: memref<8x16x32xf32, #tpu.memory_space<vmem>>, %arg17: memref<16x32xf32, #tpu.memory_space<vmem>>) attributes {dimension_semantics = [#tpu.dimension_semantics<parallel>], iteration_bounds = array<i64: 2>, scalar_prefetch = 0 : i64, scratch_operands = 4 : i64, tpu.core_type = #tpu.core_type<tc>, window_params = [{transform_indices = @transform_0, window_bounds = array<i64: 16, 16>}, {pipeline_mode = #tpu.pipeline_mode<synchronous>, transform_indices = @transform_1, window_bounds = array<i64: 1, 16>}, {pipeline_mode = #tpu.pipeline_mode<synchronous>, transform_indices = @transform_2, window_bounds = array<i64: 16, 32>}, {pipeline_mode = #tpu.pipeline_mode<synchronous>, transform_indices = @transform_3, window_bounds = array<i64: 16, 32>}, {pipeline_mode = #tpu.pipeline_mode<synchronous>, transform_indices = @transform_4, window_bounds = array<i64: 4, 32>}, {pipeline_mode = #tpu.pipeline_mode<synchronous>, transform_indices = @transform_5, window_bounds = array<i64: 1, 32>}, {pipeline_mode = #tpu.pipeline_mode<synchronous>, transform_indices = @transform_6, window_bounds = array<i64: 32, 160>}, {pipeline_mode = #tpu.pipeline_mode<synchronous>, transform_indices = @transform_7, window_bounds = array<i64: 128, 32>}, {pipeline_mode = #tpu.pipeline_mode<synchronous>, transform_indices = @transform_8, window_bounds = array<i64: 1, 32>}, {pipeline_mode = #tpu.pipeline_mode<synchronous>, transform_indices = @transform_9, window_bounds = array<i64: 16, 32>}, {pipeline_mode = #tpu.pipeline_mode<synchronous>, transform_indices = @transform_10, window_bounds = array<i64: 1, 32>}, {pipeline_mode = #tpu.pipeline_mode<synchronous>, transform_indices = @transform_11, window_bounds = array<i64: 32, 16>}, {transform_indices = @transform_12, window_bounds = array<i64: 16, 16>}]} {
    %c0 = arith.constant 0 : index
    %c0_0 = arith.constant 0 : index
    %0 = vector.load %arg1[%c0, %c0_0] : memref<16x16xf32, #tpu.memory_space<vmem>>, vector<16x16xf32>
    %1 = arith.mulf %0, %0 : vector<16x16xf32>
    %cst = arith.constant dense<0.000000e+00> : vector<16xf32>
    %2 = vector.multi_reduction <add>, %1, %cst [1] : vector<16x16xf32> to vector<16xf32>
    %3 = vector.shape_cast %2 : vector<16xf32> to vector<16x1xf32>
    %cst_1 = arith.constant 1.600000e+01 : f32
    %4 = vector.broadcast %cst_1 : f32 to vector<16x1xf32>
    %5 = arith.divf %3, %4 : vector<16x1xf32>
    %cst_2 = arith.constant 9.99999974E-6 : f32
    %6 = vector.broadcast %cst_2 : f32 to vector<16x1xf32>
    %7 = arith.addf %5, %6 : vector<16x1xf32>
    %8 = math.rsqrt %7 : vector<16x1xf32>
    %9 = vector.broadcast %8 : vector<16x1xf32> to vector<16x16xf32>
    %10 = arith.mulf %0, %9 : vector<16x16xf32>
    %c0_3 = arith.constant 0 : index
    %c0_4 = arith.constant 0 : index
    %11 = vector.load %arg2[%c0_3, %c0_4] : memref<1x16xf32, #tpu.memory_space<vmem>>, vector<1x16xf32>
    %12 = vector.broadcast %11 : vector<1x16xf32> to vector<16x16xf32>
    %13 = arith.mulf %10, %12 : vector<16x16xf32>
    %c0_5 = arith.constant 0 : index
    %c0_6 = arith.constant 0 : index
    %14 = vector.load %arg3[%c0_5, %c0_6] : memref<16x32xf32, #tpu.memory_space<vmem>>, vector<16x32xf32>
    %cst_7 = arith.constant dense<0.000000e+00> : vector<16x32xf32>
    %15 = tpu.matmul %13, %14, %cst_7 {dimension_numbers = #tpu.dot_dimension_numbers<[1], [0], [0], [1], [0, 0, 1, 1], [], []>} : vector<16x16xf32>, vector<16x32xf32>, vector<16x32xf32> -> vector<16x32xf32>
    %c0_8 = arith.constant 0 : index
    %c0_9 = arith.constant 0 : index
    %16 = vector.load %arg4[%c0_8, %c0_9] : memref<16x32xf32, #tpu.memory_space<vmem>>, vector<16x32xf32>
    %cst_10 = arith.constant dense<0.000000e+00> : vector<16x32xf32>
    %17 = tpu.matmul %13, %16, %cst_10 {dimension_numbers = #tpu.dot_dimension_numbers<[1], [0], [0], [1], [0, 0, 1, 1], [], []>} : vector<16x16xf32>, vector<16x32xf32>, vector<16x32xf32> -> vector<16x32xf32>
    %18 = tpu.iota {dimensions = array<i32: 0>} : vector<16x1xi32>
    %c8_i32 = arith.constant 8 : i32
    %c0_i32 = arith.constant 0 : i32
    %19 = arith.cmpi eq, %c8_i32, %c0_i32 : i32
    %c1_i32 = arith.constant 1 : i32
    %20 = arith.select %19, %c1_i32, %c8_i32 : i32
    %21 = vector.broadcast %20 : i32 to vector<16x1xi32>
    %22 = arith.remsi %18, %21 : vector<16x1xi32>
    %c0_i32_11 = arith.constant 0 : i32
    %23 = vector.broadcast %c0_i32_11 : i32 to vector<16x1xi32>
    %24 = arith.cmpi ne, %22, %23 : vector<16x1xi32>
    %c0_i32_12 = arith.constant 0 : i32
    %25 = vector.broadcast %c0_i32_12 : i32 to vector<16x1xi32>
    %26 = arith.cmpi slt, %22, %25 : vector<16x1xi32>
    %c0_i32_13 = arith.constant 0 : i32
    %27 = arith.cmpi slt, %20, %c0_i32_13 : i32
    %28 = vector.broadcast %27 : i1 to vector<16x1xi1>
    %29 = vector.broadcast %28 : vector<16x1xi1> to vector<16x1xi1>
    %30 = arith.xori %26, %29 : vector<16x1xi1>
    %31 = arith.andi %30, %24 : vector<16x1xi1>
    %32 = vector.broadcast %20 : i32 to vector<16x1xi32>
    %33 = arith.addi %22, %32 : vector<16x1xi32>
    %34 = arith.select %31, %33, %22 : vector<16x1xi1>, vector<16x1xi32>
    %c0_14 = arith.constant 0 : index
    %c0_15 = arith.constant 0 : index
    %35 = vector.load %arg5[%c0_14, %c0_15] : memref<4x32xf32, #tpu.memory_space<vmem>>, vector<4x32xf32>
    %c0_16 = arith.constant 0 : index
    %c0_17 = arith.constant 0 : index
    %36 = vector.load %arg6[%c0_16, %c0_17] : memref<1x32xf32, #tpu.memory_space<vmem>>, vector<1x32xf32>
    %c3_i32 = arith.constant 3 : i32
    %37 = tpu.dynamic_rotate %15 by %c3_i32 dim 0 : vector<16x32xf32>, i32 -> vector<16x32xf32>
    %c3_i32_18 = arith.constant 3 : i32
    %38 = vector.broadcast %c3_i32_18 : i32 to vector<16x1xi32>
    %39 = arith.cmpi sge, %34, %38 : vector<16x1xi32>
    %cst_19 = arith.constant 0.000000e+00 : f32
    %40 = vector.shape_cast %39 : vector<16x1xi1> to vector<16x1xi1>
    %41 = vector.broadcast %40 : vector<16x1xi1> to vector<16x32xi1>
    %42 = vector.broadcast %cst_19 : f32 to vector<16x32xf32>
    %43 = arith.select %41, %37, %42 : vector<16x32xi1>, vector<16x32xf32>
    %44 = vector.extract_strided_slice %35 {offsets = [0, 0], sizes = [1, 32], strides = [1, 1]} : vector<4x32xf32> to vector<1x32xf32>
    %45 = vector.broadcast %44 : vector<1x32xf32> to vector<16x32xf32>
    %46 = arith.mulf %43, %45 : vector<16x32xf32>
    %47 = vector.broadcast %36 : vector<1x32xf32> to vector<16x32xf32>
    %48 = arith.addf %47, %46 : vector<16x32xf32>
    %c2_i32 = arith.constant 2 : i32
    %49 = tpu.dynamic_rotate %15 by %c2_i32 dim 0 : vector<16x32xf32>, i32 -> vector<16x32xf32>
    %c2_i32_20 = arith.constant 2 : i32
    %50 = vector.broadcast %c2_i32_20 : i32 to vector<16x1xi32>
    %51 = arith.cmpi sge, %34, %50 : vector<16x1xi32>
    %cst_21 = arith.constant 0.000000e+00 : f32
    %52 = vector.shape_cast %51 : vector<16x1xi1> to vector<16x1xi1>
    %53 = vector.broadcast %52 : vector<16x1xi1> to vector<16x32xi1>
    %54 = vector.broadcast %cst_21 : f32 to vector<16x32xf32>
    %55 = arith.select %53, %49, %54 : vector<16x32xi1>, vector<16x32xf32>
    %56 = vector.extract_strided_slice %35 {offsets = [1, 0], sizes = [1, 32], strides = [1, 1]} : vector<4x32xf32> to vector<1x32xf32>
    %57 = vector.broadcast %56 : vector<1x32xf32> to vector<16x32xf32>
    %58 = arith.mulf %55, %57 : vector<16x32xf32>
    %59 = arith.addf %48, %58 : vector<16x32xf32>
    %c1_i32_22 = arith.constant 1 : i32
    %60 = tpu.dynamic_rotate %15 by %c1_i32_22 dim 0 : vector<16x32xf32>, i32 -> vector<16x32xf32>
    %c1_i32_23 = arith.constant 1 : i32
    %61 = vector.broadcast %c1_i32_23 : i32 to vector<16x1xi32>
    %62 = arith.cmpi sge, %34, %61 : vector<16x1xi32>
    %cst_24 = arith.constant 0.000000e+00 : f32
    %63 = vector.shape_cast %62 : vector<16x1xi1> to vector<16x1xi1>
    %64 = vector.broadcast %63 : vector<16x1xi1> to vector<16x32xi1>
    %65 = vector.broadcast %cst_24 : f32 to vector<16x32xf32>
    %66 = arith.select %64, %60, %65 : vector<16x32xi1>, vector<16x32xf32>
    %67 = vector.extract_strided_slice %35 {offsets = [2, 0], sizes = [1, 32], strides = [1, 1]} : vector<4x32xf32> to vector<1x32xf32>
    %68 = vector.broadcast %67 : vector<1x32xf32> to vector<16x32xf32>
    %69 = arith.mulf %66, %68 : vector<16x32xf32>
    %70 = arith.addf %59, %69 : vector<16x32xf32>
    %71 = vector.extract_strided_slice %35 {offsets = [3, 0], sizes = [1, 32], strides = [1, 1]} : vector<4x32xf32> to vector<1x32xf32>
    %72 = vector.broadcast %71 : vector<1x32xf32> to vector<16x32xf32>
    %73 = arith.mulf %15, %72 : vector<16x32xf32>
    %74 = arith.addf %70, %73 : vector<16x32xf32>
    %75 = arith.negf %74 : vector<16x32xf32>
    %76 = math.exp %75 : vector<16x32xf32>
    %cst_25 = arith.constant 1.000000e+00 : f32
    %77 = vector.broadcast %cst_25 : f32 to vector<16x32xf32>
    %78 = arith.addf %77, %76 : vector<16x32xf32>
    %79 = arith.divf %77, %78 : vector<16x32xf32>
    %80 = arith.mulf %74, %79 : vector<16x32xf32>
    %c0_26 = arith.constant 0 : index
    %c0_27 = arith.constant 0 : index
    %81 = vector.load %arg7[%c0_26, %c0_27] : memref<32x160xf32, #tpu.memory_space<vmem>>, vector<32x160xf32>
    %cst_28 = arith.constant dense<0.000000e+00> : vector<16x160xf32>
    %82 = tpu.matmul %80, %81, %cst_28 {dimension_numbers = #tpu.dot_dimension_numbers<[1], [0], [0], [1], [0, 0, 1, 1], [], []>} : vector<16x32xf32>, vector<32x160xf32>, vector<16x160xf32> -> vector<16x160xf32>
    %83 = vector.extract_strided_slice %82 {offsets = [0, 0], sizes = [16, 128], strides = [1, 1]} : vector<16x160xf32> to vector<16x128xf32>
    %84 = vector.extract_strided_slice %82 {offsets = [0, 128], sizes = [16, 16], strides = [1, 1]} : vector<16x160xf32> to vector<16x16xf32>
    %85 = vector.extract_strided_slice %82 {offsets = [0, 144], sizes = [16, 16], strides = [1, 1]} : vector<16x160xf32> to vector<16x16xf32>
    %c0_29 = arith.constant 0 : index
    %c0_30 = arith.constant 0 : index
    %86 = vector.load %arg8[%c0_29, %c0_30] : memref<128x32xf32, #tpu.memory_space<vmem>>, vector<128x32xf32>
    %cst_31 = arith.constant dense<0.000000e+00> : vector<16x32xf32>
    %87 = tpu.matmul %83, %86, %cst_31 {dimension_numbers = #tpu.dot_dimension_numbers<[1], [0], [0], [1], [0, 0, 1, 1], [], []>} : vector<16x128xf32>, vector<128x32xf32>, vector<16x32xf32> -> vector<16x32xf32>
    %c0_32 = arith.constant 0 : index
    %c0_33 = arith.constant 0 : index
    %88 = vector.load %arg9[%c0_32, %c0_33] : memref<1x32xf32, #tpu.memory_space<vmem>>, vector<1x32xf32>
    %89 = vector.broadcast %88 : vector<1x32xf32> to vector<16x32xf32>
    %90 = arith.addf %87, %89 : vector<16x32xf32>
    %cst_34 = arith.constant 0.000000e+00 : f32
    %91 = vector.broadcast %cst_34 : f32 to vector<16x32xf32>
    %92 = arith.maximumf %90, %91 : vector<16x32xf32>
    %93 = vector.broadcast %cst_34 : f32 to vector<16x32xf32>
    %94 = arith.subf %90, %93 : vector<16x32xf32>
    %95 = arith.cmpf one, %94, %94 : vector<16x32xf32>
    %96 = vector.broadcast %cst_34 : f32 to vector<16x32xf32>
    %97 = arith.addf %90, %96 : vector<16x32xf32>
    %98 = math.absf %94 : vector<16x32xf32>
    %cst_35 = arith.constant 0.000000e+00 : f32
    %99 = vector.broadcast %cst_35 : f32 to vector<16x32xf32>
    %100 = arith.subf %99, %98 : vector<16x32xf32>
    %101 = math.exp %100 : vector<16x32xf32>
    %102 = math.log1p %101 : vector<16x32xf32>
    %103 = arith.addf %92, %102 : vector<16x32xf32>
    %104 = arith.select %95, %97, %103 : vector<16x32xi1>, vector<16x32xf32>
    %c0_36 = arith.constant 0 : index
    %c0_37 = arith.constant 0 : index
    %105 = vector.load %arg10[%c0_36, %c0_37] : memref<16x32xf32, #tpu.memory_space<vmem>>, vector<16x32xf32>
    %106 = math.exp %105 : vector<16x32xf32>
    %cst_38 = arith.constant 0.000000e+00 : f32
    %107 = vector.broadcast %cst_38 : f32 to vector<16x32xf32>
    %108 = arith.subf %107, %106 : vector<16x32xf32>
    %109 = arith.mulf %104, %80 : vector<16x32xf32>
    %cst_39 = arith.constant 0.000000e+00 : f32
    %110 = vector.broadcast %cst_39 : f32 to vector<16x32xf32>
    %111 = vector.extract_strided_slice %104 {offsets = [0, 0], sizes = [8, 32], strides = [1, 1]} : vector<16x32xf32> to vector<8x32xf32>
    %112 = vector.extract_strided_slice %109 {offsets = [0, 0], sizes = [8, 32], strides = [1, 1]} : vector<16x32xf32> to vector<8x32xf32>
    %113 = vector.extract_strided_slice %84 {offsets = [0, 0], sizes = [8, 16], strides = [1, 1]} : vector<16x16xf32> to vector<8x16xf32>
    %114 = vector.extract_strided_slice %85 {offsets = [0, 0], sizes = [8, 16], strides = [1, 1]} : vector<16x16xf32> to vector<8x16xf32>
    %115 = vector.shape_cast %111 : vector<8x32xf32> to vector<8x1x32xf32>
    %116 = vector.shape_cast %108 : vector<16x32xf32> to vector<1x16x32xf32>
    %117 = vector.broadcast %115 : vector<8x1x32xf32> to vector<8x16x32xf32>
    %118 = vector.broadcast %116 : vector<1x16x32xf32> to vector<8x16x32xf32>
    %119 = arith.mulf %117, %118 : vector<8x16x32xf32>
    %120 = math.exp %119 : vector<8x16x32xf32>
    %c0_40 = arith.constant 0 : index
    %c0_41 = arith.constant 0 : index
    %c0_42 = arith.constant 0 : index
    %121 = vector.load %arg14[%c0_40, %c0_41, %c0_42] : memref<8x16x32xf32, #tpu.memory_space<vmem>>, vector<8x16x32xf32>
    tpu.vector_store %arg14[%c0_40, %c0_41, %c0_42], %120 {strides = array<i32>} : memref<8x16x32xf32, #tpu.memory_space<vmem>>, vector<8x16x32xf32>,
    %122 = vector.shape_cast %112 : vector<8x32xf32> to vector<8x1x32xf32>
    %123 = vector.shape_cast %113 : vector<8x16xf32> to vector<8x16x1xf32>
    %124 = vector.broadcast %122 : vector<8x1x32xf32> to vector<8x16x32xf32>
    %125 = vector.broadcast %123 : vector<8x16x1xf32> to vector<8x16x32xf32>
    %126 = arith.mulf %124, %125 : vector<8x16x32xf32>
    %c0_43 = arith.constant 0 : index
    %c0_44 = arith.constant 0 : index
    %c0_45 = arith.constant 0 : index
    %127 = vector.load %arg15[%c0_43, %c0_44, %c0_45] : memref<8x16x32xf32, #tpu.memory_space<vmem>>, vector<8x16x32xf32>
    tpu.vector_store %arg15[%c0_43, %c0_44, %c0_45], %126 {strides = array<i32>} : memref<8x16x32xf32, #tpu.memory_space<vmem>>, vector<8x16x32xf32>,
    %128 = vector.shape_cast %114 : vector<8x16xf32> to vector<8x16x1xf32>
    %129 = vector.shape_cast %128 : vector<8x16x1xf32> to vector<8x16x1xf32>
    %130 = vector.broadcast %129 : vector<8x16x1xf32> to vector<8x16x32xf32>
    %c0_46 = arith.constant 0 : index
    %c0_47 = arith.constant 0 : index
    %c0_48 = arith.constant 0 : index
    %131 = vector.load %arg16[%c0_46, %c0_47, %c0_48] : memref<8x16x32xf32, #tpu.memory_space<vmem>>, vector<8x16x32xf32>
    tpu.vector_store %arg16[%c0_46, %c0_47, %c0_48], %130 {strides = array<i32>} : memref<8x16x32xf32, #tpu.memory_space<vmem>>, vector<8x16x32xf32>,
    %c0_i32_49 = arith.constant 0 : i32
    %c8_i32_50 = arith.constant 8 : i32
    %132 = arith.muli %c0_i32_49, %c8_i32_50 : i32
    %c0_i32_51 = arith.constant 0 : i32
    %133 = arith.addi %132, %c0_i32_51 : i32
    %134 = arith.index_cast %133 : i32 to index
    %c0_52 = arith.constant 0 : index
    %c0_53 = arith.constant 0 : index
    %135 = vector.load %arg14[%134, %c0_52, %c0_53] : memref<8x16x32xf32, #tpu.memory_space<vmem>>, vector<1x16x32xf32>
    %136 = vector.shape_cast %135 : vector<1x16x32xf32> to vector<16x32xf32>
    %137 = arith.mulf %136, %110 : vector<16x32xf32>
    %138 = arith.index_cast %133 : i32 to index
    %c0_54 = arith.constant 0 : index
    %c0_55 = arith.constant 0 : index
    %139 = vector.load %arg15[%138, %c0_54, %c0_55] : memref<8x16x32xf32, #tpu.memory_space<vmem>>, vector<1x16x32xf32>
    %140 = vector.shape_cast %139 : vector<1x16x32xf32> to vector<16x32xf32>
    %141 = arith.addf %137, %140 : vector<16x32xf32>
    %142 = arith.index_cast %133 : i32 to index
    %c0_56 = arith.constant 0 : index
    %c0_57 = arith.constant 0 : index
    %143 = vector.load %arg16[%142, %c0_56, %c0_57] : memref<8x16x32xf32, #tpu.memory_space<vmem>>, vector<1x16x32xf32>
    %144 = vector.shape_cast %143 : vector<1x16x32xf32> to vector<16x32xf32>
    %145 = arith.mulf %141, %144 : vector<16x32xf32>
    %cst_58 = arith.constant dense<0.000000e+00> : vector<32xf32>
    %146 = vector.multi_reduction <add>, %145, %cst_58 [0] : vector<16x32xf32> to vector<32xf32>
    %147 = vector.shape_cast %146 : vector<32xf32> to vector<1x32xf32>
    %c1_i32_59 = arith.constant 1 : i32
    %148 = arith.addi %132, %c1_i32_59 : i32
    %149 = arith.index_cast %148 : i32 to index
    %c0_60 = arith.constant 0 : index
    %c0_61 = arith.constant 0 : index
    %150 = vector.load %arg14[%149, %c0_60, %c0_61] : memref<8x16x32xf32, #tpu.memory_space<vmem>>, vector<1x16x32xf32>
    %151 = vector.shape_cast %150 : vector<1x16x32xf32> to vector<16x32xf32>
    %152 = arith.mulf %151, %141 : vector<16x32xf32>
    %153 = arith.index_cast %148 : i32 to index
    %c0_62 = arith.constant 0 : index
    %c0_63 = arith.constant 0 : index
    %154 = vector.load %arg15[%153, %c0_62, %c0_63] : memref<8x16x32xf32, #tpu.memory_space<vmem>>, vector<1x16x32xf32>
    %155 = vector.shape_cast %154 : vector<1x16x32xf32> to vector<16x32xf32>
    %156 = arith.addf %152, %155 : vector<16x32xf32>
    %157 = arith.index_cast %148 : i32 to index
    %c0_64 = arith.constant 0 : index
    %c0_65 = arith.constant 0 : index
    %158 = vector.load %arg16[%157, %c0_64, %c0_65] : memref<8x16x32xf32, #tpu.memory_space<vmem>>, vector<1x16x32xf32>
    %159 = vector.shape_cast %158 : vector<1x16x32xf32> to vector<16x32xf32>
    %160 = arith.mulf %156, %159 : vector<16x32xf32>
    %cst_66 = arith.constant dense<0.000000e+00> : vector<32xf32>
    %161 = vector.multi_reduction <add>, %160, %cst_66 [0] : vector<16x32xf32> to vector<32xf32>
    %162 = vector.shape_cast %161 : vector<32xf32> to vector<1x32xf32>
    %c2_i32_67 = arith.constant 2 : i32
    %163 = arith.addi %132, %c2_i32_67 : i32
    %164 = arith.index_cast %163 : i32 to index
    %c0_68 = arith.constant 0 : index
    %c0_69 = arith.constant 0 : index
    %165 = vector.load %arg14[%164, %c0_68, %c0_69] : memref<8x16x32xf32, #tpu.memory_space<vmem>>, vector<1x16x32xf32>
    %166 = vector.shape_cast %165 : vector<1x16x32xf32> to vector<16x32xf32>
    %167 = arith.mulf %166, %156 : vector<16x32xf32>
    %168 = arith.index_cast %163 : i32 to index
    %c0_70 = arith.constant 0 : index
    %c0_71 = arith.constant 0 : index
    %169 = vector.load %arg15[%168, %c0_70, %c0_71] : memref<8x16x32xf32, #tpu.memory_space<vmem>>, vector<1x16x32xf32>
    %170 = vector.shape_cast %169 : vector<1x16x32xf32> to vector<16x32xf32>
    %171 = arith.addf %167, %170 : vector<16x32xf32>
    %172 = arith.index_cast %163 : i32 to index
    %c0_72 = arith.constant 0 : index
    %c0_73 = arith.constant 0 : index
    %173 = vector.load %arg16[%172, %c0_72, %c0_73] : memref<8x16x32xf32, #tpu.memory_space<vmem>>, vector<1x16x32xf32>
    %174 = vector.shape_cast %173 : vector<1x16x32xf32> to vector<16x32xf32>
    %175 = arith.mulf %171, %174 : vector<16x32xf32>
    %cst_74 = arith.constant dense<0.000000e+00> : vector<32xf32>
    %176 = vector.multi_reduction <add>, %175, %cst_74 [0] : vector<16x32xf32> to vector<32xf32>
    %177 = vector.shape_cast %176 : vector<32xf32> to vector<1x32xf32>
    %c3_i32_75 = arith.constant 3 : i32
    %178 = arith.addi %132, %c3_i32_75 : i32
    %179 = arith.index_cast %178 : i32 to index
    %c0_76 = arith.constant 0 : index
    %c0_77 = arith.constant 0 : index
    %180 = vector.load %arg14[%179, %c0_76, %c0_77] : memref<8x16x32xf32, #tpu.memory_space<vmem>>, vector<1x16x32xf32>
    %181 = vector.shape_cast %180 : vector<1x16x32xf32> to vector<16x32xf32>
    %182 = arith.mulf %181, %171 : vector<16x32xf32>
    %183 = arith.index_cast %178 : i32 to index
    %c0_78 = arith.constant 0 : index
    %c0_79 = arith.constant 0 : index
    %184 = vector.load %arg15[%183, %c0_78, %c0_79] : memref<8x16x32xf32, #tpu.memory_space<vmem>>, vector<1x16x32xf32>
    %185 = vector.shape_cast %184 : vector<1x16x32xf32> to vector<16x32xf32>
    %186 = arith.addf %182, %185 : vector<16x32xf32>
    %187 = arith.index_cast %178 : i32 to index
    %c0_80 = arith.constant 0 : index
    %c0_81 = arith.constant 0 : index
    %188 = vector.load %arg16[%187, %c0_80, %c0_81] : memref<8x16x32xf32, #tpu.memory_space<vmem>>, vector<1x16x32xf32>
    %189 = vector.shape_cast %188 : vector<1x16x32xf32> to vector<16x32xf32>
    %190 = arith.mulf %186, %189 : vector<16x32xf32>
    %cst_82 = arith.constant dense<0.000000e+00> : vector<32xf32>
    %191 = vector.multi_reduction <add>, %190, %cst_82 [0] : vector<16x32xf32> to vector<32xf32>
    %192 = vector.shape_cast %191 : vector<32xf32> to vector<1x32xf32>
    %c4_i32 = arith.constant 4 : i32
    %193 = arith.addi %132, %c4_i32 : i32
    %194 = arith.index_cast %193 : i32 to index
    %c0_83 = arith.constant 0 : index
    %c0_84 = arith.constant 0 : index
    %195 = vector.load %arg14[%194, %c0_83, %c0_84] : memref<8x16x32xf32, #tpu.memory_space<vmem>>, vector<1x16x32xf32>
    %196 = vector.shape_cast %195 : vector<1x16x32xf32> to vector<16x32xf32>
    %197 = arith.mulf %196, %186 : vector<16x32xf32>
    %198 = arith.index_cast %193 : i32 to index
    %c0_85 = arith.constant 0 : index
    %c0_86 = arith.constant 0 : index
    %199 = vector.load %arg15[%198, %c0_85, %c0_86] : memref<8x16x32xf32, #tpu.memory_space<vmem>>, vector<1x16x32xf32>
    %200 = vector.shape_cast %199 : vector<1x16x32xf32> to vector<16x32xf32>
    %201 = arith.addf %197, %200 : vector<16x32xf32>
    %202 = arith.index_cast %193 : i32 to index
    %c0_87 = arith.constant 0 : index
    %c0_88 = arith.constant 0 : index
    %203 = vector.load %arg16[%202, %c0_87, %c0_88] : memref<8x16x32xf32, #tpu.memory_space<vmem>>, vector<1x16x32xf32>
    %204 = vector.shape_cast %203 : vector<1x16x32xf32> to vector<16x32xf32>
    %205 = arith.mulf %201, %204 : vector<16x32xf32>
    %cst_89 = arith.constant dense<0.000000e+00> : vector<32xf32>
    %206 = vector.multi_reduction <add>, %205, %cst_89 [0] : vector<16x32xf32> to vector<32xf32>
    %207 = vector.shape_cast %206 : vector<32xf32> to vector<1x32xf32>
    %c5_i32 = arith.constant 5 : i32
    %208 = arith.addi %132, %c5_i32 : i32
    %209 = arith.index_cast %208 : i32 to index
    %c0_90 = arith.constant 0 : index
    %c0_91 = arith.constant 0 : index
    %210 = vector.load %arg14[%209, %c0_90, %c0_91] : memref<8x16x32xf32, #tpu.memory_space<vmem>>, vector<1x16x32xf32>
    %211 = vector.shape_cast %210 : vector<1x16x32xf32> to vector<16x32xf32>
    %212 = arith.mulf %211, %201 : vector<16x32xf32>
    %213 = arith.index_cast %208 : i32 to index
    %c0_92 = arith.constant 0 : index
    %c0_93 = arith.constant 0 : index
    %214 = vector.load %arg15[%213, %c0_92, %c0_93] : memref<8x16x32xf32, #tpu.memory_space<vmem>>, vector<1x16x32xf32>
    %215 = vector.shape_cast %214 : vector<1x16x32xf32> to vector<16x32xf32>
    %216 = arith.addf %212, %215 : vector<16x32xf32>
    %217 = arith.index_cast %208 : i32 to index
    %c0_94 = arith.constant 0 : index
    %c0_95 = arith.constant 0 : index
    %218 = vector.load %arg16[%217, %c0_94, %c0_95] : memref<8x16x32xf32, #tpu.memory_space<vmem>>, vector<1x16x32xf32>
    %219 = vector.shape_cast %218 : vector<1x16x32xf32> to vector<16x32xf32>
    %220 = arith.mulf %216, %219 : vector<16x32xf32>
    %cst_96 = arith.constant dense<0.000000e+00> : vector<32xf32>
    %221 = vector.multi_reduction <add>, %220, %cst_96 [0] : vector<16x32xf32> to vector<32xf32>
    %222 = vector.shape_cast %221 : vector<32xf32> to vector<1x32xf32>
    %c6_i32 = arith.constant 6 : i32
    %223 = arith.addi %132, %c6_i32 : i32
    %224 = arith.index_cast %223 : i32 to index
    %c0_97 = arith.constant 0 : index
    %c0_98 = arith.constant 0 : index
    %225 = vector.load %arg14[%224, %c0_97, %c0_98] : memref<8x16x32xf32, #tpu.memory_space<vmem>>, vector<1x16x32xf32>
    %226 = vector.shape_cast %225 : vector<1x16x32xf32> to vector<16x32xf32>
    %227 = arith.mulf %226, %216 : vector<16x32xf32>
    %228 = arith.index_cast %223 : i32 to index
    %c0_99 = arith.constant 0 : index
    %c0_100 = arith.constant 0 : index
    %229 = vector.load %arg15[%228, %c0_99, %c0_100] : memref<8x16x32xf32, #tpu.memory_space<vmem>>, vector<1x16x32xf32>
    %230 = vector.shape_cast %229 : vector<1x16x32xf32> to vector<16x32xf32>
    %231 = arith.addf %227, %230 : vector<16x32xf32>
    %232 = arith.index_cast %223 : i32 to index
    %c0_101 = arith.constant 0 : index
    %c0_102 = arith.constant 0 : index
    %233 = vector.load %arg16[%232, %c0_101, %c0_102] : memref<8x16x32xf32, #tpu.memory_space<vmem>>, vector<1x16x32xf32>
    %234 = vector.shape_cast %233 : vector<1x16x32xf32> to vector<16x32xf32>
    %235 = arith.mulf %231, %234 : vector<16x32xf32>
    %cst_103 = arith.constant dense<0.000000e+00> : vector<32xf32>
    %236 = vector.multi_reduction <add>, %235, %cst_103 [0] : vector<16x32xf32> to vector<32xf32>
    %237 = vector.shape_cast %236 : vector<32xf32> to vector<1x32xf32>
    %c7_i32 = arith.constant 7 : i32
    %238 = arith.addi %132, %c7_i32 : i32
    %239 = arith.index_cast %238 : i32 to index
    %c0_104 = arith.constant 0 : index
    %c0_105 = arith.constant 0 : index
    %240 = vector.load %arg14[%239, %c0_104, %c0_105] : memref<8x16x32xf32, #tpu.memory_space<vmem>>, vector<1x16x32xf32>
    %241 = vector.shape_cast %240 : vector<1x16x32xf32> to vector<16x32xf32>
    %242 = arith.mulf %241, %231 : vector<16x32xf32>
    %243 = arith.index_cast %238 : i32 to index
    %c0_106 = arith.constant 0 : index
    %c0_107 = arith.constant 0 : index
    %244 = vector.load %arg15[%243, %c0_106, %c0_107] : memref<8x16x32xf32, #tpu.memory_space<vmem>>, vector<1x16x32xf32>
    %245 = vector.shape_cast %244 : vector<1x16x32xf32> to vector<16x32xf32>
    %246 = arith.addf %242, %245 : vector<16x32xf32>
    %247 = arith.index_cast %238 : i32 to index
    %c0_108 = arith.constant 0 : index
    %c0_109 = arith.constant 0 : index
    %248 = vector.load %arg16[%247, %c0_108, %c0_109] : memref<8x16x32xf32, #tpu.memory_space<vmem>>, vector<1x16x32xf32>
    %249 = vector.shape_cast %248 : vector<1x16x32xf32> to vector<16x32xf32>
    %250 = arith.mulf %246, %249 : vector<16x32xf32>
    %cst_110 = arith.constant dense<0.000000e+00> : vector<32xf32>
    %251 = vector.multi_reduction <add>, %250, %cst_110 [0] : vector<16x32xf32> to vector<32xf32>
    %252 = vector.shape_cast %251 : vector<32xf32> to vector<1x32xf32>
    %c0_i32_111 = arith.constant 0 : i32
    %253 = arith.addi %c0_i32_111, %132 : i32
    %254 = tpu.assume_multiple %253, 8 : i32
    %255 = tpu.concatenate %147, %162, %177, %192, %207, %222, %237, %252 in 0 : vector<1x32xf32>, vector<1x32xf32>, vector<1x32xf32>, vector<1x32xf32>, vector<1x32xf32>, vector<1x32xf32>, vector<1x32xf32>, vector<1x32xf32> -> vector<8x32xf32>
    %256 = arith.index_cast %254 : i32 to index
    %c0_112 = arith.constant 0 : index
    %257 = vector.load %arg17[%256, %c0_112] : memref<16x32xf32, #tpu.memory_space<vmem>>, vector<8x32xf32>
    tpu.vector_store %arg17[%256, %c0_112], %255 {strides = array<i32>} : memref<16x32xf32, #tpu.memory_space<vmem>>, vector<8x32xf32>,
    %c1_i32_113 = arith.constant 1 : i32
    %cst_114 = arith.constant 0.000000e+00 : f32
    %258 = vector.broadcast %cst_114 : f32 to vector<16x32xf32>
    %259 = vector.extract_strided_slice %104 {offsets = [8, 0], sizes = [8, 32], strides = [1, 1]} : vector<16x32xf32> to vector<8x32xf32>
    %260 = vector.extract_strided_slice %109 {offsets = [8, 0], sizes = [8, 32], strides = [1, 1]} : vector<16x32xf32> to vector<8x32xf32>
    %261 = vector.extract_strided_slice %84 {offsets = [8, 0], sizes = [8, 16], strides = [1, 1]} : vector<16x16xf32> to vector<8x16xf32>
    %262 = vector.extract_strided_slice %85 {offsets = [8, 0], sizes = [8, 16], strides = [1, 1]} : vector<16x16xf32> to vector<8x16xf32>
    %263 = vector.shape_cast %259 : vector<8x32xf32> to vector<8x1x32xf32>
    %264 = vector.shape_cast %108 : vector<16x32xf32> to vector<1x16x32xf32>
    %265 = vector.broadcast %263 : vector<8x1x32xf32> to vector<8x16x32xf32>
    %266 = vector.broadcast %264 : vector<1x16x32xf32> to vector<8x16x32xf32>
    %267 = arith.mulf %265, %266 : vector<8x16x32xf32>
    %268 = math.exp %267 : vector<8x16x32xf32>
    %c0_115 = arith.constant 0 : index
    %c0_116 = arith.constant 0 : index
    %c0_117 = arith.constant 0 : index
    %269 = vector.load %arg14[%c0_115, %c0_116, %c0_117] : memref<8x16x32xf32, #tpu.memory_space<vmem>>, vector<8x16x32xf32>
    tpu.vector_store %arg14[%c0_115, %c0_116, %c0_117], %268 {strides = array<i32>} : memref<8x16x32xf32, #tpu.memory_space<vmem>>, vector<8x16x32xf32>,
    %270 = vector.shape_cast %260 : vector<8x32xf32> to vector<8x1x32xf32>
    %271 = vector.shape_cast %261 : vector<8x16xf32> to vector<8x16x1xf32>
    %272 = vector.broadcast %270 : vector<8x1x32xf32> to vector<8x16x32xf32>
    %273 = vector.broadcast %271 : vector<8x16x1xf32> to vector<8x16x32xf32>
    %274 = arith.mulf %272, %273 : vector<8x16x32xf32>
    %c0_118 = arith.constant 0 : index
    %c0_119 = arith.constant 0 : index
    %c0_120 = arith.constant 0 : index
    %275 = vector.load %arg15[%c0_118, %c0_119, %c0_120] : memref<8x16x32xf32, #tpu.memory_space<vmem>>, vector<8x16x32xf32>
    tpu.vector_store %arg15[%c0_118, %c0_119, %c0_120], %274 {strides = array<i32>} : memref<8x16x32xf32, #tpu.memory_space<vmem>>, vector<8x16x32xf32>,
    %276 = vector.shape_cast %262 : vector<8x16xf32> to vector<8x16x1xf32>
    %277 = vector.shape_cast %276 : vector<8x16x1xf32> to vector<8x16x1xf32>
    %278 = vector.broadcast %277 : vector<8x16x1xf32> to vector<8x16x32xf32>
    %c0_121 = arith.constant 0 : index
    %c0_122 = arith.constant 0 : index
    %c0_123 = arith.constant 0 : index
    %279 = vector.load %arg16[%c0_121, %c0_122, %c0_123] : memref<8x16x32xf32, #tpu.memory_space<vmem>>, vector<8x16x32xf32>
    tpu.vector_store %arg16[%c0_121, %c0_122, %c0_123], %278 {strides = array<i32>} : memref<8x16x32xf32, #tpu.memory_space<vmem>>, vector<8x16x32xf32>,
    %c0_i32_124 = arith.constant 0 : i32
    %c8_i32_125 = arith.constant 8 : i32
    %280 = arith.muli %c0_i32_124, %c8_i32_125 : i32
    %c0_i32_126 = arith.constant 0 : i32
    %281 = arith.addi %280, %c0_i32_126 : i32
    %282 = arith.index_cast %281 : i32 to index
    %c0_127 = arith.constant 0 : index
    %c0_128 = arith.constant 0 : index
    %283 = vector.load %arg14[%282, %c0_127, %c0_128] : memref<8x16x32xf32, #tpu.memory_space<vmem>>, vector<1x16x32xf32>
    %284 = vector.shape_cast %283 : vector<1x16x32xf32> to vector<16x32xf32>
    %285 = arith.mulf %284, %258 : vector<16x32xf32>
    %286 = arith.index_cast %281 : i32 to index
    %c0_129 = arith.constant 0 : index
    %c0_130 = arith.constant 0 : index
    %287 = vector.load %arg15[%286, %c0_129, %c0_130] : memref<8x16x32xf32, #tpu.memory_space<vmem>>, vector<1x16x32xf32>
    %288 = vector.shape_cast %287 : vector<1x16x32xf32> to vector<16x32xf32>
    %289 = arith.addf %285, %288 : vector<16x32xf32>
    %290 = arith.index_cast %281 : i32 to index
    %c0_131 = arith.constant 0 : index
    %c0_132 = arith.constant 0 : index
    %291 = vector.load %arg16[%290, %c0_131, %c0_132] : memref<8x16x32xf32, #tpu.memory_space<vmem>>, vector<1x16x32xf32>
    %292 = vector.shape_cast %291 : vector<1x16x32xf32> to vector<16x32xf32>
    %293 = arith.mulf %289, %292 : vector<16x32xf32>
    %cst_133 = arith.constant dense<0.000000e+00> : vector<32xf32>
    %294 = vector.multi_reduction <add>, %293, %cst_133 [0] : vector<16x32xf32> to vector<32xf32>
    %295 = vector.shape_cast %294 : vector<32xf32> to vector<1x32xf32>
    %c1_i32_134 = arith.constant 1 : i32
    %296 = arith.addi %280, %c1_i32_134 : i32
    %297 = arith.index_cast %296 : i32 to index
    %c0_135 = arith.constant 0 : index
    %c0_136 = arith.constant 0 : index
    %298 = vector.load %arg14[%297, %c0_135, %c0_136] : memref<8x16x32xf32, #tpu.memory_space<vmem>>, vector<1x16x32xf32>
    %299 = vector.shape_cast %298 : vector<1x16x32xf32> to vector<16x32xf32>
    %300 = arith.mulf %299, %289 : vector<16x32xf32>
    %301 = arith.index_cast %296 : i32 to index
    %c0_137 = arith.constant 0 : index
    %c0_138 = arith.constant 0 : index
    %302 = vector.load %arg15[%301, %c0_137, %c0_138] : memref<8x16x32xf32, #tpu.memory_space<vmem>>, vector<1x16x32xf32>
    %303 = vector.shape_cast %302 : vector<1x16x32xf32> to vector<16x32xf32>
    %304 = arith.addf %300, %303 : vector<16x32xf32>
    %305 = arith.index_cast %296 : i32 to index
    %c0_139 = arith.constant 0 : index
    %c0_140 = arith.constant 0 : index
    %306 = vector.load %arg16[%305, %c0_139, %c0_140] : memref<8x16x32xf32, #tpu.memory_space<vmem>>, vector<1x16x32xf32>
    %307 = vector.shape_cast %306 : vector<1x16x32xf32> to vector<16x32xf32>
    %308 = arith.mulf %304, %307 : vector<16x32xf32>
    %cst_141 = arith.constant dense<0.000000e+00> : vector<32xf32>
    %309 = vector.multi_reduction <add>, %308, %cst_141 [0] : vector<16x32xf32> to vector<32xf32>
    %310 = vector.shape_cast %309 : vector<32xf32> to vector<1x32xf32>
    %c2_i32_142 = arith.constant 2 : i32
    %311 = arith.addi %280, %c2_i32_142 : i32
    %312 = arith.index_cast %311 : i32 to index
    %c0_143 = arith.constant 0 : index
    %c0_144 = arith.constant 0 : index
    %313 = vector.load %arg14[%312, %c0_143, %c0_144] : memref<8x16x32xf32, #tpu.memory_space<vmem>>, vector<1x16x32xf32>
    %314 = vector.shape_cast %313 : vector<1x16x32xf32> to vector<16x32xf32>
    %315 = arith.mulf %314, %304 : vector<16x32xf32>
    %316 = arith.index_cast %311 : i32 to index
    %c0_145 = arith.constant 0 : index
    %c0_146 = arith.constant 0 : index
    %317 = vector.load %arg15[%316, %c0_145, %c0_146] : memref<8x16x32xf32, #tpu.memory_space<vmem>>, vector<1x16x32xf32>
    %318 = vector.shape_cast %317 : vector<1x16x32xf32> to vector<16x32xf32>
    %319 = arith.addf %315, %318 : vector<16x32xf32>
    %320 = arith.index_cast %311 : i32 to index
    %c0_147 = arith.constant 0 : index
    %c0_148 = arith.constant 0 : index
    %321 = vector.load %arg16[%320, %c0_147, %c0_148] : memref<8x16x32xf32, #tpu.memory_space<vmem>>, vector<1x16x32xf32>
    %322 = vector.shape_cast %321 : vector<1x16x32xf32> to vector<16x32xf32>
    %323 = arith.mulf %319, %322 : vector<16x32xf32>
    %cst_149 = arith.constant dense<0.000000e+00> : vector<32xf32>
    %324 = vector.multi_reduction <add>, %323, %cst_149 [0] : vector<16x32xf32> to vector<32xf32>
    %325 = vector.shape_cast %324 : vector<32xf32> to vector<1x32xf32>
    %c3_i32_150 = arith.constant 3 : i32
    %326 = arith.addi %280, %c3_i32_150 : i32
    %327 = arith.index_cast %326 : i32 to index
    %c0_151 = arith.constant 0 : index
    %c0_152 = arith.constant 0 : index
    %328 = vector.load %arg14[%327, %c0_151, %c0_152] : memref<8x16x32xf32, #tpu.memory_space<vmem>>, vector<1x16x32xf32>
    %329 = vector.shape_cast %328 : vector<1x16x32xf32> to vector<16x32xf32>
    %330 = arith.mulf %329, %319 : vector<16x32xf32>
    %331 = arith.index_cast %326 : i32 to index
    %c0_153 = arith.constant 0 : index
    %c0_154 = arith.constant 0 : index
    %332 = vector.load %arg15[%331, %c0_153, %c0_154] : memref<8x16x32xf32, #tpu.memory_space<vmem>>, vector<1x16x32xf32>
    %333 = vector.shape_cast %332 : vector<1x16x32xf32> to vector<16x32xf32>
    %334 = arith.addf %330, %333 : vector<16x32xf32>
    %335 = arith.index_cast %326 : i32 to index
    %c0_155 = arith.constant 0 : index
    %c0_156 = arith.constant 0 : index
    %336 = vector.load %arg16[%335, %c0_155, %c0_156] : memref<8x16x32xf32, #tpu.memory_space<vmem>>, vector<1x16x32xf32>
    %337 = vector.shape_cast %336 : vector<1x16x32xf32> to vector<16x32xf32>
    %338 = arith.mulf %334, %337 : vector<16x32xf32>
    %cst_157 = arith.constant dense<0.000000e+00> : vector<32xf32>
    %339 = vector.multi_reduction <add>, %338, %cst_157 [0] : vector<16x32xf32> to vector<32xf32>
    %340 = vector.shape_cast %339 : vector<32xf32> to vector<1x32xf32>
    %c4_i32_158 = arith.constant 4 : i32
    %341 = arith.addi %280, %c4_i32_158 : i32
    %342 = arith.index_cast %341 : i32 to index
    %c0_159 = arith.constant 0 : index
    %c0_160 = arith.constant 0 : index
    %343 = vector.load %arg14[%342, %c0_159, %c0_160] : memref<8x16x32xf32, #tpu.memory_space<vmem>>, vector<1x16x32xf32>
    %344 = vector.shape_cast %343 : vector<1x16x32xf32> to vector<16x32xf32>
    %345 = arith.mulf %344, %334 : vector<16x32xf32>
    %346 = arith.index_cast %341 : i32 to index
    %c0_161 = arith.constant 0 : index
    %c0_162 = arith.constant 0 : index
    %347 = vector.load %arg15[%346, %c0_161, %c0_162] : memref<8x16x32xf32, #tpu.memory_space<vmem>>, vector<1x16x32xf32>
    %348 = vector.shape_cast %347 : vector<1x16x32xf32> to vector<16x32xf32>
    %349 = arith.addf %345, %348 : vector<16x32xf32>
    %350 = arith.index_cast %341 : i32 to index
    %c0_163 = arith.constant 0 : index
    %c0_164 = arith.constant 0 : index
    %351 = vector.load %arg16[%350, %c0_163, %c0_164] : memref<8x16x32xf32, #tpu.memory_space<vmem>>, vector<1x16x32xf32>
    %352 = vector.shape_cast %351 : vector<1x16x32xf32> to vector<16x32xf32>
    %353 = arith.mulf %349, %352 : vector<16x32xf32>
    %cst_165 = arith.constant dense<0.000000e+00> : vector<32xf32>
    %354 = vector.multi_reduction <add>, %353, %cst_165 [0] : vector<16x32xf32> to vector<32xf32>
    %355 = vector.shape_cast %354 : vector<32xf32> to vector<1x32xf32>
    %c5_i32_166 = arith.constant 5 : i32
    %356 = arith.addi %280, %c5_i32_166 : i32
    %357 = arith.index_cast %356 : i32 to index
    %c0_167 = arith.constant 0 : index
    %c0_168 = arith.constant 0 : index
    %358 = vector.load %arg14[%357, %c0_167, %c0_168] : memref<8x16x32xf32, #tpu.memory_space<vmem>>, vector<1x16x32xf32>
    %359 = vector.shape_cast %358 : vector<1x16x32xf32> to vector<16x32xf32>
    %360 = arith.mulf %359, %349 : vector<16x32xf32>
    %361 = arith.index_cast %356 : i32 to index
    %c0_169 = arith.constant 0 : index
    %c0_170 = arith.constant 0 : index
    %362 = vector.load %arg15[%361, %c0_169, %c0_170] : memref<8x16x32xf32, #tpu.memory_space<vmem>>, vector<1x16x32xf32>
    %363 = vector.shape_cast %362 : vector<1x16x32xf32> to vector<16x32xf32>
    %364 = arith.addf %360, %363 : vector<16x32xf32>
    %365 = arith.index_cast %356 : i32 to index
    %c0_171 = arith.constant 0 : index
    %c0_172 = arith.constant 0 : index
    %366 = vector.load %arg16[%365, %c0_171, %c0_172] : memref<8x16x32xf32, #tpu.memory_space<vmem>>, vector<1x16x32xf32>
    %367 = vector.shape_cast %366 : vector<1x16x32xf32> to vector<16x32xf32>
    %368 = arith.mulf %364, %367 : vector<16x32xf32>
    %cst_173 = arith.constant dense<0.000000e+00> : vector<32xf32>
    %369 = vector.multi_reduction <add>, %368, %cst_173 [0] : vector<16x32xf32> to vector<32xf32>
    %370 = vector.shape_cast %369 : vector<32xf32> to vector<1x32xf32>
    %c6_i32_174 = arith.constant 6 : i32
    %371 = arith.addi %280, %c6_i32_174 : i32
    %372 = arith.index_cast %371 : i32 to index
    %c0_175 = arith.constant 0 : index
    %c0_176 = arith.constant 0 : index
    %373 = vector.load %arg14[%372, %c0_175, %c0_176] : memref<8x16x32xf32, #tpu.memory_space<vmem>>, vector<1x16x32xf32>
    %374 = vector.shape_cast %373 : vector<1x16x32xf32> to vector<16x32xf32>
    %375 = arith.mulf %374, %364 : vector<16x32xf32>
    %376 = arith.index_cast %371 : i32 to index
    %c0_177 = arith.constant 0 : index
    %c0_178 = arith.constant 0 : index
    %377 = vector.load %arg15[%376, %c0_177, %c0_178] : memref<8x16x32xf32, #tpu.memory_space<vmem>>, vector<1x16x32xf32>
    %378 = vector.shape_cast %377 : vector<1x16x32xf32> to vector<16x32xf32>
    %379 = arith.addf %375, %378 : vector<16x32xf32>
    %380 = arith.index_cast %371 : i32 to index
    %c0_179 = arith.constant 0 : index
    %c0_180 = arith.constant 0 : index
    %381 = vector.load %arg16[%380, %c0_179, %c0_180] : memref<8x16x32xf32, #tpu.memory_space<vmem>>, vector<1x16x32xf32>
    %382 = vector.shape_cast %381 : vector<1x16x32xf32> to vector<16x32xf32>
    %383 = arith.mulf %379, %382 : vector<16x32xf32>
    %cst_181 = arith.constant dense<0.000000e+00> : vector<32xf32>
    %384 = vector.multi_reduction <add>, %383, %cst_181 [0] : vector<16x32xf32> to vector<32xf32>
    %385 = vector.shape_cast %384 : vector<32xf32> to vector<1x32xf32>
    %c7_i32_182 = arith.constant 7 : i32
    %386 = arith.addi %280, %c7_i32_182 : i32
    %387 = arith.index_cast %386 : i32 to index
    %c0_183 = arith.constant 0 : index
    %c0_184 = arith.constant 0 : index
    %388 = vector.load %arg14[%387, %c0_183, %c0_184] : memref<8x16x32xf32, #tpu.memory_space<vmem>>, vector<1x16x32xf32>
    %389 = vector.shape_cast %388 : vector<1x16x32xf32> to vector<16x32xf32>
    %390 = arith.mulf %389, %379 : vector<16x32xf32>
    %391 = arith.index_cast %386 : i32 to index
    %c0_185 = arith.constant 0 : index
    %c0_186 = arith.constant 0 : index
    %392 = vector.load %arg15[%391, %c0_185, %c0_186] : memref<8x16x32xf32, #tpu.memory_space<vmem>>, vector<1x16x32xf32>
    %393 = vector.shape_cast %392 : vector<1x16x32xf32> to vector<16x32xf32>
    %394 = arith.addf %390, %393 : vector<16x32xf32>
    %395 = arith.index_cast %386 : i32 to index
    %c0_187 = arith.constant 0 : index
    %c0_188 = arith.constant 0 : index
    %396 = vector.load %arg16[%395, %c0_187, %c0_188] : memref<8x16x32xf32, #tpu.memory_space<vmem>>, vector<1x16x32xf32>
    %397 = vector.shape_cast %396 : vector<1x16x32xf32> to vector<16x32xf32>
    %398 = arith.mulf %394, %397 : vector<16x32xf32>
    %cst_189 = arith.constant dense<0.000000e+00> : vector<32xf32>
    %399 = vector.multi_reduction <add>, %398, %cst_189 [0] : vector<16x32xf32> to vector<32xf32>
    %400 = vector.shape_cast %399 : vector<32xf32> to vector<1x32xf32>
    %c8_i32_190 = arith.constant 8 : i32
    %401 = arith.addi %c8_i32_190, %280 : i32
    %402 = tpu.assume_multiple %401, 8 : i32
    %403 = tpu.concatenate %295, %310, %325, %340, %355, %370, %385, %400 in 0 : vector<1x32xf32>, vector<1x32xf32>, vector<1x32xf32>, vector<1x32xf32>, vector<1x32xf32>, vector<1x32xf32>, vector<1x32xf32>, vector<1x32xf32> -> vector<8x32xf32>
    %404 = arith.index_cast %402 : i32 to index
    %c0_191 = arith.constant 0 : index
    %405 = vector.load %arg17[%404, %c0_191] : memref<16x32xf32, #tpu.memory_space<vmem>>, vector<8x32xf32>
    tpu.vector_store %arg17[%404, %c0_191], %403 {strides = array<i32>} : memref<16x32xf32, #tpu.memory_space<vmem>>, vector<8x32xf32>,
    %c1_i32_192 = arith.constant 1 : i32
    %c0_193 = arith.constant 0 : index
    %c0_194 = arith.constant 0 : index
    %406 = vector.load %arg17[%c0_193, %c0_194] : memref<16x32xf32, #tpu.memory_space<vmem>>, vector<16x32xf32>
    %c0_195 = arith.constant 0 : index
    %c0_196 = arith.constant 0 : index
    %407 = vector.load %arg11[%c0_195, %c0_196] : memref<1x32xf32, #tpu.memory_space<vmem>>, vector<1x32xf32>
    %408 = vector.broadcast %407 : vector<1x32xf32> to vector<16x32xf32>
    %409 = arith.mulf %408, %80 : vector<16x32xf32>
    %410 = arith.addf %406, %409 : vector<16x32xf32>
    %411 = arith.negf %17 : vector<16x32xf32>
    %412 = math.exp %411 : vector<16x32xf32>
    %cst_197 = arith.constant 1.000000e+00 : f32
    %413 = vector.broadcast %cst_197 : f32 to vector<16x32xf32>
    %414 = arith.addf %413, %412 : vector<16x32xf32>
    %415 = arith.divf %413, %414 : vector<16x32xf32>
    %416 = arith.mulf %17, %415 : vector<16x32xf32>
    %417 = arith.mulf %410, %416 : vector<16x32xf32>
    %c0_198 = arith.constant 0 : index
    %c0_199 = arith.constant 0 : index
    %418 = vector.load %arg12[%c0_198, %c0_199] : memref<32x16xf32, #tpu.memory_space<vmem>>, vector<32x16xf32>
    %cst_200 = arith.constant dense<0.000000e+00> : vector<16x16xf32>
    %419 = tpu.matmul %417, %418, %cst_200 {dimension_numbers = #tpu.dot_dimension_numbers<[1], [0], [0], [1], [0, 0, 1, 1], [], []>} : vector<16x32xf32>, vector<32x16xf32>, vector<16x16xf32> -> vector<16x16xf32>
    %c0_201 = arith.constant 0 : index
    %c0_202 = arith.constant 0 : index
    %420 = vector.load %arg1[%c0_201, %c0_202] : memref<16x16xf32, #tpu.memory_space<vmem>>, vector<16x16xf32>
    %421 = arith.addf %419, %420 : vector<16x16xf32>
    %c0_203 = arith.constant 0 : index
    %c0_204 = arith.constant 0 : index
    %422 = vector.load %arg13[%c0_203, %c0_204] : memref<16x16xf32, #tpu.memory_space<vmem>>, vector<16x16xf32>
    tpu.vector_store %arg13[%c0_203, %c0_204], %421 {strides = array<i32>} : memref<16x16xf32, #tpu.memory_space<vmem>>, vector<16x16xf32>,
    return
  }
  func.func @transform_0(%arg0: i32) -> (i32, i32) {
    %c0_i32 = arith.constant 0 : i32
    %c0_i32_0 = arith.constant 0 : i32
    return %arg0, %c0_i32 : i32, i32
  }
  func.func @transform_1(%arg0: i32) -> (i32, i32) {
    %c0_i32 = arith.constant 0 : i32
    %c0_i32_0 = arith.constant 0 : i32
    %c0_i32_1 = arith.constant 0 : i32
    return %c0_i32, %c0_i32_0 : i32, i32
  }
  func.func @transform_2(%arg0: i32) -> (i32, i32) {
    %c0_i32 = arith.constant 0 : i32
    %c0_i32_0 = arith.constant 0 : i32
    %c0_i32_1 = arith.constant 0 : i32
    return %c0_i32, %c0_i32_0 : i32, i32
  }
  func.func @transform_3(%arg0: i32) -> (i32, i32) {
    %c0_i32 = arith.constant 0 : i32
    %c0_i32_0 = arith.constant 0 : i32
    %c0_i32_1 = arith.constant 0 : i32
    return %c0_i32, %c0_i32_0 : i32, i32
  }
  func.func @transform_4(%arg0: i32) -> (i32, i32) {
    %c0_i32 = arith.constant 0 : i32
    %c0_i32_0 = arith.constant 0 : i32
    %c0_i32_1 = arith.constant 0 : i32
    return %c0_i32, %c0_i32_0 : i32, i32
  }
  func.func @transform_5(%arg0: i32) -> (i32, i32) {
    %c0_i32 = arith.constant 0 : i32
    %c0_i32_0 = arith.constant 0 : i32
    %c0_i32_1 = arith.constant 0 : i32
    return %c0_i32, %c0_i32_0 : i32, i32
  }
  func.func @transform_6(%arg0: i32) -> (i32, i32) {
    %c0_i32 = arith.constant 0 : i32
    %c0_i32_0 = arith.constant 0 : i32
    %c0_i32_1 = arith.constant 0 : i32
    return %c0_i32, %c0_i32_0 : i32, i32
  }
  func.func @transform_7(%arg0: i32) -> (i32, i32) {
    %c0_i32 = arith.constant 0 : i32
    %c0_i32_0 = arith.constant 0 : i32
    %c0_i32_1 = arith.constant 0 : i32
    return %c0_i32, %c0_i32_0 : i32, i32
  }
  func.func @transform_8(%arg0: i32) -> (i32, i32) {
    %c0_i32 = arith.constant 0 : i32
    %c0_i32_0 = arith.constant 0 : i32
    %c0_i32_1 = arith.constant 0 : i32
    return %c0_i32, %c0_i32_0 : i32, i32
  }
  func.func @transform_9(%arg0: i32) -> (i32, i32) {
    %c0_i32 = arith.constant 0 : i32
    %c0_i32_0 = arith.constant 0 : i32
    %c0_i32_1 = arith.constant 0 : i32
    return %c0_i32, %c0_i32_0 : i32, i32
  }
  func.func @transform_10(%arg0: i32) -> (i32, i32) {
    %c0_i32 = arith.constant 0 : i32
    %c0_i32_0 = arith.constant 0 : i32
    %c0_i32_1 = arith.constant 0 : i32
    return %c0_i32, %c0_i32_0 : i32, i32
  }
  func.func @transform_11(%arg0: i32) -> (i32, i32) {
    %c0_i32 = arith.constant 0 : i32
    %c0_i32_0 = arith.constant 0 : i32
    %c0_i32_1 = arith.constant 0 : i32
    return %c0_i32, %c0_i32_0 : i32, i32
  }
  func.func @transform_12(%arg0: i32) -> (i32, i32) {
    %c0_i32 = arith.constant 0 : i32
    %c0_i32_0 = arith.constant 0 : i32
    return %arg0, %c0_i32 : i32, i32
  }
}

</mosaic_0001>

<bundles_post_ra>
// kernel: tpu_custom_call.1
= control target key start
LH: loop header
LB: loop body
LE: loop exit
PB: predicated region body
PF: predicated region fallthrough
CT: control target
= control target key end

     0   :  { %s2300_s21 = smov 0   ;;  %s3046_s0 = inlined_call_operand.vmem [shape: f32[32,16], index: 0, kind: input, shape index: {}]   ;;  %s3047_s1 = inlined_call_operand.vmem [shape: f32[1,16], index: 1, kind: input, shape index: {}]   ;;  %s3048_s2 = inlined_call_operand.vmem [shape: f32[16,32], index: 2, kind: input, shape index: {}]   ;;  %s3049_s3 = inlined_call_operand.vmem [shape: f32[16,32], index: 3, kind: input, shape index: {}]   ;;  %s3050_s4 = inlined_call_operand.vmem [shape: f32[4,32], index: 4, kind: input, shape index: {}]   ;;  %s3051_s5 = inlined_call_operand.vmem [shape: f32[1,32], index: 5, kind: input, shape index: {}]   ;;  %s3052_s6 = inlined_call_operand.vmem [shape: f32[32,160], index: 6, kind: input, shape index: {}]   ;;  %s3053_s7 = inlined_call_operand.vmem [shape: f32[128,32], index: 7, kind: input, shape index: {}]   ;;  %s3054_s8 = inlined_call_operand.vmem [shape: f32[1,32], index: 8, kind: input, shape index: {}]   ;;  %s3055_s9 = inlined_call_operand.vmem [shape: f32[16,32], index: 9, kind: input, shape index: {}]   ;;  %s3056_s10 = inlined_call_operand.vmem [shape: f32[1,32], index: 10, kind: input, shape index: {}]   ;;  %s3057_s11 = inlined_call_operand.vmem [shape: f32[32,16], index: 11, kind: input, shape index: {}]   ;;  %s3058_s12 = inlined_call_operand.vmem [shape: f32[32,16], index: 12, kind: output, shape index: {}]  }
   0x1 LB: > { %s2050_s22 = sadd.s32 4294967295, %s2232_s21   ;;  %p2054_p0 = scmp.ge.s32.totalorder %s2232_s21, 1  ;;  %s2232_s21 = sphi %s2300_s21, %s22_s21  }
   0x2   : > { %p363_p1 = scmp.lt.s32.totalorder %s2232_s21, 3 }
   0x4   : > { %p364_p2 = pnand %p2054_p0, %p363_p1 }
   0x5   : > { %s2055_s23 = sshll.u32 (!%p364_p2), %s2050_s22, 1 }
   0x6   : > { %367 = sbr.rel (%p364_p2) target bundleno = 1074 (0x432), region = 68  ;;  %p406_p3 = scmp.lt.s32.totalorder (!%p364_p2), %s2055_s23, 3 }
   0xb   : > { %s3060_s23 = smov (!%p406_p3, %s2055_s23), 3  ;;  %vm421_vm0 = vcmask 130048   ;;  %v2234_v6 = vmov 16.0   ;;  %v468_v11 = vld [vmem:[%s3048_s2 + $0x8] sm:$0xff]  ;;  %v467_v13 = vld [vmem:[%s3048_s2] sm:$0xff]  ;;  %v523_v42 = vlaneseq  ;;  %v660_v48 = vld [vmem:[%s3052_s6 + $0x30] sm:$0xff] }
   0xc   : > { %s2056_s24 = sshll.u32 %s3060_s23, 3  ;;  %2128 = vrcp.f32 %v2234_v6  ;;  %v499_v12 = vld [vmem:[%s3049_s3 + $0x8] sm:$0xff]  ;;  %489 = vmatpush.msra.mxu2 %v468_v11  ;;  %v498_v14 = vld [vmem:[%s3049_s3] sm:$0xff]  ;;  %v661_v49 = vld [vmem:[%s3052_s6 + $0x38] sm:$0xff] }
   0xd   : > { %s2316_s27 = scalar_lea.vmem %s3046_s0, %s2056_s24  ;;  %514 = vmatpush.msra.mxu1 %v499_v12  ;;  %v2124_v31 = vld [vmem:[%s3047_s1] ss:$0 sm:$0xff]  ;;  %v2341_v43 = vshrl.u32 %v523_v42, 7  ;;  %704 = vmatpush.msra.mxu3 %v661_v49  ;;  %v659_v51 = vld [vmem:[%s3052_s6 + $0x28] sm:$0xff]  ;;  %v656_v52 = vld [vmem:[%s3052_s6 + $0x10] sm:$0xff]  ;;  %s3010_s20 = scalar_lea.vmem %s3058_s12, %s2056_s24 }
   0xe   : > { %v417_v0 = vld [vmem:[%s2316_s27] sm:$0xff]  ;;  %v418_v2 = vld [vmem:[%s2316_s27 + $0x8] sm:$0xff]  ;;  %490 = vmatpush.msra.mxu2 %v467_v13  ;;  %v657_v53 = vld [vmem:[%s3052_s6 + $0x18] sm:$0xff] }
   0xf   : > { %v419_v1 = vmul.f32 %v417_v0, %v417_v0  ;;  %v420_v4 = vmul.f32 %v418_v2, %v418_v2  ;;  %515 = vmatpush.msra.mxu1 %v498_v14  ;;  %2088 = vset.pattern.permute.xlu0 %v2341_v43  ;;  %v2349_v45 = vadd.s32 8, %v2341_v43  ;;  %v530_v46 = vand.u32 7, %v2341_v43  ;;  %v658_v50 = vld [vmem:[%s3052_s6 + $0x20] sm:$0xff]  ;;  %v655_v62 = vld [vmem:[%s3052_s6 + $0x8] sm:$0xff] }
  0x10   : > { %2086 = vset.pattern.permute.xlu2 %v2341_v43  ;;  %2084 = vset.pattern.permute.xlu1 %v2341_v43  ;;  %v550_v54 = vld [vmem:[%s3050_s4] sm:$0xf]  ;;  %vm554_vm8 = vcmp.lt.s32.totalorder %v2341_v43, 3  ;;  %vm575_vm11 = vcmp.lt.s32.totalorder %v2341_v43, 2  ;;  %vm593_vm14 = vcmp.lt.s32.totalorder %v2341_v43, 1 }
  0x11   : > { %v422_v3 = vsel %vm421_vm0, %v419_v1, 0.0  ;;  %v425_v5 = vsel %vm421_vm0, %v420_v4, 0.0  ;;  %v537_v47 = vand.u32 7, %v2349_v45  ;;  %681 = vmatpush.msrb.mxu2 %v660_v48  ;;  %705 = vmatpush.msra.mxu3 %v659_v51  ;;  %vm557_vm9 = vcmp.ge.s32.totalorder %v530_v46, 3  ;;  %v654_v57 = vld [vmem:[%s3052_s6] sm:$0xff]  ;;  %v724_v48 = vld [vmem:[%s3053_s7 + $0x48] sm:$0xff] }
  0x12   : > { %423 = vadd.xlane.f32.xlu0 %v422_v3  ;;  %v2129_v7 = vpop.eup %2128  ;;  %v565_v56 = vperm.slane %v550_v54, 0  ;;  %vm578_vm12 = vcmp.ge.s32.totalorder %v530_v46, 2  ;;  %v2125_v1 = vld [vmem:[%s3051_s5] ss:$0 sm:$0xff]  ;;  %v586_v6 = vperm.slane %v550_v54, 1  ;;  %vm596_vm15 = vcmp.ge.s32.totalorder %v530_v46, 1 }
  0x13   : > { %v429_v8 = vmul.f32 16.0, %v2129_v7  ;;  %vm433_vm1 = vweird.f32 %v2129_v7  ;;  %682 = vmatpush.msrb.mxu2 %v658_v50  ;;  %vm558_vm10 = vcmp.ge.s32.totalorder %v537_v47, 3  ;;  %706 = vmatpush.msra.mxu3 %v657_v53  ;;  %vm579_vm13 = vcmp.ge.s32.totalorder %v537_v47, 2  ;;  %v727_v42 = vld [vmem:[%s3053_s7 + $0x60] sm:$0xff]  ;;  %v725_v46 = vld [vmem:[%s3053_s7 + $0x50] sm:$0xff] }
  0x14   : > { %v604_v11 = vperm.slane %v550_v54, 2 }
  0x15   : > { %v430_v9 = vsub.f32 1.0, %v429_v8  ;;  %683 = vmatpush.msrb.mxu2 %v656_v52  ;;  %707 = vmatpush.msra.mxu3 %v655_v62  ;;  %v723_v52 = vld [vmem:[%s3053_s7 + $0x40] sm:$0xff]  ;;  %v720_v62 = vld [vmem:[%s3053_s7 + $0x28] sm:$0xff] }
  0x17   : > { %v431_v10 = vmul.f32 %v2129_v7, %v430_v9  ;;  %684 = vmatpush.msrb.mxu2 %v654_v57 }
  0x19   : > { %v432_v15 = vadd.f32 %v2129_v7, %v431_v10 }
  0x1a   : > { %426 = vadd.xlane.f32.xlu0 %v425_v5 }
  0x1b   : > { %v434_v16 = vsel %vm433_vm1, %v2129_v7, %v432_v15  ;;  %vm597_vm1 = vcmp.ge.s32.totalorder %v537_v47, 1 }
  0x85   : > { %v424_v17 = vpop.xlane.xlu0 %423 }
  0x86   : > { %v435_v18 = vmul.f32 %v434_v16, %v424_v17 }
  0x88   : > { %v437_v19 = vadd.f32 1e-05, %v435_v18  ;;  %v609_v18 = vperm.slane %v550_v54, 3 }
  0x8a   : > { %2130 = vrsqrt.f32 %v437_v19  ;;  %vm445_vm3 = vweird.f32 %v437_v19 }
  0x8d   : > { %v427_v20 = vpop.xlane.xlu0 %426 }
  0x8e   : > { %v436_v21 = vmul.f32 %v434_v16, %v427_v20 }
  0x90   : > { %v2131_v22 = vpop.eup %2130  ;;  %v438_v23 = vadd.f32 1e-05, %v436_v21 }
  0x91   : > { %v440_v24 = vmul.f32 %v2131_v22, %v437_v19  ;;  %vm446_vm2 = vweird.f32 %v2131_v22 }
  0x92   : > { %2132 = vrsqrt.f32 %v438_v23  ;;  %vm447_vm4 = vmor %vm445_vm3, %vm446_vm2  ;;  %vm455_vm6 = vweird.f32 %v438_v23 }
  0x93   : > { %v441_v25 = vmul.f32 %v2131_v22, %v440_v24 }
  0x95   : > { %v442_v26 = vmul.f32 0.5, %v441_v25 }
  0x97   : > { %v443_v27 = vsub.f32 1.5, %v442_v26 }
  0x98   : > { %v2133_v28 = vpop.eup %2132 }
  0x99   : > { %v444_v29 = vmul.f32 %v2131_v22, %v443_v27  ;;  %v450_v30 = vmul.f32 %v2133_v28, %v438_v23  ;;  %vm456_vm5 = vweird.f32 %v2133_v28 }
  0x9a   : > { %vm457_vm7 = vmor %vm455_vm6, %vm456_vm5 }
  0x9b   : > { %v451_v32 = vmul.f32 %v2133_v28, %v450_v30  ;;  %v448_v33 = vsel %vm447_vm4, %v2131_v22, %v444_v29 }
  0x9c   : > { %v459_v34 = vmul.f32 %v448_v33, %v417_v0 }
  0x9d   : > { %v452_v35 = vmul.f32 0.5, %v451_v32 }
  0x9e   : > { %v465_v36 = vmul.f32 %v2124_v31, %v459_v34 }
  0x9f   : > { %v453_v37 = vsub.f32 1.5, %v452_v35  ;;  %v730_v35 = vld [vmem:[%s3053_s7 + $0x78] sm:$0xff] }
  0xa0   : > { %2059 = vmatmul.msk.f32.vlgmr.msra.gmra.mxu2 %vm421_vm0, %v465_v36  ;;  %2061 = vmatmul.msk.f32.vlgmr.msra.gmra.mxu1 %vm421_vm0, %v465_v36  ;;  %v729_v36 = vld [vmem:[%s3053_s7 + $0x70] sm:$0xff] }
  0xa1   : > { %v454_v38 = vmul.f32 %v2133_v28, %v453_v37  ;;  %735 = vmatpush.msra.mxu0 %v730_v35  ;;  %v2126_v35 = vld [vmem:[%s3054_s8] ss:$0 sm:$0xff] }
  0xa3   : > { %v458_v39 = vsel %vm457_vm7, %v2133_v28, %v454_v38  ;;  %736 = vmatpush.msra.mxu0 %v729_v36  ;;  %vm662_vm7 = vcmask 261120  }
  0xa4   : > { %v460_v40 = vmul.f32 %v458_v39, %v418_v2 }
  0xa6   : > { %v466_v41 = vmul.f32 %v2124_v31, %v460_v40  ;;  %v728_v40 = vld [vmem:[%s3053_s7 + $0x68] sm:$0xff] }
  0xa7   : > { %737 = vmatpush.msra.mxu0 %v728_v40 }
  0xa8   : > { %2060 = vmatmul.msk.f32.gmra.mxu2 %vm421_vm0, %v466_v41  ;;  %2062 = vmatmul.msk.f32.gmra.mxu1 %vm421_vm0, %v466_v41 }
  0xa9   : > { %738 = vmatpush.msra.mxu0 %v727_v42 }
 0x123   : > { %v2346_v44 = vpop.f32.mrf.mxu2 }
 0x124   : > { %v552_v58 = vrot.slane %v2346_v44, 5  ;;  %v573_v59 = vrot.slane %v2346_v44, 6  ;;  %v591_v12 = vrot.slane %v2346_v44, 7  ;;  %v610_v29 = vmul.f32 %v609_v18, %v2346_v44  ;;  %v726_v44 = vld [vmem:[%s3053_s7 + $0x58] sm:$0xff] }
 0x125   : > { %739 = vmatpush.msra.mxu0 %v726_v44 }
 0x127   : > { %740 = vmatpush.msra.mxu0 %v725_v46 }
 0x129   : > { %741 = vmatpush.msra.mxu0 %v724_v48 }
 0x12b   : > { %v495_v55 = vpop.f32.mrf.mxu2  ;;  %742 = vmatpush.msra.mxu0 %v723_v52 }
 0x12c   : > { %v553_v60 = vrot.slane %v495_v55, 5  ;;  %v574_v61 = vrot.slane %v495_v55, 6  ;;  %v592_v10 = vrot.slane %v495_v55, 7  ;;  %v611_v28 = vmul.f32 %v609_v18, %v495_v55  ;;  %v722_v55 = vld [vmem:[%s3053_s7 + $0x38] sm:$0xff] }
 0x12d   : > { %743 = vmatpush.msra.mxu0 %v722_v55 }
 0x12e   : > { %v555_v63 = vsel %vm554_vm8, %v552_v58, %v553_v60  ;;  %v556_v0 = vsel %vm554_vm8, %v553_v60, %v552_v58  ;;  %v577_v2 = vsel %vm575_vm11, %v574_v61, %v573_v59  ;;  %v576_v5 = vsel %vm575_vm11, %v573_v59, %v574_v61  ;;  %v721_v60 = vld [vmem:[%s3053_s7 + $0x30] sm:$0xff] }
 0x12f   : > { %v563_v3 = vsel %vm557_vm9, %v556_v0, 0.0  ;;  %v564_v4 = vsel %vm558_vm10, %v555_v63, 0.0  ;;  %v584_v9 = vsel %vm578_vm12, %v577_v2, 0.0  ;;  %v585_v15 = vsel %vm579_vm13, %v576_v5, 0.0  ;;  %744 = vmatpush.msra.mxu0 %v721_v60  ;;  %v719_v2 = vld [vmem:[%s3053_s7 + $0x20] sm:$0xff] }
 0x130   : > { %v566_v7 = vmul.f32 %v565_v56, %v563_v3  ;;  %v567_v8 = vmul.f32 %v565_v56, %v564_v4  ;;  %v587_v16 = vmul.f32 %v586_v6, %v584_v9  ;;  %v588_v17 = vmul.f32 %v586_v6, %v585_v15  ;;  %v717_v9 = vld [vmem:[%s3053_s7 + $0x10] sm:$0xff] }
 0x131   : > { %v594_v19 = vsel %vm593_vm14, %v591_v12, %v592_v10  ;;  %v595_v20 = vsel %vm593_vm14, %v592_v10, %v591_v12  ;;  %745 = vmatpush.msra.mxu0 %v720_v62 }
 0x132   : > { %v571_v13 = vadd.f32 %v2125_v1, %v566_v7  ;;  %v572_v14 = vadd.f32 %v2125_v1, %v567_v8  ;;  %v602_v22 = vsel %vm596_vm15, %v595_v20, 0.0  ;;  %v603_v23 = vsel %vm597_vm1, %v594_v19, 0.0  ;;  %v718_v7 = vld [vmem:[%s3053_s7 + $0x18] sm:$0xff] }
 0x133   : > { %v606_v25 = vmul.f32 %v604_v11, %v603_v23  ;;  %v605_v26 = vmul.f32 %v604_v11, %v602_v22  ;;  %746 = vmatpush.msra.mxu0 %v719_v2  ;;  %v716_v11 = vld [vmem:[%s3053_s7 + $0x8] sm:$0xff]  ;;  %v2472_v22 = vadd.s32 16, %v2341_v43  ;;  %vm1353_vm15 = vcmask 1040384  }
 0x134   : > { %v590_v21 = vadd.f32 %v588_v17, %v572_v14  ;;  %v589_v24 = vadd.f32 %v587_v16, %v571_v13  ;;  %v715_v14 = vld [vmem:[%s3053_s7] sm:$0xff]  ;;  %vm1355_vm1 = vcmask 1041408  }
 0x135   : > { %747 = vmatpush.msra.mxu0 %v718_v7 }
 0x136   : > { %v608_v27 = vadd.f32 %v606_v25, %v590_v21  ;;  %v607_v30 = vadd.f32 %v605_v26, %v589_v24 }
 0x137   : > { %748 = vmatpush.msra.mxu0 %v717_v9 }
 0x138   : > { %v2401_v31 = vadd.f32 %v611_v28, %v608_v27  ;;  %v612_v32 = vadd.f32 %v610_v29, %v607_v30  ;;  %v2492_v29 = vadd.s32 24, %v2341_v43 }
 0x139   : > { %749 = vmatpush.msra.mxu0 %v716_v11 }
 0x13a   : > { %v2064_v33 = vmul.f32 -1.442695, %v2401_v31  ;;  %v2063_v34 = vmul.f32 -1.442695, %v612_v32 }
 0x13b   : > { %750 = vmatpush.msra.mxu0 %v715_v14 }
 0x13c   : > { %2134 = vpow2.f32 %v2064_v33 }
 0x13d   : > { %2136 = vpow2.f32 %v2063_v34 }
 0x142   : > { %v2135_v37 = vpop.eup %2134 }
 0x143   : > { %v2137_v38 = vpop.eup %2136  ;;  %v621_v39 = vadd.f32 1.0, %v2135_v37 }
 0x144   : > { %v620_v41 = vadd.f32 1.0, %v2137_v38 }
 0x145   : > { %2138 = vrcp.f32 %v621_v39  ;;  %v648_v4 = vand.u32 2147483648, %v621_v39  ;;  %vm642_vm8 = vweird.f32 %v621_v39  ;;  %v646_v6 = vand.u32 2147483647, %v621_v39 }
 0x146   : > { %2140 = vrcp.f32 %v620_v41  ;;  %v633_v56 = vand.u32 2147483648, %v620_v41  ;;  %v631_v58 = vand.u32 2147483647, %v620_v41  ;;  %vm627_vm3 = vweird.f32 %v620_v41 }
 0x147   : > { %v649_v10 = vor.u32 1.1754944e-38, %v648_v4  ;;  %vm647_vm10 = vcmp.eq.f32.partialorder %v646_v6, 8.507059e+37 }
 0x148   : > { %v634_v63 = vor.u32 1.1754944e-38, %v633_v56  ;;  %vm632_vm5 = vcmp.eq.f32.partialorder %v631_v58, 8.507059e+37 }
 0x14b   : > { %v2139_v47 = vpop.eup %2138 }
 0x14c   : > { %v2141_v49 = vpop.eup %2140  ;;  %v638_v50 = vmul.f32 %v2139_v47, %v621_v39  ;;  %vm643_vm6 = vweird.f32 %v2139_v47 }
 0x14d   : > { %v623_v51 = vmul.f32 %v2141_v49, %v620_v41  ;;  %vm628_vm2 = vweird.f32 %v2141_v49  ;;  %vm644_vm9 = vmor %vm642_vm8, %vm643_vm6  ;;  %vm1365_vm6 = vcmask 1046528  }
 0x14e   : > { %v639_v53 = vsub.f32 1.0, %v638_v50  ;;  %vm629_vm4 = vmor %vm627_vm3, %vm628_vm2  ;;  %vm1357_vm2 = vcmask 1042432   ;;  %vm1359_vm3 = vcmask 1043456  }
 0x14f   : > { %v624_v54 = vsub.f32 1.0, %v623_v51  ;;  %v794_v51 = vld [vmem:[%s3055_s9] sm:$0xff] }
 0x150   : > { %v640_v59 = vmul.f32 %v2139_v47, %v639_v53  ;;  %v795_v53 = vld [vmem:[%s3055_s9 + $0x8] sm:$0xff]  ;;  %v796_v60 = vmul.f32 1.442695, %v794_v51 }
 0x151   : > { %v625_v57 = vmul.f32 %v2141_v49, %v624_v54 }
 0x152   : > { %v641_v1 = vadd.f32 %v2139_v47, %v640_v59 }
 0x153   : > { %v626_v61 = vadd.f32 %v2141_v49, %v625_v57 }
 0x154   : > { %v645_v8 = vsel %vm644_vm9, %v2139_v47, %v641_v1 }
 0x155   : > { %v630_v0 = vsel %vm629_vm4, %v2141_v49, %v626_v61  ;;  %v650_v12 = vsel %vm647_vm10, %v649_v10, %v645_v8  ;;  %v798_v61 = vmul.f32 1.442695, %v795_v53  ;;  %vm1361_vm4 = vcmask 1044480  }
 0x156   : > { %v635_v3 = vsel %vm632_vm5, %v634_v63, %v630_v0  ;;  %v2456_v13 = vmul.f32 %v650_v12, %v2401_v31  ;;  %vm1363_vm5 = vcmask 1045504  }
 0x157   : > { %v2440_v5 = vmul.f32 %v635_v3, %v612_v32 }
 0x159   : > { %2065 = vmatmul.msk.f32.vlgmr.msrb.gmra.mxu2 %vm662_vm7, %v2440_v5  ;;  %2067 = vmatmul.msk.f32.vlgmr.msra.gmra.mxu3 %vm662_vm7, %v2440_v5 }
 0x161   : > { %2066 = vmatmul.msk.f32.gmra.mxu2 %vm662_vm7, %v2456_v13  ;;  %2068 = vmatmul.msk.f32.gmra.mxu3 %vm662_vm7, %v2456_v13 }
 0x1dc   : > { %v686_v15 = vpop.f32.mrf.mxu2  ;;  %v709_v16 = vpop.f32.mrf.mxu3 }
 0x1dd   : > { %751 = vmatmul.f32.vlgmr.msra.gmra.mxu0 %v686_v15  ;;  %v926_v17 = vperm.slane %v709_v16, 2  ;;  %v913_v18 = vperm.slane %v709_v16, 1  ;;  %v900_v19 = vperm.slane %v709_v16, 0  ;;  %v2468_v21 = vperm.slane %v709_v16, 7 }
 0x1de   : > { %v939_v23 = vperm.slane %v709_v16, 3  ;;  %v2476_v24 = vperm.slane %v709_v16, 6  ;;  %v952_v25 = vperm.slane %v709_v16, 4  ;;  %v965_v26 = vperm.slane %v709_v16, 5 }
 0x1df   : > { %931 = vperm.xlu0 %2088, %v926_v17   ;;  %918 = vperm.xlu2 %2086, %v913_v18  }
 0x1e0   : > { %905 = vperm.xlu1 %2084, %v900_v19  }
 0x1e4   : > { %v689_v20 = vpop.f32.mrf.mxu2  ;;  %v2480_v27 = vpop.f32.mrf.mxu3 }
 0x1e5   : > { %754 = vmatmul.f32.gmra.mxu0 %v689_v20  ;;  %v2483_v28 = vperm.slane %v2480_v27, 0  ;;  %v2495_v30 = vperm.slane %v2480_v27, 2  ;;  %v2501_v31 = vperm.slane %v2480_v27, 5  ;;  %v2508_v32 = vperm.slane %v2480_v27, 6 }
 0x1e6   : > { %v2535_v49 = vperm.slane %v2480_v27, 3 }
 0x1e7   : > { %2090 = vset.pattern.permute.xlu0 %v2349_v45  ;;  %2087 = vset.pattern.permute.xlu2 %v2349_v45 }
 0x1e8   : > { %2085 = vset.pattern.permute.xlu1 %v2349_v45 }
 0x1ef   : > { %1002 = vperm.xlu0 %2090, %v2468_v21   ;;  %924 = vperm.xlu2 %2087, %v913_v18  }
 0x1f0   : > { %911 = vperm.xlu1 %2085, %v900_v19  }
 0x1f7   : > { %2093 = vset.pattern.permute.xlu0 %v2472_v22  ;;  %2089 = vset.pattern.permute.xlu2 %v2341_v43 }
 0x1f8   : > { %937 = vperm.xlu1 %2085, %v926_v17  }
 0x1ff   : > { %1080 = vperm.xlu0 %2093, %v926_v17   ;;  %944 = vperm.xlu2 %2089, %v939_v23  }
 0x200   : > { %950 = vperm.xlu1 %2085, %v939_v23  }
 0x207   : > { %1128 = vperm.xlu0 %2093, %v2476_v24   ;;  %957 = vperm.xlu2 %2089, %v952_v25  }
 0x208   : > { %963 = vperm.xlu1 %2085, %v952_v25  }
 0x20f   : > { %2100 = vset.pattern.permute.xlu0 %v2341_v43  ;;  %970 = vperm.xlu2 %2089, %v965_v26  }
 0x210   : > { %976 = vperm.xlu1 %2085, %v965_v26  }
 0x217   : > { %983 = vperm.xlu2 %2089, %v2476_v24   ;;  %1469 = vperm.xlu0 %2100, %v2483_v28  }
 0x218   : > { %989 = vperm.xlu1 %2085, %v2476_v24  }
 0x21f   : > { %996 = vperm.xlu2 %2089, %v2468_v21   ;;  %2103 = vset.pattern.permute.xlu0 %v2349_v45 }
 0x220   : > { %2091 = vset.pattern.permute.xlu1 %v2472_v22 }
 0x227   : > { %2092 = vset.pattern.permute.xlu2 %v2492_v29  ;;  %1501 = vperm.xlu0 %2103, %v2495_v30  }
 0x228   : > { %1056 = vperm.xlu1 %2091, %v900_v19  }
 0x22f   : > { %1062 = vperm.xlu2 %2092, %v900_v19   ;;  %2106 = vset.pattern.permute.xlu0 %v2341_v43 }
 0x230   : > { %1068 = vperm.xlu1 %2091, %v913_v18  }
 0x237   : > { %1074 = vperm.xlu2 %2092, %v913_v18   ;;  %1534 = vperm.xlu0 %2106, %v2501_v31  }
 0x238   : > { %2094 = vset.pattern.permute.xlu1 %v2492_v29 }
 0x239   : > { %v2511_v33 = vpop.permute.xlu2 %918 }
 0x23f   : > { %2095 = vset.pattern.permute.xlu2 %v2472_v22  ;;  %2109 = vset.pattern.permute.xlu0 %v2349_v45 }
 0x240   : > { %1086 = vperm.xlu1 %2094, %v926_v17  }
 0x247   : > { %1092 = vperm.xlu2 %2095, %v939_v23   ;;  %1553 = vperm.xlu0 %2109, %v2508_v32  }
 0x248   : > { %1098 = vperm.xlu1 %2094, %v939_v23  }
 0x249   : > { %v2515_v34 = vpop.permute.xlu2 %924 }
 0x24f   : > { %1104 = vperm.xlu2 %2095, %v952_v25   ;;  %2112 = vset.pattern.permute.xlu0 %v2472_v22 }
 0x250   : > { %2097 = vset.pattern.permute.xlu1 %v2472_v22 }
 0x251   : > { %v2528_v42 = vpop.permute.xlu0 %931 }
 0x252   : > { %v2522_v36 = vpop.permute.xlu1 %905 }
 0x257   : > { %2096 = vset.pattern.permute.xlu2 %v2492_v29  ;;  %1644 = vperm.xlu0 %2112, %v2495_v30  }
 0x258   : > { %1116 = vperm.xlu1 %2097, %v965_v26  }
 0x259   : > { %v2524_v40 = vpop.permute.xlu2 %944 }
 0x25a   : > { %v752_v37 = vpop.f32.mrf.mxu0 }
 0x25b   : > { %v753_v38 = vadd.f32 %v2126_v35, %v752_v37 }
 0x25d   : > { %v764_v39 = vand.u32 2147483647, %v753_v38  ;;  %v758_v7 = vmax.f32 %v753_v38, 0.0  ;;  %vm760_vm12 = vcmp.ne.f32.partialorder %v753_v38, %v753_v38 }
 0x25f   : > { %v766_v41 = vsub.f32 0.0, %v764_v39  ;;  %1110 = vperm.xlu2 %2096, %v952_v25   ;;  %2117 = vset.pattern.permute.xlu0 %v2492_v29 }
 0x260   : > { %2098 = vset.pattern.permute.xlu1 %v2492_v29 }
 0x261   : > { %v768_v44 = vmul.f32 1.442695, %v766_v41  ;;  %v2546_v54 = vpop.permute.xlu0 %1002  ;;  %v2548_v55 = vpop.permute.xlu2 %957 }
 0x262   : > { %v2530_v46 = vpop.permute.xlu1 %911  ;;  %v755_v47 = vpop.f32.mrf.mxu0 }
 0x263   : > { %2142 = vpow2.f32 %v768_v44  ;;  %v2532_v48 = vadd.f32 %v2126_v35, %v755_v47 }
 0x265   : > { %v765_v50 = vand.u32 2147483647, %v2532_v48  ;;  %vm761_vm14 = vcmp.ne.f32.partialorder %v2532_v48, %v2532_v48 }
 0x267   : > { %1122 = vperm.xlu2 %2096, %v965_v26   ;;  %1662 = vperm.xlu0 %2117, %v2535_v49   ;;  %v767_v57 = vsub.f32 0.0, %v765_v50 }
 0x268   : > { %1134 = vperm.xlu1 %2098, %v2476_v24  }
 0x269   : > { %v2143_v52 = vpop.eup %2142  ;;  %v770_v62 = vmul.f32 1.442695, %v767_v57  ;;  %v2556_v6 = vpop.permute.xlu2 %970 }
 0x26a   : > { %v772_v56 = vadd.f32 1.0, %v2143_v52  ;;  %v2550_v58 = vpop.permute.xlu1 %937  ;;  %v775_v59 = vmul.f32 -0.5, %v2143_v52  ;;  %v778_v0 = vand.u32 2147483647, %v2143_v52 }
 0x26c   : > { %2144 = vlog2.f32 %v772_v56  ;;  %v776_v63 = vadd.f32 1.0, %v775_v59  ;;  %vm779_vm11 = vcmp.lt.f32.partialorder %v778_v0, 0.0004427343 }
 0x26d   : > { %2146 = vpow2.f32 %v796_v60 }
 0x26e   : > { %2148 = vpow2.f32 %v798_v61  ;;  %v777_v4 = vmul.f32 %v2143_v52, %v776_v63 }
 0x26f   : > { %2099 = vset.pattern.permute.xlu2 %v2472_v22  ;;  %2120 = vset.pattern.permute.xlu0 %v2472_v22  ;;  %2150 = vpow2.f32 %v770_v62 }
 0x270   : > { %1146 = vperm.xlu1 %2098, %v2468_v21  }
 0x271   : > { %v1081_v1 = vpop.permute.xlu0 %1080  ;;  %v2595_v52 = vpop.permute.xlu2 %983 }
 0x272   : > { %v2145_v2 = vpop.eup %2144  ;;  %1152 = vst.msk [vmem:[#allocation4 + $0x20] sm:$0xff] %vm662_vm7, %v1081_v1  ;;  %v2558_v8 = vpop.permute.xlu1 %950 }
 0x273   : > { %v774_v3 = vmul.f32 0.6931472, %v2145_v2  ;;  %v2147_v9 = vpop.eup %2146 }
 0x274   : > { %v2149_v11 = vpop.eup %2148  ;;  %v2567_v16 = vsub.f32 0.0, %v2147_v9 }
 0x275   : > { %v780_v10 = vsel %vm779_vm11, %v777_v4, %v774_v3  ;;  %v2562_v14 = vpop.eup %2150  ;;  %v2569_v17 = vsub.f32 0.0, %v2149_v11 }
 0x276   : > { %v790_v12 = vadd.f32 %v780_v10, %v758_v7  ;;  %v784_v11 = vmul.f32 -0.5, %v2562_v14 }
 0x277   : > { %1140 = vperm.xlu2 %2099, %v2468_v21   ;;  %1692 = vperm.xlu0 %2120, %v2508_v32  }
 0x278   : > { %v2564_v15 = vsel %vm760_vm12, %v753_v38, %v790_v12  ;;  %2101 = vset.pattern.permute.xlu1 %v2349_v45  ;;  %v781_v38 = vadd.f32 1.0, %v2562_v14 }
 0x279   : > { %v805_v18 = vrot.slane %v2564_v15, 1  ;;  %v806_v19 = vrot.slane %v2564_v15, 2  ;;  %v1129_v20 = vpop.permute.xlu0 %1128  ;;  %v808_v23 = vrot.slane %v2564_v15, 4  ;;  %v809_v21 = vrot.slane %v2564_v15, 5 }
 0x27a   : > { %v810_v24 = vrot.slane %v2564_v15, 6  ;;  %v811_v25 = vrot.slane %v2564_v15, 7  ;;  %1160 = vst.msk [vmem:[#allocation4 + $0x60] sm:$0xff] %vm662_vm7, %v1129_v20  ;;  %v812_v26 = vperm.slane %v2564_v15, 0  ;;  %v2603_v60 = vpop.permute.xlu1 %963  ;;  %v2607_v61 = vmul.f32 %v2564_v15, %v2440_v5 }
 0x27b   : > { %v2579_v35 = vperm.slane %v805_v18, 0  ;;  %v2581_v37 = vperm.slane %v806_v19, 0  ;;  %v2584_v39 = vperm.slane %v808_v23, 0  ;;  %v817_v41 = vperm.slane %v809_v21, 0 }
 0x27c   : > { %v2586_v44 = vperm.slane %v810_v24, 0  ;;  %v2588_v47 = vperm.slane %v811_v25, 0  ;;  %v829_v50 = vmul.f32 %v812_v26, %v2569_v17  ;;  %2152 = vlog2.f32 %v781_v38  ;;  %v997_v38 = vpop.permute.xlu2 %996 }
 0x27d   : > { %v831_v51 = vmul.f32 %v2579_v35, %v2569_v17  ;;  %v833_v53 = vmul.f32 %v2581_v37, %v2569_v17  ;;  %v836_v56 = vmul.f32 %v2584_v39, %v2567_v16  ;;  %v838_v57 = vmul.f32 %v817_v41, %v2567_v16 }
 0x27e   : > { %v839_v59 = vmul.f32 %v817_v41, %v2569_v17  ;;  %v841_v62 = vmul.f32 %v2586_v44, %v2569_v17  ;;  %v846_v63 = vmul.f32 1.442695, %v829_v50  ;;  %v843_v0 = vmul.f32 %v2588_v47, %v2569_v17 }
 0x27f   : > { %2102 = vset.pattern.permute.xlu2 %v2341_v43  ;;  %2123 = vset.pattern.permute.xlu0 %v2492_v29  ;;  %v850_v1 = vmul.f32 1.442695, %v831_v51  ;;  %v854_v2 = vmul.f32 1.442695, %v833_v53  ;;  %v860_v3 = vmul.f32 1.442695, %v836_v56 }
 0x280   : > { %1475 = vperm.xlu1 %2101, %v2483_v28   ;;  %2154 = vpow2.f32 %v846_v63  ;;  %v864_v4 = vmul.f32 1.442695, %v838_v57  ;;  %v866_v7 = vmul.f32 1.442695, %v839_v59  ;;  %v870_v9 = vmul.f32 1.442695, %v841_v62 }
 0x281   : > { %2156 = vpow2.f32 %v850_v1  ;;  %v1004_v10 = vperm.slane %v2607_v61, 0  ;;  %v874_v12 = vmul.f32 1.442695, %v843_v0  ;;  %v899_v18 = vrot.slane %v2607_v61, 7 }
 0x282   : > { %2158 = vpow2.f32 %v854_v2  ;;  %v896_v19 = vrot.slane %v2607_v61, 4  ;;  %v2622_v23 = vperm.slane %v2480_v27, 1  ;;  %v2153_v21 = vpop.eup %2152  ;;  %v785_v25 = vadd.f32 1.0, %v784_v11  ;;  %v2628_v51 = vpop.permute.xlu1 %976 }
 0x283   : > { %2160 = vpow2.f32 %v860_v3  ;;  %v1020_v20 = vmul.f32 %v1004_v10, %v2522_v36  ;;  %v1011_v50 = vperm.slane %v899_v18, 0  ;;  %v787_v36 = vand.u32 2147483647, %v2562_v14 }
 0x284   : > { %2162 = vpow2.f32 %v864_v4  ;;  %v1008_v56 = vperm.slane %v896_v19, 0  ;;  %v783_v57 = vmul.f32 0.6931472, %v2153_v21  ;;  %v786_v63 = vmul.f32 %v2562_v14, %v785_v25 }
 0x285   : > { %2164 = vpow2.f32 %v866_v7  ;;  %1036 = vst.msk [vmem:[#allocation3] sm:$0xff] %vm662_vm7, %v1020_v20  ;;  %v897_v0 = vrot.slane %v2607_v61, 5  ;;  %v1035_v2 = vmul.f32 %v1011_v50, %v2546_v54  ;;  %vm788_vm13 = vcmp.lt.f32.partialorder %v787_v36, 0.0004427343 }
 0x286   : > { %v2155_v24 = vpop.eup %2154  ;;  %2166 = vpow2.f32 %v870_v9  ;;  %v894_v3 = vrot.slane %v2607_v61, 2  ;;  %v1028_v7 = vmul.f32 %v1008_v56, %v2548_v55  ;;  %v789_v9 = vsel %vm788_vm13, %v786_v63, %v783_v57 }
 0x287   : > { %1482 = vperm.xlu2 %2102, %v2622_v23   ;;  %v2157_v41 = vpop.eup %2156  ;;  %2168 = vpow2.f32 %v874_v12  ;;  %877 = vst.msk [vmem:[#allocation2 + $0x8] sm:$0xff] %vm662_vm7, %v2155_v24  ;;  %v1021_v14 = vmul.f32 %v1004_v10, %v2530_v46  ;;  %v759_v12 = vmax.f32 %v2532_v48, 0.0  ;;  %v1009_v18 = vperm.slane %v897_v0, 0 }
 0x288   : > { %1488 = vperm.xlu1 %2101, %v2622_v23   ;;  %v2159_v53 = vpop.eup %2158  ;;  %879 = vst.msk [vmem:[#allocation2 + $0x18] sm:$0xff] %vm662_vm7, %v2157_v41  ;;  %v898_v54 = vrot.slane %v2607_v61, 6  ;;  %v1006_v21 = vperm.slane %v894_v3, 0  ;;  %v895_v41 = vrot.slane %v2607_v61, 3  ;;  %v1029_v3 = vmul.f32 %v1008_v56, %v2603_v60 }
 0x289   : > { %v2161_v59 = vpop.eup %2160  ;;  %881 = vst.msk [vmem:[#allocation2 + $0x28] sm:$0xff] %vm662_vm7, %v2159_v53  ;;  %v1063_v19 = vpop.permute.xlu2 %1062  ;;  %v791_v20 = vadd.f32 %v789_v9, %v759_v12  ;;  %v1030_v46 = vmul.f32 %v1009_v18, %v2556_v6  ;;  %v807_v53 = vrot.slane %v2564_v15, 3  ;;  %v1034_v6 = vmul.f32 %v1011_v50, %v997_v38 }
 0x28a   : > { %v2163_v62 = vpop.eup %2162  ;;  %884 = vst.msk [vmem:[#allocation2 + $0x40] sm:$0xff] %vm662_vm7, %v2161_v59  ;;  %v990_v55 = vpop.permute.xlu1 %989  ;;  %v1010_v10 = vperm.slane %v898_v54, 0  ;;  %v1024_v25 = vmul.f32 %v1006_v21, %v2528_v42  ;;  %v1025_v36 = vmul.f32 %v1006_v21, %v2550_v58  ;;  %v1007_v63 = vperm.slane %v895_v41, 0 }
 0x28b   : > { %v2165_v1 = vpop.eup %2164  ;;  %886 = vst.msk [vmem:[#allocation2 + $0x50] sm:$0xff] %vm662_vm7, %v2163_v62  ;;  %v2655_v24 = vsel %vm761_vm14, %v2532_v48, %v791_v20  ;;  %v1470_v57 = vpop.permute.xlu0 %1469  ;;  %v2677_v38 = vperm.slane %v807_v53, 0  ;;  %v893_v56 = vrot.slane %v2607_v61, 1  ;;  %v830_v9 = vmul.f32 %v2579_v35, %v2567_v16 }
 0x28c   : > { %v2167_v4 = vpop.eup %2166  ;;  %887 = vst.msk [vmem:[#allocation2 + $0x58] sm:$0xff] %vm662_vm7, %v2165_v1  ;;  %v2663_v59 = vmul.f32 %v2655_v24, %v2456_v13  ;;  %v1376_v62 = vperm.slane %v2655_v24, 0  ;;  %v1032_v48 = vmul.f32 %v1010_v10, %v2595_v52  ;;  %v1369_v42 = vrot.slane %v2655_v24, 1 }
 0x28d   : > { %v2169_v11 = vpop.eup %2168  ;;  %889 = vst.msk [vmem:[#allocation2 + $0x68] sm:$0xff] %vm662_vm7, %v2167_v4  ;;  %v1370_v58 = vrot.slane %v2655_v24, 2  ;;  %v1026_v1 = vmul.f32 %v1007_v63, %v2524_v40  ;;  %v1031_v4 = vmul.f32 %v1009_v18, %v2628_v51  ;;  %v828_v40 = vmul.f32 %v812_v26, %v2567_v16 }
 0x28e   : > { %891 = vst.msk [vmem:[#allocation2 + $0x78] sm:$0xff] %vm662_vm7, %v2169_v11  ;;  %v1393_v50 = vmul.f32 %v1376_v62, %v2569_v17  ;;  %v1568_v60 = vperm.slane %v2663_v59, 0  ;;  %v1033_v51 = vmul.f32 %v1010_v10, %v990_v55  ;;  %v832_v12 = vmul.f32 %v2581_v37, %v2567_v16  ;;  %v2709_v37 = vld [vmem:[#allocation3] sm:$0xff] }
 0x28f   : > { %1051 = vst.msk [vmem:[#allocation3 + $0x78] sm:$0xff] %vm662_vm7, %v1035_v2  ;;  %1495 = vperm.xlu2 %2102, %v2495_v30   ;;  %v1027_v2 = vmul.f32 %v1007_v63, %v2558_v8  ;;  %v1377_v8 = vperm.slane %v1369_v42, 0  ;;  %v1378_v11 = vperm.slane %v1370_v58, 0  ;;  %v1372_v61 = vrot.slane %v2655_v24, 4 }
 0x290   : > { %1044 = vst.msk [vmem:[#allocation3 + $0x40] sm:$0xff] %vm662_vm7, %v1028_v7  ;;  %2104 = vset.pattern.permute.xlu1 %v2341_v43  ;;  %v1458_v7 = vrot.slane %v2663_v59, 2  ;;  %v1584_v15 = vmul.f32 %v1568_v60, %v1470_v57  ;;  %v1410_v18 = vmul.f32 1.442695, %v1393_v50  ;;  %v834_v54 = vmul.f32 %v2677_v38, %v2567_v16 }
 0x291   : > { %1037 = vst.msk [vmem:[#allocation3 + $0x8] sm:$0xff] %vm662_vm7, %v1021_v14  ;;  %v1075_v0 = vpop.permute.xlu2 %1074  ;;  %v1371_v14 = vrot.slane %v2655_v24, 3  ;;  %v844_v20 = vmul.f32 1.442695, %v828_v40  ;;  %v1395_v21 = vmul.f32 %v1377_v8, %v2569_v17  ;;  %v1005_v55 = vperm.slane %v893_v56, 0 }
 0x292   : > { %1046 = vst.msk [vmem:[#allocation3 + $0x50] sm:$0xff] %vm662_vm7, %v1030_v46  ;;  %v2701_v35 = vperm.slane %v1458_v7, 0  ;;  %v848_v46 = vmul.f32 1.442695, %v830_v9  ;;  %v1397_v10 = vmul.f32 %v1378_v11, %v2569_v17  ;;  %v2713_v41 = vperm.slane %v2480_v27, 4 }
 0x293   : > { %1040 = vst.msk [vmem:[#allocation3 + $0x20] sm:$0xff] %vm662_vm7, %v1024_v25  ;;  %v2715_v53 = vperm.slane %v1371_v14, 0  ;;  %v1392_v57 = vmul.f32 %v1376_v62, %v2567_v16  ;;  %2170 = vpow2.f32 %v1410_v18  ;;  %v856_v42 = vmul.f32 1.442695, %v834_v54 }
 0x294   : > { %1041 = vst.msk [vmem:[#allocation3 + $0x28] sm:$0xff] %vm662_vm7, %v1025_v36  ;;  %v1414_v63 = vmul.f32 1.442695, %v1395_v21  ;;  %2172 = vpow2.f32 %v844_v20  ;;  %v1418_v50 = vmul.f32 1.442695, %v1397_v10  ;;  %v835_v56 = vmul.f32 %v2677_v38, %v2569_v17 }
 0x295   : > { %1048 = vst.msk [vmem:[#allocation3 + $0x60] sm:$0xff] %vm662_vm7, %v1032_v48  ;;  %v2720_v48 = vperm.slane %v1372_v61, 0  ;;  %2174 = vpow2.f32 %v848_v46  ;;  %v1408_v7 = vmul.f32 1.442695, %v1392_v57  ;;  %v837_v46 = vmul.f32 %v2584_v39, %v2569_v17 }
 0x296   : > { %1050 = vst.msk [vmem:[#allocation3 + $0x70] sm:$0xff] %vm662_vm7, %v1034_v6  ;;  %v1394_v6 = vmul.f32 %v1377_v8, %v2567_v16  ;;  %v858_v10 = vmul.f32 1.442695, %v835_v56 }
 0x297   : > { %2105 = vset.pattern.permute.xlu2 %v2349_v45  ;;  %1042 = vst.msk [vmem:[#allocation3 + $0x30] sm:$0xff] %vm662_vm7, %v1026_v1  ;;  %v1461_v1 = vrot.slane %v2663_v59, 5 }
 0x298   : > { %1508 = vperm.xlu1 %2104, %v2535_v49   ;;  %1043 = vst.msk [vmem:[#allocation3 + $0x38] sm:$0xff] %vm662_vm7, %v1027_v2  ;;  %v1022_v2 = vmul.f32 %v1005_v55, %v2511_v33  ;;  %v1400_v33 = vmul.f32 %v2720_v48, %v2567_v16  ;;  %v1412_v40 = vmul.f32 1.442695, %v1394_v6  ;;  %v1169_v6 = vld [vmem:[#allocation3 + $0x8] sm:$0xff] }
 0x299   : > { %1045 = vst.msk [vmem:[#allocation3 + $0x48] sm:$0xff] %vm662_vm7, %v1029_v3  ;;  %v1502_v26 = vpop.permute.xlu0 %1501  ;;  %v1396_v3 = vmul.f32 %v1378_v11, %v2567_v16  ;;  %v2740_v8 = vperm.slane %v1461_v1, 0  ;;  %v2171_v9 = vpop.eup %2170 }
 0x29a   : > { %v1057_v52 = vpop.permute.xlu1 %1056  ;;  %1047 = vst.msk [vmem:[#allocation3 + $0x58] sm:$0xff] %vm662_vm7, %v1031_v4  ;;  %v1589_v25 = vmul.f32 %v2701_v35, %v1502_v26  ;;  %v1398_v4 = vmul.f32 %v2715_v53, %v2567_v16  ;;  %v1374_v26 = vrot.slane %v2655_v24, 6  ;;  %v1424_v54 = vmul.f32 1.442695, %v1400_v33 }
 0x29b   : > { %1149 = vst.msk [vmem:[#allocation4 + $0x8] sm:$0xff] %vm662_vm7, %v1063_v19  ;;  %v852_v19 = vmul.f32 1.442695, %v832_v12  ;;  %v2726_v62 = vld [vmem:[#allocation3 + $0x28] sm:$0xff]  ;;  %v1416_v11 = vmul.f32 1.442695, %v1396_v3  ;;  %v1399_v3 = vmul.f32 %v2715_v53, %v2569_v17 }
 0x29c   : > { %1049 = vst.msk [vmem:[#allocation3 + $0x68] sm:$0xff] %vm662_vm7, %v1033_v51  ;;  %v1420_v12 = vmul.f32 1.442695, %v1398_v4 }
 0x29d   : > { %1600 = vst.msk [vmem:[#allocation3] sm:$0xff] %vm662_vm7, %v1584_v15  ;;  %2176 = vpow2.f32 %v852_v19  ;;  %v2173_v15 = vpop.eup %2172  ;;  %v1375_v19 = vrot.slane %v2655_v24, 7 }
 0x29e   : > { %1151 = vst.msk [vmem:[#allocation4 + $0x18] sm:$0xff] %vm662_vm7, %v1075_v0  ;;  %v1023_v0 = vmul.f32 %v1005_v55, %v2515_v34  ;;  %2178 = vpow2.f32 %v856_v42  ;;  %v1165_v34 = vld [vmem:[#allocation2 + $0x8] sm:$0xff]  ;;  %v2175_v18 = vpop.eup %2174  ;;  %v2753_v55 = vld [vmem:[#allocation3 + $0x50] sm:$0xff]  ;;  %v1187_v42 = vld [vmem:[#allocation2 + $0x18] sm:$0xff] }
 0x29f   : > { %1514 = vperm.xlu2 %2105, %v2535_v49   ;;  %1148 = vst.msk [vmem:[#allocation4] sm:$0xff] %vm662_vm7, %v1057_v52  ;;  %v1373_v52 = vrot.slane %v2655_v24, 5  ;;  %2180 = vpow2.f32 %v1414_v63  ;;  %v1167_v20 = vmul.f32 0.0, %v1165_v34  ;;  %v842_v63 = vmul.f32 %v2588_v47, %v2567_v16 }
 0x2a0   : > { %1521 = vperm.xlu1 %2104, %v2713_v41   ;;  %1605 = vst.msk [vmem:[#allocation3 + $0x28] sm:$0xff] %vm662_vm7, %v1589_v25  ;;  %2182 = vpow2.f32 %v1418_v50  ;;  %v862_v50 = vmul.f32 1.442695, %v837_v46  ;;  %v1383_v4 = vperm.slane %v1375_v19, 0 }
 0x2a1   : > { %v1093_v36 = vpop.permute.xlu2 %1092  ;;  %1038 = vst.msk [vmem:[#allocation3 + $0x10] sm:$0xff] %vm662_vm7, %v1022_v2  ;;  %2184 = vpow2.f32 %v1408_v7  ;;  %v1381_v38 = vperm.slane %v1373_v52, 0  ;;  %v2766_v2 = vadd.f32 %v1169_v6, %v1167_v20  ;;  %v2790_v20 = vld [vmem:[#allocation2 + $0x40] sm:$0xff] }
 0x2a2   : > { %v1069_v58 = vpop.permute.xlu1 %1068  ;;  %1154 = vst.msk [vmem:[#allocation4 + $0x30] sm:$0xff] %vm662_vm7, %v1093_v36  ;;  %2186 = vpow2.f32 %v1412_v40  ;;  %v840_v36 = vmul.f32 %v2586_v44, %v2567_v16  ;;  %v2768_v44 = vld [vmem:[#allocation2 + $0x28] sm:$0xff]  ;;  %v872_v40 = vmul.f32 1.442695, %v842_v63  ;;  %v1407_v46 = vmul.f32 %v1383_v4, %v2569_v17 }
 0x2a3   : > { %1150 = vst.msk [vmem:[#allocation4 + $0x10] sm:$0xff] %vm662_vm7, %v1069_v58  ;;  %v2177_v21 = vpop.eup %2176  ;;  %2188 = vpow2.f32 %v1416_v11  ;;  %v1382_v58 = vperm.slane %v1374_v26, 0  ;;  %v1402_v1 = vmul.f32 %v1381_v38, %v2567_v16  ;;  %v1403_v7 = vmul.f32 %v1381_v38, %v2569_v17 }
 0x2a4   : > { %1039 = vst.msk [vmem:[#allocation3 + $0x18] sm:$0xff] %vm662_vm7, %v1023_v0  ;;  %v2179_v25 = vpop.eup %2178  ;;  %2190 = vpow2.f32 %v1420_v12  ;;  %v868_v0 = vmul.f32 1.442695, %v840_v36  ;;  %v1422_v26 = vmul.f32 1.442695, %v1399_v3  ;;  %v1462_v12 = vrot.slane %v2663_v59, 6 }
 0x2a5   : > { %876 = vst.msk [vmem:[#allocation2] sm:$0xff] %vm662_vm7, %v2173_v15  ;;  %v2181_v57 = vpop.eup %2180  ;;  %2192 = vpow2.f32 %v1424_v54  ;;  %v1405_v53 = vmul.f32 %v1382_v58, %v2569_v17  ;;  %v1428_v56 = vmul.f32 1.442695, %v1402_v1  ;;  %v1401_v15 = vmul.f32 %v2720_v48, %v2569_v17 }
 0x2a6   : > { %878 = vst.msk [vmem:[#allocation2 + $0x10] sm:$0xff] %vm662_vm7, %v2175_v18  ;;  %v2183_v39 = vpop.eup %2182  ;;  %2194 = vpow2.f32 %v858_v10  ;;  %v1404_v18 = vmul.f32 %v1382_v58, %v2567_v16  ;;  %v1406_v48 = vmul.f32 %v1383_v4, %v2567_v16  ;;  %v1430_v10 = vmul.f32 1.442695, %v1403_v7  ;;  %v2810_v4 = vld [vmem:[#allocation3 + $0x68] sm:$0xff] }
 0x2a7   : > { %1527 = vperm.xlu2 %2105, %v2713_v41   ;;  %880 = vst.msk [vmem:[#allocation2 + $0x20] sm:$0xff] %vm662_vm7, %v2177_v21  ;;  %v2185_v24 = vpop.eup %2184  ;;  %2196 = vpow2.f32 %v862_v50  ;;  %v1426_v6 = vmul.f32 1.442695, %v1401_v15 }
 0x2a8   : > { %2107 = vset.pattern.permute.xlu1 %v2349_v45  ;;  %882 = vst.msk [vmem:[#allocation2 + $0x30] sm:$0xff] %vm662_vm7, %v2179_v25  ;;  %v2187_v47 = vpop.eup %2186  ;;  %2198 = vpow2.f32 %v868_v0  ;;  %v1191_v16 = vld [vmem:[#allocation3 + $0x10] sm:$0xff]  ;;  %v1432_v17 = vmul.f32 1.442695, %v1404_v18  ;;  %v1438_v0 = vmul.f32 1.442695, %v1407_v46 }
 0x2a9   : > { %v1105_v51 = vpop.permute.xlu2 %1104  ;;  %v1535_v14 = vpop.permute.xlu0 %1534  ;;  %1441 = vst.msk [vmem:[#allocation2 + $0x8] sm:$0xff] %vm662_vm7, %v2171_v9  ;;  %2200 = vpow2.f32 %v872_v40  ;;  %v1215_v40 = vld [vmem:[#allocation3 + $0x20] sm:$0xff] }
 0x2aa   : > { %1156 = vst.msk [vmem:[#allocation4 + $0x40] sm:$0xff] %vm662_vm7, %v1105_v51  ;;  %v1594_v61 = vmul.f32 %v2740_v8, %v1535_v14  ;;  %v2189_v34 = vpop.eup %2188  ;;  %v1189_v51 = vmul.f32 %v1187_v42, %v2766_v2  ;;  %2202 = vpow2.f32 %v1428_v56  ;;  %v2799_v42 = vperm.slane %v1462_v12, 0  ;;  %v1282_v56 = vld [vmem:[#allocation2 + $0x50] sm:$0xff] }
 0x2ab   : > { %1443 = vst.msk [vmem:[#allocation2 + $0x18] sm:$0xff] %vm662_vm7, %v2181_v57  ;;  %v2191_v14 = vpop.eup %2190  ;;  %v1192_v25 = vld [vmem:[#allocation3 + $0x18] sm:$0xff]  ;;  %2204 = vpow2.f32 %v1422_v26 }
 0x2ac   : > { %1610 = vst.msk [vmem:[#allocation3 + $0x50] sm:$0xff] %vm662_vm7, %v1594_v61  ;;  %v1164_v52 = vld [vmem:[#allocation2] sm:$0xff]  ;;  %v2193_v61 = vpop.eup %2192  ;;  %v2796_v19 = vadd.f32 %v1192_v25, %v1189_v51  ;;  %2206 = vpow2.f32 %v1430_v10 }
 0x2ad   : > { %1445 = vst.msk [vmem:[#allocation2 + $0x28] sm:$0xff] %vm662_vm7, %v2183_v39  ;;  %v1166_v9 = vmul.f32 0.0, %v1164_v52  ;;  %v1186_v11 = vld [vmem:[#allocation2 + $0x10] sm:$0xff]  ;;  %v2195_v21 = vpop.eup %2194 }
 0x2ae   : > { %1440 = vst.msk [vmem:[#allocation2] sm:$0xff] %vm662_vm7, %v2185_v24  ;;  %v1210_v54 = vld [vmem:[#allocation2 + $0x20] sm:$0xff]  ;;  %v2197_v1 = vpop.eup %2196  ;;  %v1436_v24 = vmul.f32 1.442695, %v1406_v48  ;;  %v1213_v52 = vmul.f32 %v2768_v44, %v2796_v19  ;;  %v1239_v48 = vld [vmem:[#allocation3 + $0x30] sm:$0xff] }
 0x2af   : > { %2108 = vset.pattern.permute.xlu2 %v2341_v43  ;;  %1442 = vst.msk [vmem:[#allocation2 + $0x10] sm:$0xff] %vm662_vm7, %v2187_v47  ;;  %v2787_v38 = vadd.f32 %v2709_v37, %v1166_v9  ;;  %v1234_v36 = vld [vmem:[#allocation2 + $0x30] sm:$0xff]  ;;  %v1434_v37 = vmul.f32 1.442695, %v1405_v53  ;;  %v2199_v47 = vpop.eup %2198 }
 0x2b0   : > { %1540 = vperm.xlu1 %2107, %v2501_v31   ;;  %1444 = vst.msk [vmem:[#allocation2 + $0x20] sm:$0xff] %vm662_vm7, %v2189_v34 }
 0x2b1   : > { %v1188_v57 = vmul.f32 %v1186_v11, %v2787_v38  ;;  %1446 = vst.msk [vmem:[#allocation2 + $0x30] sm:$0xff] %vm662_vm7, %v2191_v14  ;;  %2208 = vpow2.f32 %v1434_v37  ;;  %v1218_v11 = vadd.f32 %v2726_v62, %v1213_v52  ;;  %v1283_v14 = vld [vmem:[#allocation2 + $0x58] sm:$0xff]  ;;  %v2847_v52 = vpop.f32.mrf.mxu1 }
 0x2b2   : > { %v1087_v33 = vpop.permute.xlu1 %1086  ;;  %1448 = vst.msk [vmem:[#allocation2 + $0x40] sm:$0xff] %vm662_vm7, %v2193_v61  ;;  %2210 = vpow2.f32 %v1426_v6  ;;  %v2825_v61 = vld [vmem:[#allocation2 + $0x68] sm:$0xff]  ;;  %v2835_v37 = vld [vmem:[#allocation2 + $0x78] sm:$0xff] }
 0x2b3   : > { %1153 = vst.msk [vmem:[#allocation4 + $0x28] sm:$0xff] %vm662_vm7, %v1087_v33  ;;  %v2802_v58 = vadd.f32 %v1191_v16, %v1188_v57  ;;  %v2201_v33 = vpop.eup %2200  ;;  %2212 = vpow2.f32 %v1432_v17  ;;  %v1240_v57 = vld [vmem:[#allocation3 + $0x38] sm:$0xff]  ;;  %v1220_v17 = vld [vmem:[#allocation4 + $0x20] sm:$0xff] }
 0x2b4   : > { %883 = vst.msk [vmem:[#allocation2 + $0x38] sm:$0xff] %vm662_vm7, %v2195_v21  ;;  %v2203_v34 = vpop.eup %2202  ;;  %2214 = vpow2.f32 %v1436_v24 }
 0x2b5   : > { %v1212_v7 = vmul.f32 %v1210_v54, %v2802_v58  ;;  %885 = vst.msk [vmem:[#allocation2 + $0x48] sm:$0xff] %vm662_vm7, %v2197_v1  ;;  %v2205_v9 = vpop.eup %2204  ;;  %2216 = vpow2.f32 %v1438_v0 }
 0x2b6   : > { %888 = vst.msk [vmem:[#allocation2 + $0x60] sm:$0xff] %vm662_vm7, %v2199_v47  ;;  %v2207_v44 = vpop.eup %2206  ;;  %v1196_v47 = vld [vmem:[#allocation4 + $0x10] sm:$0xff] }
 0x2b7   : > { %1547 = vperm.xlu2 %2108, %v2508_v32   ;;  %v2816_v53 = vadd.f32 %v1215_v40, %v1212_v7  ;;  %890 = vst.msk [vmem:[#allocation2 + $0x70] sm:$0xff] %vm662_vm7, %v2201_v33  ;;  %v2209_v15 = vpop.eup %2208  ;;  %v1264_v7 = vld [vmem:[#allocation3 + $0x48] sm:$0xff]  ;;  %v1172_v33 = vld [vmem:[#allocation4] sm:$0xff] }
 0x2b8   : > { %2110 = vset.pattern.permute.xlu1 %v2472_v22  ;;  %1450 = vst.msk [vmem:[#allocation2 + $0x50] sm:$0xff] %vm662_vm7, %v2203_v34  ;;  %v2211_v18 = vpop.eup %2210 }
 0x2b9   : > { %v1111_v63 = vpop.permute.xlu2 %1110  ;;  %v1554_v39 = vpop.permute.xlu0 %1553  ;;  %v1236_v12 = vmul.f32 %v1234_v36, %v2816_v53  ;;  %1451 = vst.msk [vmem:[#allocation2 + $0x58] sm:$0xff] %vm662_vm7, %v2207_v44 }
 0x2ba   : > { %1157 = vst.msk [vmem:[#allocation4 + $0x48] sm:$0xff] %vm662_vm7, %v1111_v63  ;;  %v1099_v3 = vpop.permute.xlu1 %1098  ;;  %v1597_v50 = vmul.f32 %v2799_v42, %v1554_v39  ;;  %v2213_v62 = vpop.eup %2212  ;;  %v1221_v0 = vld [vmem:[#allocation4 + $0x28] sm:$0xff] }
 0x2bb   : > { %1155 = vst.msk [vmem:[#allocation4 + $0x38] sm:$0xff] %vm662_vm7, %v1099_v3  ;;  %v1235_v51 = vld [vmem:[#allocation2 + $0x38] sm:$0xff]  ;;  %v2215_v21 = vpop.eup %2214  ;;  %v1241_v25 = vadd.f32 %v1239_v48, %v1236_v12  ;;  %v1263_v3 = vld [vmem:[#allocation3 + $0x40] sm:$0xff]  ;;  %v1223_v44 = vmul.f32 %v1221_v0, %v1218_v11  ;;  %v1174_v12 = vmul.f32 %v1172_v33, %v2787_v38 }
 0x2bc   : > { %1613 = vst.msk [vmem:[#allocation3 + $0x68] sm:$0xff] %vm662_vm7, %v1597_v50  ;;  %v1237_v54 = vmul.f32 %v1235_v51, %v1218_v11  ;;  %v1259_v46 = vld [vmem:[#allocation2 + $0x48] sm:$0xff]  ;;  %v2217_v10 = vpop.eup %2216 }
 0x2bd   : > { %1447 = vst.msk [vmem:[#allocation2 + $0x38] sm:$0xff] %vm662_vm7, %v2205_v9  ;;  %v2833_v36 = vld [vmem:[#allocation2 + $0x60] sm:$0xff]  ;;  %v1260_v63 = vmul.f32 %v2790_v20, %v1241_v25  ;;  %v1197_v20 = vld [vmem:[#allocation4 + $0x18] sm:$0xff]  ;;  %v1198_v9 = vmul.f32 %v1196_v47, %v2802_v58  ;;  %v1225_v48 = vsel %vm662_vm7, %v1223_v44, 0.0 }
 0x2be   : > { %1453 = vst.msk [vmem:[#allocation2 + $0x68] sm:$0xff] %vm662_vm7, %v2209_v15  ;;  %v2837_v6 = vld [vmem:[#allocation2 + $0x70] sm:$0xff]  ;;  %v1242_v16 = vadd.f32 %v1240_v57, %v1237_v54 }
 0x2bf   : > { %2111 = vset.pattern.permute.xlu2 %v2492_v29  ;;  %1449 = vst.msk [vmem:[#allocation2 + $0x48] sm:$0xff] %vm662_vm7, %v2211_v18  ;;  %v1265_v50 = vadd.f32 %v1263_v3, %v1260_v63  ;;  %v1199_v18 = vmul.f32 %v1197_v20, %v2796_v19  ;;  %v1244_v54 = vld [vmem:[#allocation4 + $0x30] sm:$0xff]  ;;  %v1288_v19 = vld [vmem:[#allocation3 + $0x58] sm:$0xff] }
 0x2c0   : > { %1620 = vperm.xlu1 %2110, %v2483_v28   ;;  %1452 = vst.msk [vmem:[#allocation2 + $0x60] sm:$0xff] %vm662_vm7, %v2213_v62  ;;  %v1261_v24 = vmul.f32 %v1259_v46, %v1242_v16  ;;  %v1222_v62 = vmul.f32 %v1220_v17, %v2816_v53  ;;  %v1246_v38 = vmul.f32 %v1244_v54, %v1241_v25  ;;  %v1268_v46 = vld [vmem:[#allocation4 + $0x40] sm:$0xff] }
 0x2c1   : > { %v1123_v26 = vpop.permute.xlu2 %1122  ;;  %1454 = vst.msk [vmem:[#allocation2 + $0x70] sm:$0xff] %vm662_vm7, %v2215_v21  ;;  %v1284_v15 = vmul.f32 %v1282_v56, %v1265_v50  ;;  %v1200_v56 = vsel %vm662_vm7, %v1198_v9, 0.0  ;;  %v1270_v3 = vmul.f32 %v1268_v46, %v1265_v50  ;;  %v1316_v46 = vld [vmem:[#allocation4 + $0x60] sm:$0xff] }
 0x2c2   : > { %1159 = vst.msk [vmem:[#allocation4 + $0x58] sm:$0xff] %vm662_vm7, %v1123_v26  ;;  %v1266_v40 = vadd.f32 %v1264_v7, %v1261_v24  ;;  %v1245_v34 = vld [vmem:[#allocation4 + $0x38] sm:$0xff]  ;;  %v2069_v26 = vmul.f32 -1.442695, %v2847_v52  ;;  %v1224_v57 = vsel %vm662_vm7, %v1222_v62, 0.0  ;;  %v1248_v47 = vsel %vm662_vm7, %v1246_v38, 0.0 }
 0x2c3   : > { %1455 = vst.msk [vmem:[#allocation2 + $0x78] sm:$0xff] %vm662_vm7, %v2217_v10  ;;  %v1247_v21 = vmul.f32 %v1245_v34, %v1242_v16  ;;  %v1289_v53 = vadd.f32 %v2753_v55, %v1284_v15  ;;  %v1201_v10 = vsel %vm662_vm7, %v1199_v18, 0.0  ;;  %v1269_v16 = vld [vmem:[#allocation4 + $0x48] sm:$0xff]  ;;  %v1226_v24 = vadd.f32 %v1225_v48, %v1224_v57 }
 0x2c4   : > { %v1285_v58 = vmul.f32 %v1283_v14, %v1266_v40  ;;  %2218 = vpow2.f32 %v2069_v26  ;;  %v1271_v63 = vmul.f32 %v1269_v16, %v1266_v40  ;;  %v1202_v25 = vadd.f32 %v1201_v10, %v1200_v56 }
 0x2c5   : > { %v1308_v33 = vmul.f32 %v2833_v36, %v1289_v53  ;;  %v1457_v36 = vrot.slane %v2663_v59, 1  ;;  %v1272_v15 = vsel %vm662_vm7, %v1270_v3, 0.0  ;;  %v2881_v48 = vperm.slane %v2480_v27, 7 }
 0x2c6   : > { %v1273_v40 = vsel %vm662_vm7, %v1271_v63, 0.0  ;;  %v1203_v44 = vrot.slane %v1202_v25, 4 }
 0x2c7   : > { %1626 = vperm.xlu2 %2111, %v2483_v28   ;;  %v1173_v28 = vld [vmem:[#allocation4 + $0x8] sm:$0xff]  ;;  %v1274_v26 = vadd.f32 %v1273_v40, %v1272_v15  ;;  %v2883_v38 = vperm.slane %v1457_v36, 0 }
 0x2c8   : > { %1632 = vperm.xlu1 %2110, %v2622_v23   ;;  %v1175_v11 = vmul.f32 %v1173_v28, %v2766_v2  ;;  %v1249_v2 = vsel %vm662_vm7, %v1247_v21, 0.0 }
 0x2c9   : > { %v1645_v39 = vpop.permute.xlu0 %1644  ;;  %v1293_v17 = vld [vmem:[#allocation4 + $0x58] sm:$0xff]  ;;  %v1250_v28 = vadd.f32 %v1249_v2, %v1248_v47 }
 0x2ca   : > { %v1117_v1 = vpop.permute.xlu1 %1116  ;;  %1716 = vst.msk [vmem:[#allocation4 + $0x20] sm:$0xff] %vm662_vm7, %v1645_v39  ;;  %v1290_v39 = vadd.f32 %v1288_v19, %v1285_v58  ;;  %v1177_v55 = vsel %vm662_vm7, %v1175_v11, 0.0  ;;  %v2219_v9 = vpop.eup %2218  ;;  %v1204_v11 = vadd.f32 %v1203_v44, %v1202_v25 }
 0x2cb   : > { %1158 = vst.msk [vmem:[#allocation4 + $0x50] sm:$0xff] %vm662_vm7, %v1117_v1  ;;  %v2878_v58 = vadd.f32 1.0, %v2219_v9  ;;  %v1958_v9 = vld [vmem:[%s3057_s11 + $0x8] sm:$0xff] }
 0x2cc   : > { %v1295_v7 = vmul.f32 %v1293_v17, %v1290_v39  ;;  %v1309_v18 = vmul.f32 %v2825_v61, %v1290_v39 }
 0x2cd   : > { %2220 = vrcp.f32 %v2878_v58  ;;  %vm1928_vm9 = vweird.f32 %v2878_v58 }
 0x2cf   : > { %1638 = vperm.xlu2 %2111, %v2622_v23   ;;  %v1176_v23 = vsel %vm662_vm7, %v1174_v12, 0.0  ;;  %v1297_v12 = vsel %vm662_vm7, %v1295_v7, 0.0  ;;  %v1335_v7 = vld [vmem:[#allocation3 + $0x70] sm:$0xff] }
 0x2d0   : > { %2113 = vset.pattern.permute.xlu1 %v2492_v29  ;;  %v1178_v20 = vadd.f32 %v1177_v55, %v1176_v23  ;;  %v1314_v23 = vadd.f32 %v2810_v4, %v1309_v18  ;;  %v1205_v4 = vrot.slane %v1204_v11, 2 }
 0x2d1   : > { %v1141_v51 = vpop.permute.xlu2 %1140 }
 0x2d2   : > { %1162 = vst.msk [vmem:[#allocation4 + $0x70] sm:$0xff] %vm662_vm7, %v1141_v51  ;;  %v1292_v14 = vld [vmem:[#allocation4 + $0x50] sm:$0xff]  ;;  %v1227_v51 = vrot.slane %v1226_v24, 4  ;;  %v1179_v54 = vrot.slane %v1178_v20, 4  ;;  %v1333_v3 = vmul.f32 %v2835_v37, %v1314_v23  ;;  %v1336_v37 = vld [vmem:[#allocation3 + $0x78] sm:$0xff] }
 0x2d3   : > { %v1294_v1 = vmul.f32 %v1292_v14, %v1289_v53  ;;  %v1275_v53 = vrot.slane %v1274_v26, 4 }
 0x2d4   : > { %v1228_v56 = vadd.f32 %v1227_v51, %v1226_v24  ;;  %v1180_v61 = vadd.f32 %v1179_v54, %v1178_v20  ;;  %v1338_v51 = vadd.f32 %v1336_v37, %v1333_v3  ;;  %v1459_v37 = vrot.slane %v2663_v59, 3 }
 0x2d5   : > { %v1296_v50 = vsel %vm662_vm7, %v1294_v1, 0.0  ;;  %v1276_v1 = vadd.f32 %v1275_v53, %v1274_v26 }
 0x2d6   : > { %v1298_v21 = vadd.f32 %v1297_v12, %v1296_v50  ;;  %v1229_v39 = vrot.slane %v1228_v56, 2  ;;  %v1181_v55 = vrot.slane %v1180_v61, 2 }
 0x2d7   : > { %2114 = vset.pattern.permute.xlu2 %v2341_v43  ;;  %v1311_v43 = vld [vmem:[#allocation3 + $0x60] sm:$0xff]  ;;  %v1277_v44 = vrot.slane %v1276_v1, 2 }
 0x2d8   : > { %1650 = vperm.xlu1 %2113, %v2495_v30   ;;  %v1313_v62 = vadd.f32 %v1311_v43, %v1308_v33  ;;  %v1251_v30 = vrot.slane %v1250_v28, 4  ;;  %v1299_v17 = vrot.slane %v1298_v21, 4  ;;  %v1230_v40 = vadd.f32 %v1229_v39, %v1228_v56  ;;  %v2905_v43 = vpop.eup %2220 }
 0x2d9   : > { %v1663_v0 = vpop.permute.xlu0 %1662  ;;  %v1340_v33 = vld [vmem:[#allocation4 + $0x70] sm:$0xff]  ;;  %v1182_v26 = vadd.f32 %v1181_v55, %v1180_v61  ;;  %vm1929_vm8 = vweird.f32 %v2905_v43 }
 0x2da   : > { %v1135_v34 = vpop.permute.xlu1 %1134  ;;  %1719 = vst.msk [vmem:[#allocation4 + $0x38] sm:$0xff] %vm662_vm7, %v1663_v0  ;;  %v1318_v10 = vmul.f32 %v1316_v46, %v1313_v62  ;;  %v1252_v57 = vadd.f32 %v1251_v30, %v1250_v28  ;;  %v1332_v63 = vmul.f32 %v2837_v6, %v1313_v62  ;;  %v1300_v47 = vadd.f32 %v1299_v17, %v1298_v21  ;;  %v1960_v6 = vld [vmem:[%s3057_s11 + $0x18] sm:$0xff]  ;;  %v1957_v30 = vld [vmem:[%s3057_s11] sm:$0xff]  ;;  %vm1930_vm10 = vmor %vm1928_vm9, %vm1929_vm8 }
 0x2db   : > { %1161 = vst.msk [vmem:[#allocation4 + $0x68] sm:$0xff] %vm662_vm7, %v1135_v34  ;;  %1981 = vmatpush.msrb.mxu1 %v1960_v6  ;;  %v1959_v34 = vld [vmem:[%s3057_s11 + $0x10] sm:$0xff]  ;;  %v1206_v28 = vadd.f32 %v1205_v4, %v1204_v11  ;;  %v1231_v56 = vrot.slane %v1230_v40, 1 }
 0x2dc   : > { %v1320_v25 = vsel %vm662_vm7, %v1318_v10, 0.0  ;;  %v1337_v20 = vadd.f32 %v1335_v7, %v1332_v63  ;;  %v1301_v18 = vrot.slane %v1300_v47, 2 }
 0x2dd   : > { %1982 = vmatpush.msrb.mxu1 %v1959_v34  ;;  %v1207_v11 = vrot.slane %v1206_v28, 1  ;;  %v1232_v39 = vadd.f32 %v1231_v56, %v1230_v40 }
 0x2de   : > { %v1342_v36 = vmul.f32 %v1340_v33, %v1337_v20 }
 0x2df   : > { %1560 = vperm.xlu2 %2114, %v2881_v48   ;;  %1983 = vmatpush.msrb.mxu1 %v1958_v9  ;;  %v1208_v63 = vadd.f32 %v1207_v11, %v1206_v28 }
 0x2e0   : > { %2115 = vset.pattern.permute.xlu1 %v2349_v45  ;;  %v1253_v45 = vrot.slane %v1252_v57, 2  ;;  %v1344_v10 = vsel %vm662_vm7, %v1342_v36, 0.0 }
 0x2e1   : > { %v1483_v19 = vpop.permute.xlu2 %1482  ;;  %1984 = vmatpush.msrb.mxu1 %v1957_v30 }
 0x2e2   : > { %v1147_v16 = vpop.permute.xlu1 %1146  ;;  %v1586_v14 = vmul.f32 %v2883_v38, %v1483_v19  ;;  %v1317_v2 = vld [vmem:[#allocation4 + $0x68] sm:$0xff]  ;;  %v1254_v12 = vadd.f32 %v1253_v45, %v1252_v57  ;;  %v1183_v57 = vrot.slane %v1182_v26, 1 }
 0x2e3   : > { %1163 = vst.msk [vmem:[#allocation4 + $0x78] sm:$0xff] %vm662_vm7, %v1147_v16  ;;  %v1319_v27 = vmul.f32 %v1317_v2, %v1314_v23  ;;  %v1278_v23 = vadd.f32 %v1277_v44, %v1276_v1  ;;  %v1924_v2 = vmul.f32 %v2905_v43, %v2878_v58 }
 0x2e4   : > { %1602 = vst.msk [vmem:[#allocation3 + $0x10] sm:$0xff] %vm662_vm7, %v1586_v14  ;;  %v1255_v16 = vrot.slane %v1254_v12, 1  ;;  %v1302_v14 = vadd.f32 %v1301_v18, %v1300_v47  ;;  %v1184_v1 = vadd.f32 %v1183_v57, %v1182_v26 }
 0x2e5   : > { %v1321_v24 = vsel %vm662_vm7, %v1319_v27, 0.0  ;;  %v1925_v45 = vsub.f32 1.0, %v1924_v2 }
 0x2e6   : > { %v1322_v0 = vadd.f32 %v1321_v24, %v1320_v25  ;;  %v1256_v25 = vadd.f32 %v1255_v16, %v1254_v12  ;;  %v1303_v24 = vrot.slane %v1302_v14, 1  ;;  %v1354_v7 = vsel %vm1353_vm15, %v1184_v1, %v1208_v63 }
 0x2e7   : > { %2116 = vset.pattern.permute.xlu2 %v2472_v22  ;;  %v1356_v6 = vsel %vm1355_vm1, %v1354_v7, %v1232_v39  ;;  %v1926_v40 = vmul.f32 %v2905_v43, %v1925_v45  ;;  %v1571_v12 = vperm.slane %v1459_v37, 0  ;;  %v1463_v63 = vrot.slane %v2663_v59, 7 }
 0x2e8   : > { %v1323_v50 = vrot.slane %v1322_v0, 4  ;;  %1566 = vperm.xlu1 %2115, %v2881_v48   ;;  %v1358_v34 = vsel %vm1357_vm2, %v1356_v6, %v1256_v25  ;;  %v1728_v25 = vld [vmem:[#allocation2] sm:$0xff] }
 0x2e9   : > { %v1693_v15 = vpop.permute.xlu0 %1692  ;;  %v1496_v46 = vpop.permute.xlu2 %1495 }
 0x2ea   : > { %v1324_v62 = vadd.f32 %v1323_v50, %v1322_v0  ;;  %v1341_v54 = vld [vmem:[#allocation4 + $0x78] sm:$0xff]  ;;  %1724 = vst.msk [vmem:[#allocation4 + $0x60] sm:$0xff] %vm662_vm7, %v1693_v15  ;;  %v1588_v53 = vmul.f32 %v2701_v35, %v1496_v46  ;;  %v1279_v35 = vrot.slane %v1278_v23, 1  ;;  %v1927_v15 = vadd.f32 %v2905_v43, %v1926_v40  ;;  %v2951_v46 = vld [vmem:[%s3056_s10] ss:$0 sm:$0xff] }
 0x2eb   : > { %v1343_v21 = vmul.f32 %v1341_v54, %v1338_v51 }
 0x2ec   : > { %v1325_v19 = vrot.slane %v1324_v62, 2  ;;  %1604 = vst.msk [vmem:[#allocation3 + $0x20] sm:$0xff] %vm662_vm7, %v1588_v53  ;;  %v1280_v20 = vadd.f32 %v1279_v35, %v1278_v23  ;;  %v1931_v56 = vsel %vm1930_vm10, %v2905_v43, %v1927_v15  ;;  %v1911_v43 = vmul.f32 %v2951_v46, %v2440_v5 }
 0x2ed   : > { %v1345_v61 = vsel %vm662_vm7, %v1343_v21, 0.0  ;;  %v1932_v21 = vand.u32 2147483647, %v2878_v58 }
 0x2ee   : > { %v1346_v17 = vadd.f32 %v1345_v61, %v1344_v10  ;;  %v1326_v27 = vadd.f32 %v1325_v19, %v1324_v62  ;;  %v1360_v9 = vsel %vm1359_vm3, %v1358_v34, %v1280_v20  ;;  %v1934_v62 = vand.u32 2147483648, %v2878_v58  ;;  %v1750_v20 = vld [vmem:[#allocation2 + $0x18] sm:$0xff] }
 0x2ef   : > { %1656 = vperm.xlu2 %2116, %v2535_v49   ;;  %v1304_v49 = vadd.f32 %v1303_v24, %v1302_v14  ;;  %vm1933_vm11 = vcmp.eq.f32.partialorder %v1932_v21, 8.507059e+37  ;;  %v1729_v24 = vld [vmem:[#allocation2 + $0x8] sm:$0xff] }
 0x2f0   : > { %v1347_v4 = vrot.slane %v1346_v17, 4  ;;  %v1327_v47 = vrot.slane %v1326_v27, 1  ;;  %2118 = vset.pattern.permute.xlu1 %v2472_v22  ;;  %v1935_v58 = vor.u32 1.1754944e-38, %v1934_v62  ;;  %v1731_v45 = vmul.f32 0.0, %v1729_v24 }
 0x2f1   : > { %v1362_v51 = vsel %vm1361_vm4, %v1360_v9, %v1304_v49  ;;  %v1749_v49 = vld [vmem:[#allocation2 + $0x10] sm:$0xff] }
 0x2f2   : > { %v1348_v3 = vadd.f32 %v1347_v4, %v1346_v17  ;;  %v1476_v55 = vpop.permute.xlu1 %1475  ;;  %v1328_v50 = vadd.f32 %v1327_v47, %v1326_v27  ;;  %v1936_v19 = vsel %vm1933_vm11, %v1935_v58, %v1931_v56  ;;  %v1575_v4 = vperm.slane %v1463_v63, 0  ;;  %v1732_v47 = vld [vmem:[#allocation3] sm:$0xff]  ;;  %v1792_v56 = vld [vmem:[#allocation2 + $0x38] sm:$0xff]  ;;  %v1837_v63 = vld [vmem:[#allocation3 + $0x50] sm:$0xff] }
 0x2f3   : > { %v1585_v0 = vmul.f32 %v1568_v60, %v1476_v55  ;;  %v1953_v61 = vmul.f32 %v1936_v19, %v2847_v52 }
 0x2f4   : > { %v1349_v33 = vrot.slane %v1348_v3, 2  ;;  %v1364_v26 = vsel %vm1363_vm5, %v1362_v51, %v1328_v50  ;;  %v1770_v51 = vld [vmem:[#allocation2 + $0x20] sm:$0xff] }
 0x2f5   : > { %1601 = vst.msk [vmem:[#allocation3 + $0x8] sm:$0xff] %vm662_vm7, %v1585_v0 }
 0x2f6   : > { %v1350_v28 = vadd.f32 %v1349_v33, %v1348_v3  ;;  %v1730_v3 = vmul.f32 0.0, %v1728_v25 }
 0x2f7   : > { %2119 = vset.pattern.permute.xlu2 %v2492_v29 }
 0x2f8   : > { %v1351_v60 = vrot.slane %v1350_v28, 1  ;;  %1668 = vperm.xlu1 %2118, %v2713_v41   ;;  %v1734_v33 = vadd.f32 %v1732_v47, %v1730_v3 }
 0x2f9   : > { %v1515_v30 = vpop.permute.xlu2 %1514 }
 0x2fa   : > { %v1352_v44 = vadd.f32 %v1351_v60, %v1350_v28  ;;  %v1489_v36 = vpop.permute.xlu1 %1488  ;;  %v1591_v11 = vmul.f32 %v1571_v12, %v1515_v30  ;;  %v1753_v28 = vld [vmem:[#allocation3 + $0x10] sm:$0xff]  ;;  %v1751_v50 = vmul.f32 %v1749_v49, %v1734_v33 }
 0x2fb   : > { %v1587_v18 = vmul.f32 %v2883_v38, %v1489_v36  ;;  %v1460_v38 = vrot.slane %v2663_v59, 4  ;;  %v1771_v36 = vld [vmem:[#allocation2 + $0x28] sm:$0xff] }
 0x2fc   : > { %v1366_v54 = vsel %vm1365_vm6, %v1364_v26, %v1352_v44  ;;  %1607 = vst.msk [vmem:[#allocation3 + $0x38] sm:$0xff] %vm662_vm7, %v1591_v11  ;;  %v1733_v55 = vld [vmem:[#allocation3 + $0x8] sm:$0xff]  ;;  %v1755_v60 = vadd.f32 %v1753_v28, %v1751_v50  ;;  %v1774_v44 = vld [vmem:[#allocation3 + $0x20] sm:$0xff] }
 0x2fd   : > { %1367 = vst.msk [vmem:[#allocation5] sm:$0xff] %vm662_vm7, %v1366_v54  ;;  %v1572_v53 = vperm.slane %v1460_v38, 0  ;;  %v2981_v7 = vadd.f32 %v1733_v55, %v1731_v45  ;;  %v1791_v54 = vld [vmem:[#allocation2 + $0x30] sm:$0xff]  ;;  %v1834_v45 = vld [vmem:[#allocation2 + $0x58] sm:$0xff] }
 0x2fe   : > { %1603 = vst.msk [vmem:[#allocation3 + $0x18] sm:$0xff] %vm662_vm7, %v1587_v18  ;;  %v1772_v15 = vmul.f32 %v1770_v51, %v1755_v60  ;;  %v1775_v18 = vld [vmem:[#allocation3 + $0x28] sm:$0xff] }
 0x2ff   : > { %1674 = vperm.xlu2 %2119, %v2713_v41   ;;  %v1752_v40 = vmul.f32 %v1750_v20, %v2981_v7 }
 0x300   : > { %1680 = vperm.xlu1 %2118, %v2501_v31  }
 0x301   : > { %v1528_v23 = vpop.permute.xlu2 %1527 }
 0x302   : > { %v1593_v57 = vmul.f32 %v1572_v53, %v1528_v23 }
 0x303   : > { %v1796_v19 = vld [vmem:[#allocation3 + $0x38] sm:$0xff] }
 0x304   : > { %v1905_v10 = vld [vmem:[#allocation5] sm:$0xff]  ;;  %1609 = vst.msk [vmem:[#allocation3 + $0x48] sm:$0xff] %vm662_vm7, %v1593_v57 }
 0x305   : > { %v1913_v16 = vadd.f32 %v1911_v43, %v1905_v10  ;;  %v1754_v34 = vld [vmem:[#allocation3 + $0x18] sm:$0xff] }
 0x306   : > { %v1756_v37 = vadd.f32 %v1754_v34, %v1752_v40 }
 0x307   : > { %v1955_v14 = vmul.f32 %v1953_v61, %v1913_v16  ;;  %1686 = vperm.xlu2 %2119, %v2501_v31  }
 0x308   : > { %2121 = vset.pattern.permute.xlu1 %v2492_v29  ;;  %v1773_v26 = vmul.f32 %v1771_v36, %v1756_v37 }
 0x309   : > { %2071 = vmatmul.msk.f32.vlgmr.msrb.gmra.mxu1 %vm662_vm7, %v1955_v14  ;;  %v1813_v14 = vld [vmem:[#allocation2 + $0x48] sm:$0xff] }
 0x30a   : > { %v1509_v41 = vpop.permute.xlu1 %1508  ;;  %v1777_v62 = vadd.f32 %v1775_v18, %v1773_v26 }
 0x30b   : > { %v1590_v17 = vmul.f32 %v1571_v12, %v1509_v41  ;;  %v1776_v12 = vadd.f32 %v1774_v44, %v1772_v15 }
 0x30c   : > { %v1794_v58 = vmul.f32 %v1792_v56, %v1777_v62 }
 0x30d   : > { %1606 = vst.msk [vmem:[#allocation3 + $0x30] sm:$0xff] %vm662_vm7, %v1590_v17  ;;  %v1793_v11 = vmul.f32 %v1791_v54, %v1776_v12 }
 0x30e   : > { %v1798_v23 = vadd.f32 %v1796_v19, %v1794_v58 }
 0x30f   : > { %2122 = vset.pattern.permute.xlu2 %v2472_v22 }
 0x310   : > { %1698 = vperm.xlu1 %2121, %v2508_v32   ;;  %v1815_v41 = vmul.f32 %v1813_v14, %v1798_v23 }
 0x311   : > { %v1548_v5 = vpop.permute.xlu2 %1547 }
 0x312   : > { %v1596_v52 = vmul.f32 %v2799_v42, %v1548_v5  ;;  %v1522_v2 = vpop.permute.xlu1 %1521  ;;  %v1833_v5 = vld [vmem:[#allocation2 + $0x50] sm:$0xff] }
 0x313   : > { %v1592_v27 = vmul.f32 %v1572_v53, %v1522_v2  ;;  %v1812_v53 = vld [vmem:[#allocation2 + $0x40] sm:$0xff] }
 0x314   : > { %1612 = vst.msk [vmem:[#allocation3 + $0x60] sm:$0xff] %vm662_vm7, %v1596_v52  ;;  %v1795_v30 = vld [vmem:[#allocation3 + $0x30] sm:$0xff] }
 0x315   : > { %1608 = vst.msk [vmem:[#allocation3 + $0x40] sm:$0xff] %vm662_vm7, %v1592_v27  ;;  %v1797_v38 = vadd.f32 %v1795_v30, %v1793_v11 }
 0x317   : > { %1704 = vperm.xlu2 %2122, %v2881_v48   ;;  %v1814_v10 = vmul.f32 %v1812_v53, %v1797_v38 }
 0x318   : > { %1710 = vperm.xlu1 %2121, %v2881_v48  }
 0x31b   : > { %v1858_v11 = vld [vmem:[#allocation3 + $0x60] sm:$0xff] }
 0x31c   : > { %v1816_v43 = vld [vmem:[#allocation3 + $0x40] sm:$0xff] }
 0x31d   : > { %v1818_v16 = vadd.f32 %v1816_v43, %v1814_v10 }
 0x31f   : > { %v1835_v27 = vmul.f32 %v1833_v5, %v1818_v16 }
 0x321   : > { %v1627_v29 = vpop.permute.xlu2 %1626  ;;  %v1839_v24 = vadd.f32 %v1837_v63, %v1835_v27  ;;  %v1859_v63 = vld [vmem:[#allocation3 + $0x68] sm:$0xff] }
 0x322   : > { %1713 = vst.msk [vmem:[#allocation4 + $0x8] sm:$0xff] %vm662_vm7, %v1627_v29  ;;  %v1541_v31 = vpop.permute.xlu1 %1540 }
 0x323   : > { %v1595_v22 = vmul.f32 %v2740_v8, %v1541_v31  ;;  %v1817_v31 = vld [vmem:[#allocation3 + $0x48] sm:$0xff] }
 0x325   : > { %1611 = vst.msk [vmem:[#allocation3 + $0x58] sm:$0xff] %vm662_vm7, %v1595_v22  ;;  %v2989_v22 = vpop.f32.mrf.mxu1 }
 0x326   : > { %v2070_v3 = vmul.f32 -1.442695, %v2989_v22 }
 0x328   : > { %2222 = vpow2.f32 %v2070_v3 }
 0x329   : > { %v1639_v32 = vpop.permute.xlu2 %1638 }
 0x32a   : > { %1715 = vst.msk [vmem:[#allocation4 + $0x18] sm:$0xff] %vm662_vm7, %v1639_v32 }
 0x331   : > { %v1758_v52 = vld [vmem:[#allocation4 + $0x18] sm:$0xff] }
 0x332   : > { %v1621_v42 = vpop.permute.xlu1 %1620 }
 0x333   : > { %1712 = vst.msk [vmem:[#allocation4] sm:$0xff] %vm662_vm7, %v1621_v42  ;;  %v1819_v42 = vadd.f32 %v1817_v31, %v1815_v41  ;;  %v1862_v31 = vld [vmem:[#allocation4 + $0x60] sm:$0xff] }
 0x335   : > { %v1836_v28 = vmul.f32 %v1834_v45, %v1819_v42 }
 0x339   : > { %v1561_v39 = vpop.permute.xlu2 %1560 }
 0x33a   : > { %v1598_v35 = vmul.f32 %v1575_v4, %v1561_v39  ;;  %v1633_v48 = vpop.permute.xlu1 %1632  ;;  %v1736_v29 = vld [vmem:[#allocation4] sm:$0xff]  ;;  %v1760_v39 = vmul.f32 %v1758_v52, %v1756_v37 }
 0x33b   : > { %1714 = vst.msk [vmem:[#allocation4 + $0x10] sm:$0xff] %vm662_vm7, %v1633_v48 }
 0x33c   : > { %1614 = vst.msk [vmem:[#allocation3 + $0x70] sm:$0xff] %vm662_vm7, %v1598_v35  ;;  %v1762_v40 = vsel %vm662_vm7, %v1760_v39, 0.0 }
 0x342   : > { %v1757_v17 = vld [vmem:[#allocation4 + $0x10] sm:$0xff] }
 0x343   : > { %v1759_v32 = vmul.f32 %v1757_v17, %v1755_v60 }
 0x345   : > { %v1761_v20 = vsel %vm662_vm7, %v1759_v32, 0.0 }
 0x349   : > { %v1657_v1 = vpop.permute.xlu2 %1656 }
 0x34a   : > { %1718 = vst.msk [vmem:[#allocation4 + $0x30] sm:$0xff] %vm662_vm7, %v1657_v1  ;;  %v1651_v8 = vpop.permute.xlu1 %1650  ;;  %v1778_v1 = vld [vmem:[#allocation4 + $0x20] sm:$0xff] }
 0x34b   : > { %1717 = vst.msk [vmem:[#allocation4 + $0x28] sm:$0xff] %vm662_vm7, %v1651_v8  ;;  %v1738_v8 = vmul.f32 %v1736_v29, %v1734_v33  ;;  %v1780_v55 = vmul.f32 %v1778_v1, %v1776_v12 }
 0x34d   : > { %v1740_v44 = vsel %vm662_vm7, %v1738_v8, 0.0  ;;  %v1782_v26 = vsel %vm662_vm7, %v1780_v55, 0.0  ;;  %v1875_v55 = vld [vmem:[#allocation2 + $0x70] sm:$0xff] }
 0x351   : > { %v1799_v35 = vld [vmem:[#allocation4 + $0x30] sm:$0xff] }
 0x352   : > { %v1779_v2 = vld [vmem:[#allocation4 + $0x28] sm:$0xff]  ;;  %v1801_v34 = vmul.f32 %v1799_v35, %v1797_v38 }
 0x353   : > { %v1781_v48 = vmul.f32 %v1779_v2, %v1777_v62  ;;  %v2223_v2 = vpop.eup %2222 }
 0x354   : > { %v1803_v62 = vsel %vm662_vm7, %v1801_v34, 0.0  ;;  %v3016_v1 = vadd.f32 1.0, %v2223_v2 }
 0x355   : > { %v1783_v33 = vsel %vm662_vm7, %v1781_v48, 0.0 }
 0x356   : > { %v1784_v54 = vadd.f32 %v1783_v33, %v1782_v26  ;;  %2224 = vrcp.f32 %v3016_v1  ;;  %vm1943_vm13 = vweird.f32 %v3016_v1 }
 0x358   : > { %v1785_v41 = vrot.slane %v1784_v54, 4 }
 0x359   : > { %v1675_v59 = vpop.permute.xlu2 %1674 }
 0x35a   : > { %1721 = vst.msk [vmem:[#allocation4 + $0x48] sm:$0xff] %vm662_vm7, %v1675_v59  ;;  %v1567_v0 = vpop.permute.xlu1 %1566  ;;  %v1838_v59 = vld [vmem:[#allocation3 + $0x58] sm:$0xff] }
 0x35b   : > { %v1599_v6 = vmul.f32 %v1575_v4, %v1567_v0  ;;  %v1737_v4 = vld [vmem:[#allocation4 + $0x8] sm:$0xff]  ;;  %v1800_v0 = vld [vmem:[#allocation4 + $0x38] sm:$0xff]  ;;  %v1840_v51 = vadd.f32 %v1838_v59, %v1836_v28 }
 0x35c   : > { %v1802_v50 = vmul.f32 %v1800_v0, %v1798_v23 }
 0x35d   : > { %1615 = vst.msk [vmem:[#allocation3 + $0x78] sm:$0xff] %vm662_vm7, %v1599_v6  ;;  %v1739_v6 = vmul.f32 %v1737_v4, %v2981_v7  ;;  %v1763_v7 = vadd.f32 %v1762_v40, %v1761_v20  ;;  %v1786_v4 = vadd.f32 %v1785_v41, %v1784_v54 }
 0x35e   : > { %v1804_v19 = vsel %vm662_vm7, %v1802_v50, 0.0 }
 0x35f   : > { %v1741_v18 = vsel %vm662_vm7, %v1739_v6, 0.0  ;;  %v1764_v10 = vrot.slane %v1763_v7, 4  ;;  %v1879_v6 = vld [vmem:[#allocation3 + $0x70] sm:$0xff]  ;;  %v1787_v20 = vrot.slane %v1786_v4, 2 }
 0x360   : > { %v1742_v56 = vadd.f32 %v1741_v18, %v1740_v44 }
 0x361   : > { %v1687_v9 = vpop.permute.xlu2 %1686  ;;  %v1821_v49 = vld [vmem:[#allocation4 + $0x48] sm:$0xff]  ;;  %v1765_v32 = vadd.f32 %v1764_v10, %v1763_v7  ;;  %v1788_v26 = vadd.f32 %v1787_v20, %v1786_v4 }
 0x362   : > { %1723 = vst.msk [vmem:[#allocation4 + $0x58] sm:$0xff] %vm662_vm7, %v1687_v9  ;;  %v1854_v9 = vld [vmem:[#allocation2 + $0x60] sm:$0xff]  ;;  %v1823_v12 = vmul.f32 %v1821_v49, %v1819_v42  ;;  %v1743_v27 = vrot.slane %v1742_v56, 4 }
 0x363   : > { %v1856_v36 = vmul.f32 %v1854_v9, %v1839_v24  ;;  %v1766_v59 = vrot.slane %v1765_v32, 2 }
 0x364   : > { %v1744_v8 = vadd.f32 %v1743_v27, %v1742_v56  ;;  %v1880_v9 = vld [vmem:[#allocation3 + $0x78] sm:$0xff] }
 0x365   : > { %v1860_v53 = vadd.f32 %v1858_v11, %v1856_v36  ;;  %v1767_v36 = vadd.f32 %v1766_v59, %v1765_v32 }
 0x366   : > { %v1745_v40 = vrot.slane %v1744_v8, 2 }
 0x367   : > { %v1864_v48 = vmul.f32 %v1862_v31, %v1860_v53  ;;  %v1877_v0 = vmul.f32 %v1875_v55, %v1860_v53 }
 0x368   : > { %v1746_v54 = vadd.f32 %v1745_v40, %v1744_v8 }
 0x369   : > { %v1842_v37 = vld [vmem:[#allocation4 + $0x58] sm:$0xff]  ;;  %v1866_v49 = vsel %vm662_vm7, %v1864_v48, 0.0  ;;  %v1881_v44 = vadd.f32 %v1879_v6, %v1877_v0 }
 0x36a   : > { %v1669_v21 = vpop.permute.xlu1 %1668  ;;  %v1844_v30 = vmul.f32 %v1842_v37, %v1840_v51 }
 0x36b   : > { %1720 = vst.msk [vmem:[#allocation4 + $0x40] sm:$0xff] %vm662_vm7, %v1669_v21  ;;  %v1961_v21 = vld [vmem:[%s2316_s27] sm:$0xff] }
 0x36c   : > { %v1846_v17 = vsel %vm662_vm7, %v1844_v30, 0.0 }
 0x371   : > { %v1705_v61 = vpop.permute.xlu2 %1704 }
 0x372   : > { %1726 = vst.msk [vmem:[#allocation4 + $0x70] sm:$0xff] %vm662_vm7, %v1705_v61  ;;  %v1681_v57 = vpop.permute.xlu1 %1680  ;;  %v1820_v25 = vld [vmem:[#allocation4 + $0x40] sm:$0xff]  ;;  %v1805_v61 = vadd.f32 %v1804_v19, %v1803_v62 }
 0x373   : > { %1722 = vst.msk [vmem:[#allocation4 + $0x50] sm:$0xff] %vm662_vm7, %v1681_v57  ;;  %v1822_v60 = vmul.f32 %v1820_v25, %v1818_v16  ;;  %v1825_v57 = vsel %vm662_vm7, %v1823_v12, 0.0  ;;  %v1855_v16 = vld [vmem:[#allocation2 + $0x68] sm:$0xff] }
 0x374   : > { %v1857_v52 = vmul.f32 %v1855_v16, %v1840_v51  ;;  %v1806_v42 = vrot.slane %v1805_v61, 4 }
 0x375   : > { %v1824_v38 = vsel %vm662_vm7, %v1822_v60, 0.0  ;;  %v1876_v60 = vld [vmem:[#allocation2 + $0x78] sm:$0xff] }
 0x376   : > { %v1826_v5 = vadd.f32 %v1825_v57, %v1824_v38  ;;  %v1861_v35 = vadd.f32 %v1859_v63, %v1857_v52  ;;  %v2225_v38 = vpop.eup %2224  ;;  %v1747_v57 = vrot.slane %v1746_v54, 1 }
 0x377   : > { %v1939_v41 = vmul.f32 %v2225_v38, %v3016_v1  ;;  %vm1944_vm12 = vweird.f32 %v2225_v38 }
 0x378   : > { %v1827_v39 = vrot.slane %v1826_v5, 4  ;;  %v1878_v51 = vmul.f32 %v1876_v60, %v1861_v35  ;;  %v1748_v31 = vadd.f32 %v1747_v57, %v1746_v54  ;;  %vm1945_vm14 = vmor %vm1943_vm13, %vm1944_vm12 }
 0x379   : > { %v1883_v33 = vld [vmem:[#allocation4 + $0x70] sm:$0xff]  ;;  %v1940_v63 = vsub.f32 1.0, %v1939_v41 }
 0x37a   : > { %v1841_v47 = vld [vmem:[#allocation4 + $0x50] sm:$0xff]  ;;  %v1828_v34 = vadd.f32 %v1827_v39, %v1826_v5  ;;  %v1885_v18 = vmul.f32 %v1883_v33, %v1881_v44  ;;  %v1882_v62 = vadd.f32 %v1880_v9, %v1878_v51  ;;  %v1947_v33 = vand.u32 2147483647, %v3016_v1 }
 0x37b   : > { %v1843_v15 = vmul.f32 %v1841_v47, %v1839_v24  ;;  %v1807_v47 = vadd.f32 %v1806_v42, %v1805_v61  ;;  %v1941_v55 = vmul.f32 %v2225_v38, %v1940_v63  ;;  %v1912_v9 = vmul.f32 %v2951_v46, %v2456_v13 }
 0x37c   : > { %v1829_v12 = vrot.slane %v1828_v34, 2  ;;  %v1887_v10 = vsel %vm662_vm7, %v1885_v18, 0.0 }
 0x37d   : > { %v1845_v43 = vsel %vm662_vm7, %v1843_v15, 0.0  ;;  %v1808_v15 = vrot.slane %v1807_v47, 2 }
 0x37e   : > { %v1847_v29 = vadd.f32 %v1846_v17, %v1845_v43  ;;  %v1789_v43 = vrot.slane %v1788_v26, 1 }
 0x37f   : > { %v1809_v19 = vadd.f32 %v1808_v15, %v1807_v47 }
 0x380   : > { %v1848_v25 = vrot.slane %v1847_v29, 4  ;;  %v1790_v27 = vadd.f32 %v1789_v43, %v1788_v26 }
 0x381   : > { %v1810_v52 = vrot.slane %v1809_v19, 1 }
 0x382   : > { %v1699_v58 = vpop.permute.xlu1 %1698  ;;  %v1849_v50 = vadd.f32 %v1848_v25, %v1847_v29 }
 0x383   : > { %1725 = vst.msk [vmem:[#allocation4 + $0x68] sm:$0xff] %vm662_vm7, %v1699_v58  ;;  %v1768_v58 = vrot.slane %v1767_v36, 1  ;;  %v1811_v48 = vadd.f32 %v1810_v52, %v1809_v19 }
 0x384   : > { %v1850_v30 = vrot.slane %v1849_v50, 2 }
 0x385   : > { %v1769_v5 = vadd.f32 %v1768_v58, %v1767_v36 }
 0x386   : > { %v1986_v23 = vpop.f32.mrf.mxu1  ;;  %v1851_v16 = vadd.f32 %v1850_v30, %v1849_v50 }
 0x387   : > { %v1987_v14 = vadd.f32 %v1986_v23, %v1961_v21  ;;  %v1830_v23 = vadd.f32 %v1829_v12, %v1828_v34  ;;  %v1896_v39 = vsel %vm1353_vm15, %v1748_v31, %v1769_v5  ;;  %v1942_v34 = vadd.f32 %v2225_v38, %v1941_v55 }
 0x388   : > { %v1852_v32 = vrot.slane %v1851_v16, 1  ;;  %v1897_v8 = vsel %vm1355_vm1, %v1896_v39, %v1790_v27  ;;  %vm1948_vm15 = vcmp.eq.f32.partialorder %v1947_v33, 8.507059e+37 }
 0x389   : > { %1992 = vst.msk [vmem:[%s3010_s20] sm:$0xff] %vm421_vm0, %v1987_v14  ;;  %v1831_v29 = vrot.slane %v1830_v23, 1  ;;  %v1898_v47 = vsel %vm1357_vm2, %v1897_v8, %v1811_v48  ;;  %v1946_v50 = vsel %vm1945_vm14, %v2225_v38, %v1942_v34 }
 0x38a   : > { %v1863_v24 = vld [vmem:[#allocation4 + $0x68] sm:$0xff]  ;;  %v1711_v3 = vpop.permute.xlu1 %1710 }
 0x38b   : > { %v1865_v45 = vmul.f32 %v1863_v24, %v1861_v35  ;;  %1727 = vst.msk [vmem:[#allocation4 + $0x78] sm:$0xff] %vm662_vm7, %v1711_v3  ;;  %v1832_v25 = vadd.f32 %v1831_v29, %v1830_v23  ;;  %v1853_v24 = vadd.f32 %v1852_v32, %v1851_v16 }
 0x38d   : > { %v1867_v28 = vsel %vm662_vm7, %v1865_v45, 0.0  ;;  %v1899_v0 = vsel %vm1359_vm3, %v1898_v47, %v1832_v25 }
 0x38e   : > { %v1868_v37 = vadd.f32 %v1867_v28, %v1866_v49  ;;  %v1900_v20 = vsel %vm1361_vm4, %v1899_v0, %v1853_v24  ;;  %v1949_v28 = vand.u32 2147483648, %v3016_v1 }
 0x390   : > { %v1869_v7 = vrot.slane %v1868_v37, 4 }
 0x392   : > { %v1870_v21 = vadd.f32 %v1869_v7, %v1868_v37  ;;  %v1884_v11 = vld [vmem:[#allocation4 + $0x78] sm:$0xff]  ;;  %v1950_v37 = vor.u32 1.1754944e-38, %v1949_v28  ;;  %v1962_v7 = vld [vmem:[%s2316_s27 + $0x8] sm:$0xff] }
 0x393   : > { %v1886_v56 = vmul.f32 %v1884_v11, %v1882_v62 }
 0x394   : > { %v1871_v53 = vrot.slane %v1870_v21, 2  ;;  %v1951_v60 = vsel %vm1948_vm15, %v1950_v37, %v1946_v50 }
 0x395   : > { %v1888_v61 = vsel %vm662_vm7, %v1886_v56, 0.0  ;;  %v1954_v51 = vmul.f32 %v1951_v60, %v2989_v22 }
 0x396   : > { %v1889_v14 = vadd.f32 %v1888_v61, %v1887_v10  ;;  %v1872_v17 = vadd.f32 %v1871_v53, %v1870_v21 }
 0x398   : > { %v1890_v2 = vrot.slane %v1889_v14, 4  ;;  %v1873_v4 = vrot.slane %v1872_v17, 1 }
 0x39a   : > { %v1891_v42 = vadd.f32 %v1890_v2, %v1889_v14  ;;  %v1874_v45 = vadd.f32 %v1873_v4, %v1872_v17 }
 0x39c   : > { %v1892_v35 = vrot.slane %v1891_v42, 2  ;;  %v1901_v49 = vsel %vm1363_vm5, %v1900_v20, %v1874_v45 }
 0x39e   : > { %v1893_v3 = vadd.f32 %v1892_v35, %v1891_v42 }
 0x3a0   : > { %v1894_v59 = vrot.slane %v1893_v3, 1 }
 0x3a2   : > { %v1895_v6 = vadd.f32 %v1894_v59, %v1893_v3 }
 0x3a4   : > { %v1902_v40 = vsel %vm1365_vm6, %v1901_v49, %v1895_v6 }
 0x3a5   : > { %1904 = vst.msk [vmem:[#allocation5 + $0x8] sm:$0xff] %vm662_vm7, %v1902_v40 }
 0x3ac   : > { %v1906_v44 = vld [vmem:[#allocation5 + $0x8] sm:$0xff] }
 0x3ad   : > { %v1914_v36 = vadd.f32 %v1912_v9, %v1906_v44 }
 0x3af   : > { %v1956_v15 = vmul.f32 %v1954_v51, %v1914_v36 }
 0x3b1   : > { %2072 = vmatmul.msk.f32.gmra.mxu1 %vm662_vm7, %v1956_v15 }
 0x42e   : > { %v1989_v1 = vpop.f32.mrf.mxu1 }
 0x42f   : > { %v1990_v26 = vadd.f32 %v1989_v1, %v1962_v7 }
 0x431   : > { %1993 = vst.msk [vmem:[%s3010_s20 + $0x8] sm:$0xff] %vm421_vm0, %v1990_v26 }
 0x432 PF: > { %s22_s21 = sadd.s32 1, %s2232_s21  }
 0x433   : > { %p19_p4 = scmp.ge.s32.totalorder %s22_s21, 4  }
 0x435   :  { %21 = sbr.rel (!%p19_p4) target bundleno = 1 (0x1), region = 120 }

// kernel: tpu_custom_call.1
= control target key start
LH: loop header
LB: loop body
LE: loop exit
PB: predicated region body
PF: predicated region fallthrough
CT: control target
= control target key end

     0   :  { %s2300_s21 = smov 0   ;;  %s3046_s0 = inlined_call_operand.vmem [shape: f32[32,16], index: 0, kind: input, shape index: {}]   ;;  %s3047_s1 = inlined_call_operand.vmem [shape: f32[1,16], index: 1, kind: input, shape index: {}]   ;;  %s3048_s2 = inlined_call_operand.vmem [shape: f32[16,32], index: 2, kind: input, shape index: {}]   ;;  %s3049_s3 = inlined_call_operand.vmem [shape: f32[16,32], index: 3, kind: input, shape index: {}]   ;;  %s3050_s4 = inlined_call_operand.vmem [shape: f32[4,32], index: 4, kind: input, shape index: {}]   ;;  %s3051_s5 = inlined_call_operand.vmem [shape: f32[1,32], index: 5, kind: input, shape index: {}]   ;;  %s3052_s6 = inlined_call_operand.vmem [shape: f32[32,160], index: 6, kind: input, shape index: {}]   ;;  %s3053_s7 = inlined_call_operand.vmem [shape: f32[128,32], index: 7, kind: input, shape index: {}]   ;;  %s3054_s8 = inlined_call_operand.vmem [shape: f32[1,32], index: 8, kind: input, shape index: {}]   ;;  %s3055_s9 = inlined_call_operand.vmem [shape: f32[16,32], index: 9, kind: input, shape index: {}]   ;;  %s3056_s10 = inlined_call_operand.vmem [shape: f32[1,32], index: 10, kind: input, shape index: {}]   ;;  %s3057_s11 = inlined_call_operand.vmem [shape: f32[32,16], index: 11, kind: input, shape index: {}]   ;;  %s3058_s12 = inlined_call_operand.vmem [shape: f32[32,16], index: 12, kind: output, shape index: {}]  }
   0x1 LB: > { %s2050_s22 = sadd.s32 4294967295, %s2232_s21   ;;  %p2054_p0 = scmp.ge.s32.totalorder %s2232_s21, 1  ;;  %s2232_s21 = sphi %s2300_s21, %s22_s21  }
   0x2   : > { %p363_p1 = scmp.lt.s32.totalorder %s2232_s21, 3 }
   0x4   : > { %p364_p2 = pnand %p2054_p0, %p363_p1 }
   0x5   : > { %s2055_s23 = sshll.u32 (!%p364_p2), %s2050_s22, 1 }
   0x6   : > { %367 = sbr.rel (%p364_p2) target bundleno = 1074 (0x432), region = 68  ;;  %p406_p3 = scmp.lt.s32.totalorder (!%p364_p2), %s2055_s23, 3 }
   0xb   : > { %s3060_s23 = smov (!%p406_p3, %s2055_s23), 3  ;;  %vm421_vm0 = vcmask 130048   ;;  %v2234_v6 = vmov 16.0   ;;  %v468_v11 = vld [vmem:[%s3048_s2 + $0x8] sm:$0xff]  ;;  %v467_v13 = vld [vmem:[%s3048_s2] sm:$0xff]  ;;  %v523_v42 = vlaneseq  ;;  %v660_v48 = vld [vmem:[%s3052_s6 + $0x30] sm:$0xff] }
   0xc   : > { %s2056_s24 = sshll.u32 %s3060_s23, 3  ;;  %2128 = vrcp.f32 %v2234_v6  ;;  %v499_v12 = vld [vmem:[%s3049_s3 + $0x8] sm:$0xff]  ;;  %489 = vmatpush.msra.mxu2 %v468_v11  ;;  %v498_v14 = vld [vmem:[%s3049_s3] sm:$0xff]  ;;  %v661_v49 = vld [vmem:[%s3052_s6 + $0x38] sm:$0xff] }
   0xd   : > { %s2316_s27 = scalar_lea.vmem %s3046_s0, %s2056_s24  ;;  %514 = vmatpush.msra.mxu1 %v499_v12  ;;  %v2124_v31 = vld [vmem:[%s3047_s1] ss:$0 sm:$0xff]  ;;  %v2341_v43 = vshrl.u32 %v523_v42, 7  ;;  %704 = vmatpush.msra.mxu3 %v661_v49  ;;  %v659_v51 = vld [vmem:[%s3052_s6 + $0x28] sm:$0xff]  ;;  %v656_v52 = vld [vmem:[%s3052_s6 + $0x10] sm:$0xff]  ;;  %s3010_s20 = scalar_lea.vmem %s3058_s12, %s2056_s24 }
   0xe   : > { %v417_v0 = vld [vmem:[%s2316_s27] sm:$0xff]  ;;  %v418_v2 = vld [vmem:[%s2316_s27 + $0x8] sm:$0xff]  ;;  %490 = vmatpush.msra.mxu2 %v467_v13  ;;  %v657_v53 = vld [vmem:[%s3052_s6 + $0x18] sm:$0xff] }
   0xf   : > { %v419_v1 = vmul.f32 %v417_v0, %v417_v0  ;;  %v420_v4 = vmul.f32 %v418_v2, %v418_v2  ;;  %515 = vmatpush.msra.mxu1 %v498_v14  ;;  %2088 = vset.pattern.permute.xlu0 %v2341_v43  ;;  %v2349_v45 = vadd.s32 8, %v2341_v43  ;;  %v530_v46 = vand.u32 7, %v2341_v43  ;;  %v658_v50 = vld [vmem:[%s3052_s6 + $0x20] sm:$0xff]  ;;  %v655_v62 = vld [vmem:[%s3052_s6 + $0x8] sm:$0xff] }
  0x10   : > { %2086 = vset.pattern.permute.xlu2 %v2341_v43  ;;  %2084 = vset.pattern.permute.xlu1 %v2341_v43  ;;  %v550_v54 = vld [vmem:[%s3050_s4] sm:$0xf]  ;;  %vm554_vm8 = vcmp.lt.s32.totalorder %v2341_v43, 3  ;;  %vm575_vm11 = vcmp.lt.s32.totalorder %v2341_v43, 2  ;;  %vm593_vm14 = vcmp.lt.s32.totalorder %v2341_v43, 1 }
  0x11   : > { %v422_v3 = vsel %vm421_vm0, %v419_v1, 0.0  ;;  %v425_v5 = vsel %vm421_vm0, %v420_v4, 0.0  ;;  %v537_v47 = vand.u32 7, %v2349_v45  ;;  %681 = vmatpush.msrb.mxu2 %v660_v48  ;;  %705 = vmatpush.msra.mxu3 %v659_v51  ;;  %vm557_vm9 = vcmp.ge.s32.totalorder %v530_v46, 3  ;;  %v654_v57 = vld [vmem:[%s3052_s6] sm:$0xff]  ;;  %v724_v48 = vld [vmem:[%s3053_s7 + $0x48] sm:$0xff] }
  0x12   : > { %423 = vadd.xlane.f32.xlu0 %v422_v3  ;;  %v2129_v7 = vpop.eup %2128  ;;  %v565_v56 = vperm.slane %v550_v54, 0  ;;  %vm578_vm12 = vcmp.ge.s32.totalorder %v530_v46, 2  ;;  %v2125_v1 = vld [vmem:[%s3051_s5] ss:$0 sm:$0xff]  ;;  %v586_v6 = vperm.slane %v550_v54, 1  ;;  %vm596_vm15 = vcmp.ge.s32.totalorder %v530_v46, 1 }
  0x13   : > { %v429_v8 = vmul.f32 16.0, %v2129_v7  ;;  %vm433_vm1 = vweird.f32 %v2129_v7  ;;  %682 = vmatpush.msrb.mxu2 %v658_v50  ;;  %vm558_vm10 = vcmp.ge.s32.totalorder %v537_v47, 3  ;;  %706 = vmatpush.msra.mxu3 %v657_v53  ;;  %vm579_vm13 = vcmp.ge.s32.totalorder %v537_v47, 2  ;;  %v727_v42 = vld [vmem:[%s3053_s7 + $0x60] sm:$0xff]  ;;  %v725_v46 = vld [vmem:[%s3053_s7 + $0x50] sm:$0xff] }
  0x14   : > { %v604_v11 = vperm.slane %v550_v54, 2 }
  0x15   : > { %v430_v9 = vsub.f32 1.0, %v429_v8  ;;  %683 = vmatpush.msrb.mxu2 %v656_v52  ;;  %707 = vmatpush.msra.mxu3 %v655_v62  ;;  %v723_v52 = vld [vmem:[%s3053_s7 + $0x40] sm:$0xff]  ;;  %v720_v62 = vld [vmem:[%s3053_s7 + $0x28] sm:$0xff] }
  0x17   : > { %v431_v10 = vmul.f32 %v2129_v7, %v430_v9  ;;  %684 = vmatpush.msrb.mxu2 %v654_v57 }
  0x19   : > { %v432_v15 = vadd.f32 %v2129_v7, %v431_v10 }
  0x1a   : > { %426 = vadd.xlane.f32.xlu0 %v425_v5 }
  0x1b   : > { %v434_v16 = vsel %vm433_vm1, %v2129_v7, %v432_v15  ;;  %vm597_vm1 = vcmp.ge.s32.totalorder %v537_v47, 1 }
  0x85   : > { %v424_v17 = vpop.xlane.xlu0 %423 }
  0x86   : > { %v435_v18 = vmul.f32 %v434_v16, %v424_v17 }
  0x88   : > { %v437_v19 = vadd.f32 1e-05, %v435_v18  ;;  %v609_v18 = vperm.slane %v550_v54, 3 }
  0x8a   : > { %2130 = vrsqrt.f32 %v437_v19  ;;  %vm445_vm3 = vweird.f32 %v437_v19 }
  0x8d   : > { %v427_v20 = vpop.xlane.xlu0 %426 }
  0x8e   : > { %v436_v21 = vmul.f32 %v434_v16, %v427_v20 }
  0x90   : > { %v2131_v22 = vpop.eup %2130  ;;  %v438_v23 = vadd.f32 1e-05, %v436_v21 }
  0x91   : > { %v440_v24 = vmul.f32 %v2131_v22, %v437_v19  ;;  %vm446_vm2 = vweird.f32 %v2131_v22 }
  0x92   : > { %2132 = vrsqrt.f32 %v438_v23  ;;  %vm447_vm4 = vmor %vm445_vm3, %vm446_vm2  ;;  %vm455_vm6 = vweird.f32 %v438_v23 }
  0x93   : > { %v441_v25 = vmul.f32 %v2131_v22, %v440_v24 }
  0x95   : > { %v442_v26 = vmul.f32 0.5, %v441_v25 }
  0x97   : > { %v443_v27 = vsub.f32 1.5, %v442_v26 }
  0x98   : > { %v2133_v28 = vpop.eup %2132 }
  0x99   : > { %v444_v29 = vmul.f32 %v2131_v22, %v443_v27  ;;  %v450_v30 = vmul.f32 %v2133_v28, %v438_v23  ;;  %vm456_vm5 = vweird.f32 %v2133_v28 }
  0x9a   : > { %vm457_vm7 = vmor %vm455_vm6, %vm456_vm5 }
  0x9b   : > { %v451_v32 = vmul.f32 %v2133_v28, %v450_v30  ;;  %v448_v33 = vsel %vm447_vm4, %v2131_v22, %v444_v29 }
  0x9c   : > { %v459_v34 = vmul.f32 %v448_v33, %v417_v0 }
  0x9d   : > { %v452_v35 = vmul.f32 0.5, %v451_v32 }
  0x9e   : > { %v465_v36 = vmul.f32 %v2124_v31, %v459_v34 }
  0x9f   : > { %v453_v37 = vsub.f32 1.5, %v452_v35  ;;  %v730_v35 = vld [vmem:[%s3053_s7 + $0x78] sm:$0xff] }
  0xa0   : > { %2059 = vmatmul.msk.f32.vlgmr.msra.gmra.mxu2 %vm421_vm0, %v465_v36  ;;  %2061 = vmatmul.msk.f32.vlgmr.msra.gmra.mxu1 %vm421_vm0, %v465_v36  ;;  %v729_v36 = vld [vmem:[%s3053_s7 + $0x70] sm:$0xff] }
  0xa1   : > { %v454_v38 = vmul.f32 %v2133_v28, %v453_v37  ;;  %735 = vmatpush.msra.mxu0 %v730_v35  ;;  %v2126_v35 = vld [vmem:[%s3054_s8] ss:$0 sm:$0xff] }
  0xa3   : > { %v458_v39 = vsel %vm457_vm7, %v2133_v28, %v454_v38  ;;  %736 = vmatpush.msra.mxu0 %v729_v36  ;;  %vm662_vm7 = vcmask 261120  }
  0xa4   : > { %v460_v40 = vmul.f32 %v458_v39, %v418_v2 }
  0xa6   : > { %v466_v41 = vmul.f32 %v2124_v31, %v460_v40  ;;  %v728_v40 = vld [vmem:[%s3053_s7 + $0x68] sm:$0xff] }
  0xa7   : > { %737 = vmatpush.msra.mxu0 %v728_v40 }
  0xa8   : > { %2060 = vmatmul.msk.f32.gmra.mxu2 %vm421_vm0, %v466_v41  ;;  %2062 = vmatmul.msk.f32.gmra.mxu1 %vm421_vm0, %v466_v41 }
  0xa9   : > { %738 = vmatpush.msra.mxu0 %v727_v42 }
 0x123   : > { %v2346_v44 = vpop.f32.mrf.mxu2 }
 0x124   : > { %v552_v58 = vrot.slane %v2346_v44, 5  ;;  %v573_v59 = vrot.slane %v2346_v44, 6  ;;  %v591_v12 = vrot.slane %v2346_v44, 7  ;;  %v610_v29 = vmul.f32 %v609_v18, %v2346_v44  ;;  %v726_v44 = vld [vmem:[%s3053_s7 + $0x58] sm:$0xff] }
 0x125   : > { %739 = vmatpush.msra.mxu0 %v726_v44 }
 0x127   : > { %740 = vmatpush.msra.mxu0 %v725_v46 }
 0x129   : > { %741 = vmatpush.msra.mxu0 %v724_v48 }
 0x12b   : > { %v495_v55 = vpop.f32.mrf.mxu2  ;;  %742 = vmatpush.msra.mxu0 %v723_v52 }
 0x12c   : > { %v553_v60 = vrot.slane %v495_v55, 5  ;;  %v574_v61 = vrot.slane %v495_v55, 6  ;;  %v592_v10 = vrot.slane %v495_v55, 7  ;;  %v611_v28 = vmul.f32 %v609_v18, %v495_v55  ;;  %v722_v55 = vld [vmem:[%s3053_s7 + $0x38] sm:$0xff] }
 0x12d   : > { %743 = vmatpush.msra.mxu0 %v722_v55 }
 0x12e   : > { %v555_v63 = vsel %vm554_vm8, %v552_v58, %v553_v60  ;;  %v556_v0 = vsel %vm554_vm8, %v553_v60, %v552_v58  ;;  %v577_v2 = vsel %vm575_vm11, %v574_v61, %v573_v59  ;;  %v576_v5 = vsel %vm575_vm11, %v573_v59, %v574_v61  ;;  %v721_v60 = vld [vmem:[%s3053_s7 + $0x30] sm:$0xff] }
 0x12f   : > { %v563_v3 = vsel %vm557_vm9, %v556_v0, 0.0  ;;  %v564_v4 = vsel %vm558_vm10, %v555_v63, 0.0  ;;  %v584_v9 = vsel %vm578_vm12, %v577_v2, 0.0  ;;  %v585_v15 = vsel %vm579_vm13, %v576_v5, 0.0  ;;  %744 = vmatpush.msra.mxu0 %v721_v60  ;;  %v719_v2 = vld [vmem:[%s3053_s7 + $0x20] sm:$0xff] }
 0x130   : > { %v566_v7 = vmul.f32 %v565_v56, %v563_v3  ;;  %v567_v8 = vmul.f32 %v565_v56, %v564_v4  ;;  %v587_v16 = vmul.f32 %v586_v6, %v584_v9  ;;  %v588_v17 = vmul.f32 %v586_v6, %v585_v15  ;;  %v717_v9 = vld [vmem:[%s3053_s7 + $0x10] sm:$0xff] }
 0x131   : > { %v594_v19 = vsel %vm593_vm14, %v591_v12, %v592_v10  ;;  %v595_v20 = vsel %vm593_vm14, %v592_v10, %v591_v12  ;;  %745 = vmatpush.msra.mxu0 %v720_v62 }
 0x132   : > { %v571_v13 = vadd.f32 %v2125_v1, %v566_v7  ;;  %v572_v14 = vadd.f32 %v2125_v1, %v567_v8  ;;  %v602_v22 = vsel %vm596_vm15, %v595_v20, 0.0  ;;  %v603_v23 = vsel %vm597_vm1, %v594_v19, 0.0  ;;  %v718_v7 = vld [vmem:[%s3053_s7 + $0x18] sm:$0xff] }
 0x133   : > { %v606_v25 = vmul.f32 %v604_v11, %v603_v23  ;;  %v605_v26 = vmul.f32 %v604_v11, %v602_v22  ;;  %746 = vmatpush.msra.mxu0 %v719_v2  ;;  %v716_v11 = vld [vmem:[%s3053_s7 + $0x8] sm:$0xff]  ;;  %v2472_v22 = vadd.s32 16, %v2341_v43  ;;  %vm1353_vm15 = vcmask 1040384  }
 0x134   : > { %v590_v21 = vadd.f32 %v588_v17, %v572_v14  ;;  %v589_v24 = vadd.f32 %v587_v16, %v571_v13  ;;  %v715_v14 = vld [vmem:[%s3053_s7] sm:$0xff]  ;;  %vm1355_vm1 = vcmask 1041408  }
 0x135   : > { %747 = vmatpush.msra.mxu0 %v718_v7 }
 0x136   : > { %v608_v27 = vadd.f32 %v606_v25, %v590_v21  ;;  %v607_v30 = vadd.f32 %v605_v26, %v589_v24 }
 0x137   : > { %748 = vmatpush.msra.mxu0 %v717_v9 }
 0x138   : > { %v2401_v31 = vadd.f32 %v611_v28, %v608_v27  ;;  %v612_v32 = vadd.f32 %v610_v29, %v607_v30  ;;  %v2492_v29 = vadd.s32 24, %v2341_v43 }
 0x139   : > { %749 = vmatpush.msra.mxu0 %v716_v11 }
 0x13a   : > { %v2064_v33 = vmul.f32 -1.442695, %v2401_v31  ;;  %v2063_v34 = vmul.f32 -1.442695, %v612_v32 }
 0x13b   : > { %750 = vmatpush.msra.mxu0 %v715_v14 }
 0x13c   : > { %2134 = vpow2.f32 %v2064_v33 }
 0x13d   : > { %2136 = vpow2.f32 %v2063_v34 }
 0x142   : > { %v2135_v37 = vpop.eup %2134 }
 0x143   : > { %v2137_v38 = vpop.eup %2136  ;;  %v621_v39 = vadd.f32 1.0, %v2135_v37 }
 0x144   : > { %v620_v41 = vadd.f32 1.0, %v2137_v38 }
 0x145   : > { %2138 = vrcp.f32 %v621_v39  ;;  %v648_v4 = vand.u32 2147483648, %v621_v39  ;;  %vm642_vm8 = vweird.f32 %v621_v39  ;;  %v646_v6 = vand.u32 2147483647, %v621_v39 }
 0x146   : > { %2140 = vrcp.f32 %v620_v41  ;;  %v633_v56 = vand.u32 2147483648, %v620_v41  ;;  %v631_v58 = vand.u32 2147483647, %v620_v41  ;;  %vm627_vm3 = vweird.f32 %v620_v41 }
 0x147   : > { %v649_v10 = vor.u32 1.1754944e-38, %v648_v4  ;;  %vm647_vm10 = vcmp.eq.f32.partialorder %v646_v6, 8.507059e+37 }
 0x148   : > { %v634_v63 = vor.u32 1.1754944e-38, %v633_v56  ;;  %vm632_vm5 = vcmp.eq.f32.partialorder %v631_v58, 8.507059e+37 }
 0x14b   : > { %v2139_v47 = vpop.eup %2138 }
 0x14c   : > { %v2141_v49 = vpop.eup %2140  ;;  %v638_v50 = vmul.f32 %v2139_v47, %v621_v39  ;;  %vm643_vm6 = vweird.f32 %v2139_v47 }
 0x14d   : > { %v623_v51 = vmul.f32 %v2141_v49, %v620_v41  ;;  %vm628_vm2 = vweird.f32 %v2141_v49  ;;  %vm644_vm9 = vmor %vm642_vm8, %vm643_vm6  ;;  %vm1365_vm6 = vcmask 1046528  }
 0x14e   : > { %v639_v53 = vsub.f32 1.0, %v638_v50  ;;  %vm629_vm4 = vmor %vm627_vm3, %vm628_vm2  ;;  %vm1357_vm2 = vcmask 1042432   ;;  %vm1359_vm3 = vcmask 1043456  }
 0x14f   : > { %v624_v54 = vsub.f32 1.0, %v623_v51  ;;  %v794_v51 = vld [vmem:[%s3055_s9] sm:$0xff] }
 0x150   : > { %v640_v59 = vmul.f32 %v2139_v47, %v639_v53  ;;  %v795_v53 = vld [vmem:[%s3055_s9 + $0x8] sm:$0xff]  ;;  %v796_v60 = vmul.f32 1.442695, %v794_v51 }
 0x151   : > { %v625_v57 = vmul.f32 %v2141_v49, %v624_v54 }
 0x152   : > { %v641_v1 = vadd.f32 %v2139_v47, %v640_v59 }
 0x153   : > { %v626_v61 = vadd.f32 %v2141_v49, %v625_v57 }
 0x154   : > { %v645_v8 = vsel %vm644_vm9, %v2139_v47, %v641_v1 }
 0x155   : > { %v630_v0 = vsel %vm629_vm4, %v2141_v49, %v626_v61  ;;  %v650_v12 = vsel %vm647_vm10, %v649_v10, %v645_v8  ;;  %v798_v61 = vmul.f32 1.442695, %v795_v53  ;;  %vm1361_vm4 = vcmask 1044480  }
 0x156   : > { %v635_v3 = vsel %vm632_vm5, %v634_v63, %v630_v0  ;;  %v2456_v13 = vmul.f32 %v650_v12, %v2401_v31  ;;  %vm1363_vm5 = vcmask 1045504  }
 0x157   : > { %v2440_v5 = vmul.f32 %v635_v3, %v612_v32 }
 0x159   : > { %2065 = vmatmul.msk.f32.vlgmr.msrb.gmra.mxu2 %vm662_vm7, %v2440_v5  ;;  %2067 = vmatmul.msk.f32.vlgmr.msra.gmra.mxu3 %vm662_vm7, %v2440_v5 }
 0x161   : > { %2066 = vmatmul.msk.f32.gmra.mxu2 %vm662_vm7, %v2456_v13  ;;  %2068 = vmatmul.msk.f32.gmra.mxu3 %vm662_vm7, %v2456_v13 }
 0x1dc   : > { %v686_v15 = vpop.f32.mrf.mxu2  ;;  %v709_v16 = vpop.f32.mrf.mxu3 }
 0x1dd   : > { %751 = vmatmul.f32.vlgmr.msra.gmra.mxu0 %v686_v15  ;;  %v926_v17 = vperm.slane %v709_v16, 2  ;;  %v913_v18 = vperm.slane %v709_v16, 1  ;;  %v900_v19 = vperm.slane %v709_v16, 0  ;;  %v2468_v21 = vperm.slane %v709_v16, 7 }
 0x1de   : > { %v939_v23 = vperm.slane %v709_v16, 3  ;;  %v2476_v24 = vperm.slane %v709_v16, 6  ;;  %v952_v25 = vperm.slane %v709_v16, 4  ;;  %v965_v26 = vperm.slane %v709_v16, 5 }
 0x1df   : > { %931 = vperm.xlu0 %2088, %v926_v17   ;;  %918 = vperm.xlu2 %2086, %v913_v18  }
 0x1e0   : > { %905 = vperm.xlu1 %2084, %v900_v19  }
 0x1e4   : > { %v689_v20 = vpop.f32.mrf.mxu2  ;;  %v2480_v27 = vpop.f32.mrf.mxu3 }
 0x1e5   : > { %754 = vmatmul.f32.gmra.mxu0 %v689_v20  ;;  %v2483_v28 = vperm.slane %v2480_v27, 0  ;;  %v2495_v30 = vperm.slane %v2480_v27, 2  ;;  %v2501_v31 = vperm.slane %v2480_v27, 5  ;;  %v2508_v32 = vperm.slane %v2480_v27, 6 }
 0x1e6   : > { %v2535_v49 = vperm.slane %v2480_v27, 3 }
 0x1e7   : > { %2090 = vset.pattern.permute.xlu0 %v2349_v45  ;;  %2087 = vset.pattern.permute.xlu2 %v2349_v45 }
 0x1e8   : > { %2085 = vset.pattern.permute.xlu1 %v2349_v45 }
 0x1ef   : > { %1002 = vperm.xlu0 %2090, %v2468_v21   ;;  %924 = vperm.xlu2 %2087, %v913_v18  }
 0x1f0   : > { %911 = vperm.xlu1 %2085, %v900_v19  }
 0x1f7   : > { %2093 = vset.pattern.permute.xlu0 %v2472_v22  ;;  %2089 = vset.pattern.permute.xlu2 %v2341_v43 }
 0x1f8   : > { %937 = vperm.xlu1 %2085, %v926_v17  }
 0x1ff   : > { %1080 = vperm.xlu0 %2093, %v926_v17   ;;  %944 = vperm.xlu2 %2089, %v939_v23  }
 0x200   : > { %950 = vperm.xlu1 %2085, %v939_v23  }
 0x207   : > { %1128 = vperm.xlu0 %2093, %v2476_v24   ;;  %957 = vperm.xlu2 %2089, %v952_v25  }
 0x208   : > { %963 = vperm.xlu1 %2085, %v952_v25  }
 0x20f   : > { %2100 = vset.pattern.permute.xlu0 %v2341_v43  ;;  %970 = vperm.xlu2 %2089, %v965_v26  }
 0x210   : > { %976 = vperm.xlu1 %2085, %v965_v26  }
 0x217   : > { %983 = vperm.xlu2 %2089, %v2476_v24   ;;  %1469 = vperm.xlu0 %2100, %v2483_v28  }
 0x218   : > { %989 = vperm.xlu1 %2085, %v2476_v24  }
 0x21f   : > { %996 = vperm.xlu2 %2089, %v2468_v21   ;;  %2103 = vset.pattern.permute.xlu0 %v2349_v45 }
 0x220   : > { %2091 = vset.pattern.permute.xlu1 %v2472_v22 }
 0x227   : > { %2092 = vset.pattern.permute.xlu2 %v2492_v29  ;;  %1501 = vperm.xlu0 %2103, %v2495_v30  }
 0x228   : > { %1056 = vperm.xlu1 %2091, %v900_v19  }
 0x22f   : > { %1062 = vperm.xlu2 %2092, %v900_v19   ;;  %2106 = vset.pattern.permute.xlu0 %v2341_v43 }
 0x230   : > { %1068 = vperm.xlu1 %2091, %v913_v18  }
 0x237   : > { %1074 = vperm.xlu2 %2092, %v913_v18   ;;  %1534 = vperm.xlu0 %2106, %v2501_v31  }
 0x238   : > { %2094 = vset.pattern.permute.xlu1 %v2492_v29 }
 0x239   : > { %v2511_v33 = vpop.permute.xlu2 %918 }
 0x23f   : > { %2095 = vset.pattern.permute.xlu2 %v2472_v22  ;;  %2109 = vset.pattern.permute.xlu0 %v2349_v45 }
 0x240   : > { %1086 = vperm.xlu1 %2094, %v926_v17  }
 0x247   : > { %1092 = vperm.xlu2 %2095, %v939_v23   ;;  %1553 = vperm.xlu0 %2109, %v2508_v32  }
 0x248   : > { %1098 = vperm.xlu1 %2094, %v939_v23  }
 0x249   : > { %v2515_v34 = vpop.permute.xlu2 %924 }
 0x24f   : > { %1104 = vperm.xlu2 %2095, %v952_v25   ;;  %2112 = vset.pattern.permute.xlu0 %v2472_v22 }
 0x250   : > { %2097 = vset.pattern.permute.xlu1 %v2472_v22 }
 0x251   : > { %v2528_v42 = vpop.permute.xlu0 %931 }
 0x252   : > { %v2522_v36 = vpop.permute.xlu1 %905 }
 0x257   : > { %2096 = vset.pattern.permute.xlu2 %v2492_v29  ;;  %1644 = vperm.xlu0 %2112, %v2495_v30  }
 0x258   : > { %1116 = vperm.xlu1 %2097, %v965_v26  }
 0x259   : > { %v2524_v40 = vpop.permute.xlu2 %944 }
 0x25a   : > { %v752_v37 = vpop.f32.mrf.mxu0 }
 0x25b   : > { %v753_v38 = vadd.f32 %v2126_v35, %v752_v37 }
 0x25d   : > { %v764_v39 = vand.u32 2147483647, %v753_v38  ;;  %v758_v7 = vmax.f32 %v753_v38, 0.0  ;;  %vm760_vm12 = vcmp.ne.f32.partialorder %v753_v38, %v753_v38 }
 0x25f   : > { %v766_v41 = vsub.f32 0.0, %v764_v39  ;;  %1110 = vperm.xlu2 %2096, %v952_v25   ;;  %2117 = vset.pattern.permute.xlu0 %v2492_v29 }
 0x260   : > { %2098 = vset.pattern.permute.xlu1 %v2492_v29 }
 0x261   : > { %v768_v44 = vmul.f32 1.442695, %v766_v41  ;;  %v2546_v54 = vpop.permute.xlu0 %1002  ;;  %v2548_v55 = vpop.permute.xlu2 %957 }
 0x262   : > { %v2530_v46 = vpop.permute.xlu1 %911  ;;  %v755_v47 = vpop.f32.mrf.mxu0 }
 0x263   : > { %2142 = vpow2.f32 %v768_v44  ;;  %v2532_v48 = vadd.f32 %v2126_v35, %v755_v47 }
 0x265   : > { %v765_v50 = vand.u32 2147483647, %v2532_v48  ;;  %vm761_vm14 = vcmp.ne.f32.partialorder %v2532_v48, %v2532_v48 }
 0x267   : > { %1122 = vperm.xlu2 %2096, %v965_v26   ;;  %1662 = vperm.xlu0 %2117, %v2535_v49   ;;  %v767_v57 = vsub.f32 0.0, %v765_v50 }
 0x268   : > { %1134 = vperm.xlu1 %2098, %v2476_v24  }
 0x269   : > { %v2143_v52 = vpop.eup %2142  ;;  %v770_v62 = vmul.f32 1.442695, %v767_v57  ;;  %v2556_v6 = vpop.permute.xlu2 %970 }
 0x26a   : > { %v772_v56 = vadd.f32 1.0, %v2143_v52  ;;  %v2550_v58 = vpop.permute.xlu1 %937  ;;  %v775_v59 = vmul.f32 -0.5, %v2143_v52  ;;  %v778_v0 = vand.u32 2147483647, %v2143_v52 }
 0x26c   : > { %2144 = vlog2.f32 %v772_v56  ;;  %v776_v63 = vadd.f32 1.0, %v775_v59  ;;  %vm779_vm11 = vcmp.lt.f32.partialorder %v778_v0, 0.0004427343 }
 0x26d   : > { %2146 = vpow2.f32 %v796_v60 }
 0x26e   : > { %2148 = vpow2.f32 %v798_v61  ;;  %v777_v4 = vmul.f32 %v2143_v52, %v776_v63 }
 0x26f   : > { %2099 = vset.pattern.permute.xlu2 %v2472_v22  ;;  %2120 = vset.pattern.permute.xlu0 %v2472_v22  ;;  %2150 = vpow2.f32 %v770_v62 }
 0x270   : > { %1146 = vperm.xlu1 %2098, %v2468_v21  }
 0x271   : > { %v1081_v1 = vpop.permute.xlu0 %1080  ;;  %v2595_v52 = vpop.permute.xlu2 %983 }
 0x272   : > { %v2145_v2 = vpop.eup %2144  ;;  %1152 = vst.msk [vmem:[#allocation4 + $0x20] sm:$0xff] %vm662_vm7, %v1081_v1  ;;  %v2558_v8 = vpop.permute.xlu1 %950 }
 0x273   : > { %v774_v3 = vmul.f32 0.6931472, %v2145_v2  ;;  %v2147_v9 = vpop.eup %2146 }
 0x274   : > { %v2149_v11 = vpop.eup %2148  ;;  %v2567_v16 = vsub.f32 0.0, %v2147_v9 }
 0x275   : > { %v780_v10 = vsel %vm779_vm11, %v777_v4, %v774_v3  ;;  %v2562_v14 = vpop.eup %2150  ;;  %v2569_v17 = vsub.f32 0.0, %v2149_v11 }
 0x276   : > { %v790_v12 = vadd.f32 %v780_v10, %v758_v7  ;;  %v784_v11 = vmul.f32 -0.5, %v2562_v14 }
 0x277   : > { %1140 = vperm.xlu2 %2099, %v2468_v21   ;;  %1692 = vperm.xlu0 %2120, %v2508_v32  }
 0x278   : > { %v2564_v15 = vsel %vm760_vm12, %v753_v38, %v790_v12  ;;  %2101 = vset.pattern.permute.xlu1 %v2349_v45  ;;  %v781_v38 = vadd.f32 1.0, %v2562_v14 }
 0x279   : > { %v805_v18 = vrot.slane %v2564_v15, 1  ;;  %v806_v19 = vrot.slane %v2564_v15, 2  ;;  %v1129_v20 = vpop.permute.xlu0 %1128  ;;  %v808_v23 = vrot.slane %v2564_v15, 4  ;;  %v809_v21 = vrot.slane %v2564_v15, 5 }
 0x27a   : > { %v810_v24 = vrot.slane %v2564_v15, 6  ;;  %v811_v25 = vrot.slane %v2564_v15, 7  ;;  %1160 = vst.msk [vmem:[#allocation4 + $0x60] sm:$0xff] %vm662_vm7, %v1129_v20  ;;  %v812_v26 = vperm.slane %v2564_v15, 0  ;;  %v2603_v60 = vpop.permute.xlu1 %963  ;;  %v2607_v61 = vmul.f32 %v2564_v15, %v2440_v5 }
 0x27b   : > { %v2579_v35 = vperm.slane %v805_v18, 0  ;;  %v2581_v37 = vperm.slane %v806_v19, 0  ;;  %v2584_v39 = vperm.slane %v808_v23, 0  ;;  %v817_v41 = vperm.slane %v809_v21, 0 }
 0x27c   : > { %v2586_v44 = vperm.slane %v810_v24, 0  ;;  %v2588_v47 = vperm.slane %v811_v25, 0  ;;  %v829_v50 = vmul.f32 %v812_v26, %v2569_v17  ;;  %2152 = vlog2.f32 %v781_v38  ;;  %v997_v38 = vpop.permute.xlu2 %996 }
 0x27d   : > { %v831_v51 = vmul.f32 %v2579_v35, %v2569_v17  ;;  %v833_v53 = vmul.f32 %v2581_v37, %v2569_v17  ;;  %v836_v56 = vmul.f32 %v2584_v39, %v2567_v16  ;;  %v838_v57 = vmul.f32 %v817_v41, %v2567_v16 }
 0x27e   : > { %v839_v59 = vmul.f32 %v817_v41, %v2569_v17  ;;  %v841_v62 = vmul.f32 %v2586_v44, %v2569_v17  ;;  %v846_v63 = vmul.f32 1.442695, %v829_v50  ;;  %v843_v0 = vmul.f32 %v2588_v47, %v2569_v17 }
 0x27f   : > { %2102 = vset.pattern.permute.xlu2 %v2341_v43  ;;  %2123 = vset.pattern.permute.xlu0 %v2492_v29  ;;  %v850_v1 = vmul.f32 1.442695, %v831_v51  ;;  %v854_v2 = vmul.f32 1.442695, %v833_v53  ;;  %v860_v3 = vmul.f32 1.442695, %v836_v56 }
 0x280   : > { %1475 = vperm.xlu1 %2101, %v2483_v28   ;;  %2154 = vpow2.f32 %v846_v63  ;;  %v864_v4 = vmul.f32 1.442695, %v838_v57  ;;  %v866_v7 = vmul.f32 1.442695, %v839_v59  ;;  %v870_v9 = vmul.f32 1.442695, %v841_v62 }
 0x281   : > { %2156 = vpow2.f32 %v850_v1  ;;  %v1004_v10 = vperm.slane %v2607_v61, 0  ;;  %v874_v12 = vmul.f32 1.442695, %v843_v0  ;;  %v899_v18 = vrot.slane %v2607_v61, 7 }
 0x282   : > { %2158 = vpow2.f32 %v854_v2  ;;  %v896_v19 = vrot.slane %v2607_v61, 4  ;;  %v2622_v23 = vperm.slane %v2480_v27, 1  ;;  %v2153_v21 = vpop.eup %2152  ;;  %v785_v25 = vadd.f32 1.0, %v784_v11  ;;  %v2628_v51 = vpop.permute.xlu1 %976 }
 0x283   : > { %2160 = vpow2.f32 %v860_v3  ;;  %v1020_v20 = vmul.f32 %v1004_v10, %v2522_v36  ;;  %v1011_v50 = vperm.slane %v899_v18, 0  ;;  %v787_v36 = vand.u32 2147483647, %v2562_v14 }
 0x284   : > { %2162 = vpow2.f32 %v864_v4  ;;  %v1008_v56 = vperm.slane %v896_v19, 0  ;;  %v783_v57 = vmul.f32 0.6931472, %v2153_v21  ;;  %v786_v63 = vmul.f32 %v2562_v14, %v785_v25 }
 0x285   : > { %2164 = vpow2.f32 %v866_v7  ;;  %1036 = vst.msk [vmem:[#allocation3] sm:$0xff] %vm662_vm7, %v1020_v20  ;;  %v897_v0 = vrot.slane %v2607_v61, 5  ;;  %v1035_v2 = vmul.f32 %v1011_v50, %v2546_v54  ;;  %vm788_vm13 = vcmp.lt.f32.partialorder %v787_v36, 0.0004427343 }
 0x286   : > { %v2155_v24 = vpop.eup %2154  ;;  %2166 = vpow2.f32 %v870_v9  ;;  %v894_v3 = vrot.slane %v2607_v61, 2  ;;  %v1028_v7 = vmul.f32 %v1008_v56, %v2548_v55  ;;  %v789_v9 = vsel %vm788_vm13, %v786_v63, %v783_v57 }
 0x287   : > { %1482 = vperm.xlu2 %2102, %v2622_v23   ;;  %v2157_v41 = vpop.eup %2156  ;;  %2168 = vpow2.f32 %v874_v12  ;;  %877 = vst.msk [vmem:[#allocation2 + $0x8] sm:$0xff] %vm662_vm7, %v2155_v24  ;;  %v1021_v14 = vmul.f32 %v1004_v10, %v2530_v46  ;;  %v759_v12 = vmax.f32 %v2532_v48, 0.0  ;;  %v1009_v18 = vperm.slane %v897_v0, 0 }
 0x288   : > { %1488 = vperm.xlu1 %2101, %v2622_v23   ;;  %v2159_v53 = vpop.eup %2158  ;;  %879 = vst.msk [vmem:[#allocation2 + $0x18] sm:$0xff] %vm662_vm7, %v2157_v41  ;;  %v898_v54 = vrot.slane %v2607_v61, 6  ;;  %v1006_v21 = vperm.slane %v894_v3, 0  ;;  %v895_v41 = vrot.slane %v2607_v61, 3  ;;  %v1029_v3 = vmul.f32 %v1008_v56, %v2603_v60 }
 0x289   : > { %v2161_v59 = vpop.eup %2160  ;;  %881 = vst.msk [vmem:[#allocation2 + $0x28] sm:$0xff] %vm662_vm7, %v2159_v53  ;;  %v1063_v19 = vpop.permute.xlu2 %1062  ;;  %v791_v20 = vadd.f32 %v789_v9, %v759_v12  ;;  %v1030_v46 = vmul.f32 %v1009_v18, %v2556_v6  ;;  %v807_v53 = vrot.slane %v2564_v15, 3  ;;  %v1034_v6 = vmul.f32 %v1011_v50, %v997_v38 }
 0x28a   : > { %v2163_v62 = vpop.eup %2162  ;;  %884 = vst.msk [vmem:[#allocation2 + $0x40] sm:$0xff] %vm662_vm7, %v2161_v59  ;;  %v990_v55 = vpop.permute.xlu1 %989  ;;  %v1010_v10 = vperm.slane %v898_v54, 0  ;;  %v1024_v25 = vmul.f32 %v1006_v21, %v2528_v42  ;;  %v1025_v36 = vmul.f32 %v1006_v21, %v2550_v58  ;;  %v1007_v63 = vperm.slane %v895_v41, 0 }
 0x28b   : > { %v2165_v1 = vpop.eup %2164  ;;  %886 = vst.msk [vmem:[#allocation2 + $0x50] sm:$0xff] %vm662_vm7, %v2163_v62  ;;  %v2655_v24 = vsel %vm761_vm14, %v2532_v48, %v791_v20  ;;  %v1470_v57 = vpop.permute.xlu0 %1469  ;;  %v2677_v38 = vperm.slane %v807_v53, 0  ;;  %v893_v56 = vrot.slane %v2607_v61, 1  ;;  %v830_v9 = vmul.f32 %v2579_v35, %v2567_v16 }
 0x28c   : > { %v2167_v4 = vpop.eup %2166  ;;  %887 = vst.msk [vmem:[#allocation2 + $0x58] sm:$0xff] %vm662_vm7, %v2165_v1  ;;  %v2663_v59 = vmul.f32 %v2655_v24, %v2456_v13  ;;  %v1376_v62 = vperm.slane %v2655_v24, 0  ;;  %v1032_v48 = vmul.f32 %v1010_v10, %v2595_v52  ;;  %v1369_v42 = vrot.slane %v2655_v24, 1 }
 0x28d   : > { %v2169_v11 = vpop.eup %2168  ;;  %889 = vst.msk [vmem:[#allocation2 + $0x68] sm:$0xff] %vm662_vm7, %v2167_v4  ;;  %v1370_v58 = vrot.slane %v2655_v24, 2  ;;  %v1026_v1 = vmul.f32 %v1007_v63, %v2524_v40  ;;  %v1031_v4 = vmul.f32 %v1009_v18, %v2628_v51  ;;  %v828_v40 = vmul.f32 %v812_v26, %v2567_v16 }
 0x28e   : > { %891 = vst.msk [vmem:[#allocation2 + $0x78] sm:$0xff] %vm662_vm7, %v2169_v11  ;;  %v1393_v50 = vmul.f32 %v1376_v62, %v2569_v17  ;;  %v1568_v60 = vperm.slane %v2663_v59, 0  ;;  %v1033_v51 = vmul.f32 %v1010_v10, %v990_v55  ;;  %v832_v12 = vmul.f32 %v2581_v37, %v2567_v16  ;;  %v2709_v37 = vld [vmem:[#allocation3] sm:$0xff] }
 0x28f   : > { %1051 = vst.msk [vmem:[#allocation3 + $0x78] sm:$0xff] %vm662_vm7, %v1035_v2  ;;  %1495 = vperm.xlu2 %2102, %v2495_v30   ;;  %v1027_v2 = vmul.f32 %v1007_v63, %v2558_v8  ;;  %v1377_v8 = vperm.slane %v1369_v42, 0  ;;  %v1378_v11 = vperm.slane %v1370_v58, 0  ;;  %v1372_v61 = vrot.slane %v2655_v24, 4 }
 0x290   : > { %1044 = vst.msk [vmem:[#allocation3 + $0x40] sm:$0xff] %vm662_vm7, %v1028_v7  ;;  %2104 = vset.pattern.permute.xlu1 %v2341_v43  ;;  %v1458_v7 = vrot.slane %v2663_v59, 2  ;;  %v1584_v15 = vmul.f32 %v1568_v60, %v1470_v57  ;;  %v1410_v18 = vmul.f32 1.442695, %v1393_v50  ;;  %v834_v54 = vmul.f32 %v2677_v38, %v2567_v16 }
 0x291   : > { %1037 = vst.msk [vmem:[#allocation3 + $0x8] sm:$0xff] %vm662_vm7, %v1021_v14  ;;  %v1075_v0 = vpop.permute.xlu2 %1074  ;;  %v1371_v14 = vrot.slane %v2655_v24, 3  ;;  %v844_v20 = vmul.f32 1.442695, %v828_v40  ;;  %v1395_v21 = vmul.f32 %v1377_v8, %v2569_v17  ;;  %v1005_v55 = vperm.slane %v893_v56, 0 }
 0x292   : > { %1046 = vst.msk [vmem:[#allocation3 + $0x50] sm:$0xff] %vm662_vm7, %v1030_v46  ;;  %v2701_v35 = vperm.slane %v1458_v7, 0  ;;  %v848_v46 = vmul.f32 1.442695, %v830_v9  ;;  %v1397_v10 = vmul.f32 %v1378_v11, %v2569_v17  ;;  %v2713_v41 = vperm.slane %v2480_v27, 4 }
 0x293   : > { %1040 = vst.msk [vmem:[#allocation3 + $0x20] sm:$0xff] %vm662_vm7, %v1024_v25  ;;  %v2715_v53 = vperm.slane %v1371_v14, 0  ;;  %v1392_v57 = vmul.f32 %v1376_v62, %v2567_v16  ;;  %2170 = vpow2.f32 %v1410_v18  ;;  %v856_v42 = vmul.f32 1.442695, %v834_v54 }
 0x294   : > { %1041 = vst.msk [vmem:[#allocation3 + $0x28] sm:$0xff] %vm662_vm7, %v1025_v36  ;;  %v1414_v63 = vmul.f32 1.442695, %v1395_v21  ;;  %2172 = vpow2.f32 %v844_v20  ;;  %v1418_v50 = vmul.f32 1.442695, %v1397_v10  ;;  %v835_v56 = vmul.f32 %v2677_v38, %v2569_v17 }
 0x295   : > { %1048 = vst.msk [vmem:[#allocation3 + $0x60] sm:$0xff] %vm662_vm7, %v1032_v48  ;;  %v2720_v48 = vperm.slane %v1372_v61, 0  ;;  %2174 = vpow2.f32 %v848_v46  ;;  %v1408_v7 = vmul.f32 1.442695, %v1392_v57  ;;  %v837_v46 = vmul.f32 %v2584_v39, %v2569_v17 }
 0x296   : > { %1050 = vst.msk [vmem:[#allocation3 + $0x70] sm:$0xff] %vm662_vm7, %v1034_v6  ;;  %v1394_v6 = vmul.f32 %v1377_v8, %v2567_v16  ;;  %v858_v10 = vmul.f32 1.442695, %v835_v56 }
 0x297   : > { %2105 = vset.pattern.permute.xlu2 %v2349_v45  ;;  %1042 = vst.msk [vmem:[#allocation3 + $0x30] sm:$0xff] %vm662_vm7, %v1026_v1  ;;  %v1461_v1 = vrot.slane %v2663_v59, 5 }
 0x298   : > { %1508 = vperm.xlu1 %2104, %v2535_v49   ;;  %1043 = vst.msk [vmem:[#allocation3 + $0x38] sm:$0xff] %vm662_vm7, %v1027_v2  ;;  %v1022_v2 = vmul.f32 %v1005_v55, %v2511_v33  ;;  %v1400_v33 = vmul.f32 %v2720_v48, %v2567_v16  ;;  %v1412_v40 = vmul.f32 1.442695, %v1394_v6  ;;  %v1169_v6 = vld [vmem:[#allocation3 + $0x8] sm:$0xff] }
 0x299   : > { %1045 = vst.msk [vmem:[#allocation3 + $0x48] sm:$0xff] %vm662_vm7, %v1029_v3  ;;  %v1502_v26 = vpop.permute.xlu0 %1501  ;;  %v1396_v3 = vmul.f32 %v1378_v11, %v2567_v16  ;;  %v2740_v8 = vperm.slane %v1461_v1, 0  ;;  %v2171_v9 = vpop.eup %2170 }
 0x29a   : > { %v1057_v52 = vpop.permute.xlu1 %1056  ;;  %1047 = vst.msk [vmem:[#allocation3 + $0x58] sm:$0xff] %vm662_vm7, %v1031_v4  ;;  %v1589_v25 = vmul.f32 %v2701_v35, %v1502_v26  ;;  %v1398_v4 = vmul.f32 %v2715_v53, %v2567_v16  ;;  %v1374_v26 = vrot.slane %v2655_v24, 6  ;;  %v1424_v54 = vmul.f32 1.442695, %v1400_v33 }
 0x29b   : > { %1149 = vst.msk [vmem:[#allocation4 + $0x8] sm:$0xff] %vm662_vm7, %v1063_v19  ;;  %v852_v19 = vmul.f32 1.442695, %v832_v12  ;;  %v2726_v62 = vld [vmem:[#allocation3 + $0x28] sm:$0xff]  ;;  %v1416_v11 = vmul.f32 1.442695, %v1396_v3  ;;  %v1399_v3 = vmul.f32 %v2715_v53, %v2569_v17 }
 0x29c   : > { %1049 = vst.msk [vmem:[#allocation3 + $0x68] sm:$0xff] %vm662_vm7, %v1033_v51  ;;  %v1420_v12 = vmul.f32 1.442695, %v1398_v4 }
 0x29d   : > { %1600 = vst.msk [vmem:[#allocation3] sm:$0xff] %vm662_vm7, %v1584_v15  ;;  %2176 = vpow2.f32 %v852_v19  ;;  %v2173_v15 = vpop.eup %2172  ;;  %v1375_v19 = vrot.slane %v2655_v24, 7 }
 0x29e   : > { %1151 = vst.msk [vmem:[#allocation4 + $0x18] sm:$0xff] %vm662_vm7, %v1075_v0  ;;  %v1023_v0 = vmul.f32 %v1005_v55, %v2515_v34  ;;  %2178 = vpow2.f32 %v856_v42  ;;  %v1165_v34 = vld [vmem:[#allocation2 + $0x8] sm:$0xff]  ;;  %v2175_v18 = vpop.eup %2174  ;;  %v2753_v55 = vld [vmem:[#allocation3 + $0x50] sm:$0xff]  ;;  %v1187_v42 = vld [vmem:[#allocation2 + $0x18] sm:$0xff] }
 0x29f   : > { %1514 = vperm.xlu2 %2105, %v2535_v49   ;;  %1148 = vst.msk [vmem:[#allocation4] sm:$0xff] %vm662_vm7, %v1057_v52  ;;  %v1373_v52 = vrot.slane %v2655_v24, 5  ;;  %2180 = vpow2.f32 %v1414_v63  ;;  %v1167_v20 = vmul.f32 0.0, %v1165_v34  ;;  %v842_v63 = vmul.f32 %v2588_v47, %v2567_v16 }
 0x2a0   : > { %1521 = vperm.xlu1 %2104, %v2713_v41   ;;  %1605 = vst.msk [vmem:[#allocation3 + $0x28] sm:$0xff] %vm662_vm7, %v1589_v25  ;;  %2182 = vpow2.f32 %v1418_v50  ;;  %v862_v50 = vmul.f32 1.442695, %v837_v46  ;;  %v1383_v4 = vperm.slane %v1375_v19, 0 }
 0x2a1   : > { %v1093_v36 = vpop.permute.xlu2 %1092  ;;  %1038 = vst.msk [vmem:[#allocation3 + $0x10] sm:$0xff] %vm662_vm7, %v1022_v2  ;;  %2184 = vpow2.f32 %v1408_v7  ;;  %v1381_v38 = vperm.slane %v1373_v52, 0  ;;  %v2766_v2 = vadd.f32 %v1169_v6, %v1167_v20  ;;  %v2790_v20 = vld [vmem:[#allocation2 + $0x40] sm:$0xff] }
 0x2a2   : > { %v1069_v58 = vpop.permute.xlu1 %1068  ;;  %1154 = vst.msk [vmem:[#allocation4 + $0x30] sm:$0xff] %vm662_vm7, %v1093_v36  ;;  %2186 = vpow2.f32 %v1412_v40  ;;  %v840_v36 = vmul.f32 %v2586_v44, %v2567_v16  ;;  %v2768_v44 = vld [vmem:[#allocation2 + $0x28] sm:$0xff]  ;;  %v872_v40 = vmul.f32 1.442695, %v842_v63  ;;  %v1407_v46 = vmul.f32 %v1383_v4, %v2569_v17 }
 0x2a3   : > { %1150 = vst.msk [vmem:[#allocation4 + $0x10] sm:$0xff] %vm662_vm7, %v1069_v58  ;;  %v2177_v21 = vpop.eup %2176  ;;  %2188 = vpow2.f32 %v1416_v11  ;;  %v1382_v58 = vperm.slane %v1374_v26, 0  ;;  %v1402_v1 = vmul.f32 %v1381_v38, %v2567_v16  ;;  %v1403_v7 = vmul.f32 %v1381_v38, %v2569_v17 }
 0x2a4   : > { %1039 = vst.msk [vmem:[#allocation3 + $0x18] sm:$0xff] %vm662_vm7, %v1023_v0  ;;  %v2179_v25 = vpop.eup %2178  ;;  %2190 = vpow2.f32 %v1420_v12  ;;  %v868_v0 = vmul.f32 1.442695, %v840_v36  ;;  %v1422_v26 = vmul.f32 1.442695, %v1399_v3  ;;  %v1462_v12 = vrot.slane %v2663_v59, 6 }
 0x2a5   : > { %876 = vst.msk [vmem:[#allocation2] sm:$0xff] %vm662_vm7, %v2173_v15  ;;  %v2181_v57 = vpop.eup %2180  ;;  %2192 = vpow2.f32 %v1424_v54  ;;  %v1405_v53 = vmul.f32 %v1382_v58, %v2569_v17  ;;  %v1428_v56 = vmul.f32 1.442695, %v1402_v1  ;;  %v1401_v15 = vmul.f32 %v2720_v48, %v2569_v17 }
 0x2a6   : > { %878 = vst.msk [vmem:[#allocation2 + $0x10] sm:$0xff] %vm662_vm7, %v2175_v18  ;;  %v2183_v39 = vpop.eup %2182  ;;  %2194 = vpow2.f32 %v858_v10  ;;  %v1404_v18 = vmul.f32 %v1382_v58, %v2567_v16  ;;  %v1406_v48 = vmul.f32 %v1383_v4, %v2567_v16  ;;  %v1430_v10 = vmul.f32 1.442695, %v1403_v7  ;;  %v2810_v4 = vld [vmem:[#allocation3 + $0x68] sm:$0xff] }
 0x2a7   : > { %1527 = vperm.xlu2 %2105, %v2713_v41   ;;  %880 = vst.msk [vmem:[#allocation2 + $0x20] sm:$0xff] %vm662_vm7, %v2177_v21  ;;  %v2185_v24 = vpop.eup %2184  ;;  %2196 = vpow2.f32 %v862_v50  ;;  %v1426_v6 = vmul.f32 1.442695, %v1401_v15 }
 0x2a8   : > { %2107 = vset.pattern.permute.xlu1 %v2349_v45  ;;  %882 = vst.msk [vmem:[#allocation2 + $0x30] sm:$0xff] %vm662_vm7, %v2179_v25  ;;  %v2187_v47 = vpop.eup %2186  ;;  %2198 = vpow2.f32 %v868_v0  ;;  %v1191_v16 = vld [vmem:[#allocation3 + $0x10] sm:$0xff]  ;;  %v1432_v17 = vmul.f32 1.442695, %v1404_v18  ;;  %v1438_v0 = vmul.f32 1.442695, %v1407_v46 }
 0x2a9   : > { %v1105_v51 = vpop.permute.xlu2 %1104  ;;  %v1535_v14 = vpop.permute.xlu0 %1534  ;;  %1441 = vst.msk [vmem:[#allocation2 + $0x8] sm:$0xff] %vm662_vm7, %v2171_v9  ;;  %2200 = vpow2.f32 %v872_v40  ;;  %v1215_v40 = vld [vmem:[#allocation3 + $0x20] sm:$0xff] }
 0x2aa   : > { %1156 = vst.msk [vmem:[#allocation4 + $0x40] sm:$0xff] %vm662_vm7, %v1105_v51  ;;  %v1594_v61 = vmul.f32 %v2740_v8, %v1535_v14  ;;  %v2189_v34 = vpop.eup %2188  ;;  %v1189_v51 = vmul.f32 %v1187_v42, %v2766_v2  ;;  %2202 = vpow2.f32 %v1428_v56  ;;  %v2799_v42 = vperm.slane %v1462_v12, 0  ;;  %v1282_v56 = vld [vmem:[#allocation2 + $0x50] sm:$0xff] }
 0x2ab   : > { %1443 = vst.msk [vmem:[#allocation2 + $0x18] sm:$0xff] %vm662_vm7, %v2181_v57  ;;  %v2191_v14 = vpop.eup %2190  ;;  %v1192_v25 = vld [vmem:[#allocation3 + $0x18] sm:$0xff]  ;;  %2204 = vpow2.f32 %v1422_v26 }
 0x2ac   : > { %1610 = vst.msk [vmem:[#allocation3 + $0x50] sm:$0xff] %vm662_vm7, %v1594_v61  ;;  %v1164_v52 = vld [vmem:[#allocation2] sm:$0xff]  ;;  %v2193_v61 = vpop.eup %2192  ;;  %v2796_v19 = vadd.f32 %v1192_v25, %v1189_v51  ;;  %2206 = vpow2.f32 %v1430_v10 }
 0x2ad   : > { %1445 = vst.msk [vmem:[#allocation2 + $0x28] sm:$0xff] %vm662_vm7, %v2183_v39  ;;  %v1166_v9 = vmul.f32 0.0, %v1164_v52  ;;  %v1186_v11 = vld [vmem:[#allocation2 + $0x10] sm:$0xff]  ;;  %v2195_v21 = vpop.eup %2194 }
 0x2ae   : > { %1440 = vst.msk [vmem:[#allocation2] sm:$0xff] %vm662_vm7, %v2185_v24  ;;  %v1210_v54 = vld [vmem:[#allocation2 + $0x20] sm:$0xff]  ;;  %v2197_v1 = vpop.eup %2196  ;;  %v1436_v24 = vmul.f32 1.442695, %v1406_v48  ;;  %v1213_v52 = vmul.f32 %v2768_v44, %v2796_v19  ;;  %v1239_v48 = vld [vmem:[#allocation3 + $0x30] sm:$0xff] }
 0x2af   : > { %2108 = vset.pattern.permute.xlu2 %v2341_v43  ;;  %1442 = vst.msk [vmem:[#allocation2 + $0x10] sm:$0xff] %vm662_vm7, %v2187_v47  ;;  %v2787_v38 = vadd.f32 %v2709_v37, %v1166_v9  ;;  %v1234_v36 = vld [vmem:[#allocation2 + $0x30] sm:$0xff]  ;;  %v1434_v37 = vmul.f32 1.442695, %v1405_v53  ;;  %v2199_v47 = vpop.eup %2198 }
 0x2b0   : > { %1540 = vperm.xlu1 %2107, %v2501_v31   ;;  %1444 = vst.msk [vmem:[#allocation2 + $0x20] sm:$0xff] %vm662_vm7, %v2189_v34 }
 0x2b1   : > { %v1188_v57 = vmul.f32 %v1186_v11, %v2787_v38  ;;  %1446 = vst.msk [vmem:[#allocation2 + $0x30] sm:$0xff] %vm662_vm7, %v2191_v14  ;;  %2208 = vpow2.f32 %v1434_v37  ;;  %v1218_v11 = vadd.f32 %v2726_v62, %v1213_v52  ;;  %v1283_v14 = vld [vmem:[#allocation2 + $0x58] sm:$0xff]  ;;  %v2847_v52 = vpop.f32.mrf.mxu1 }
 0x2b2   : > { %v1087_v33 = vpop.permute.xlu1 %1086  ;;  %1448 = vst.msk [vmem:[#allocation2 + $0x40] sm:$0xff] %vm662_vm7, %v2193_v61  ;;  %2210 = vpow2.f32 %v1426_v6  ;;  %v2825_v61 = vld [vmem:[#allocation2 + $0x68] sm:$0xff]  ;;  %v2835_v37 = vld [vmem:[#allocation2 + $0x78] sm:$0xff] }
 0x2b3   : > { %1153 = vst.msk [vmem:[#allocation4 + $0x28] sm:$0xff] %vm662_vm7, %v1087_v33  ;;  %v2802_v58 = vadd.f32 %v1191_v16, %v1188_v57  ;;  %v2201_v33 = vpop.eup %2200  ;;  %2212 = vpow2.f32 %v1432_v17  ;;  %v1240_v57 = vld [vmem:[#allocation3 + $0x38] sm:$0xff]  ;;  %v1220_v17 = vld [vmem:[#allocation4 + $0x20] sm:$0xff] }
 0x2b4   : > { %883 = vst.msk [vmem:[#allocation2 + $0x38] sm:$0xff] %vm662_vm7, %v2195_v21  ;;  %v2203_v34 = vpop.eup %2202  ;;  %2214 = vpow2.f32 %v1436_v24 }
 0x2b5   : > { %v1212_v7 = vmul.f32 %v1210_v54, %v2802_v58  ;;  %885 = vst.msk [vmem:[#allocation2 + $0x48] sm:$0xff] %vm662_vm7, %v2197_v1  ;;  %v2205_v9 = vpop.eup %2204  ;;  %2216 = vpow2.f32 %v1438_v0 }
 0x2b6   : > { %888 = vst.msk [vmem:[#allocation2 + $0x60] sm:$0xff] %vm662_vm7, %v2199_v47  ;;  %v2207_v44 = vpop.eup %2206  ;;  %v1196_v47 = vld [vmem:[#allocation4 + $0x10] sm:$0xff] }
 0x2b7   : > { %1547 = vperm.xlu2 %2108, %v2508_v32   ;;  %v2816_v53 = vadd.f32 %v1215_v40, %v1212_v7  ;;  %890 = vst.msk [vmem:[#allocation2 + $0x70] sm:$0xff] %vm662_vm7, %v2201_v33  ;;  %v2209_v15 = vpop.eup %2208  ;;  %v1264_v7 = vld [vmem:[#allocation3 + $0x48] sm:$0xff]  ;;  %v1172_v33 = vld [vmem:[#allocation4] sm:$0xff] }
 0x2b8   : > { %2110 = vset.pattern.permute.xlu1 %v2472_v22  ;;  %1450 = vst.msk [vmem:[#allocation2 + $0x50] sm:$0xff] %vm662_vm7, %v2203_v34  ;;  %v2211_v18 = vpop.eup %2210 }
 0x2b9   : > { %v1111_v63 = vpop.permute.xlu2 %1110  ;;  %v1554_v39 = vpop.permute.xlu0 %1553  ;;  %v1236_v12 = vmul.f32 %v1234_v36, %v2816_v53  ;;  %1451 = vst.msk [vmem:[#allocation2 + $0x58] sm:$0xff] %vm662_vm7, %v2207_v44 }
 0x2ba   : > { %1157 = vst.msk [vmem:[#allocation4 + $0x48] sm:$0xff] %vm662_vm7, %v1111_v63  ;;  %v1099_v3 = vpop.permute.xlu1 %1098  ;;  %v1597_v50 = vmul.f32 %v2799_v42, %v1554_v39  ;;  %v2213_v62 = vpop.eup %2212  ;;  %v1221_v0 = vld [vmem:[#allocation4 + $0x28] sm:$0xff] }
 0x2bb   : > { %1155 = vst.msk [vmem:[#allocation4 + $0x38] sm:$0xff] %vm662_vm7, %v1099_v3  ;;  %v1235_v51 = vld [vmem:[#allocation2 + $0x38] sm:$0xff]  ;;  %v2215_v21 = vpop.eup %2214  ;;  %v1241_v25 = vadd.f32 %v1239_v48, %v1236_v12  ;;  %v1263_v3 = vld [vmem:[#allocation3 + $0x40] sm:$0xff]  ;;  %v1223_v44 = vmul.f32 %v1221_v0, %v1218_v11  ;;  %v1174_v12 = vmul.f32 %v1172_v33, %v2787_v38 }
 0x2bc   : > { %1613 = vst.msk [vmem:[#allocation3 + $0x68] sm:$0xff] %vm662_vm7, %v1597_v50  ;;  %v1237_v54 = vmul.f32 %v1235_v51, %v1218_v11  ;;  %v1259_v46 = vld [vmem:[#allocation2 + $0x48] sm:$0xff]  ;;  %v2217_v10 = vpop.eup %2216 }
 0x2bd   : > { %1447 = vst.msk [vmem:[#allocation2 + $0x38] sm:$0xff] %vm662_vm7, %v2205_v9  ;;  %v2833_v36 = vld [vmem:[#allocation2 + $0x60] sm:$0xff]  ;;  %v1260_v63 = vmul.f32 %v2790_v20, %v1241_v25  ;;  %v1197_v20 = vld [vmem:[#allocation4 + $0x18] sm:$0xff]  ;;  %v1198_v9 = vmul.f32 %v1196_v47, %v2802_v58  ;;  %v1225_v48 = vsel %vm662_vm7, %v1223_v44, 0.0 }
 0x2be   : > { %1453 = vst.msk [vmem:[#allocation2 + $0x68] sm:$0xff] %vm662_vm7, %v2209_v15  ;;  %v2837_v6 = vld [vmem:[#allocation2 + $0x70] sm:$0xff]  ;;  %v1242_v16 = vadd.f32 %v1240_v57, %v1237_v54 }
 0x2bf   : > { %2111 = vset.pattern.permute.xlu2 %v2492_v29  ;;  %1449 = vst.msk [vmem:[#allocation2 + $0x48] sm:$0xff] %vm662_vm7, %v2211_v18  ;;  %v1265_v50 = vadd.f32 %v1263_v3, %v1260_v63  ;;  %v1199_v18 = vmul.f32 %v1197_v20, %v2796_v19  ;;  %v1244_v54 = vld [vmem:[#allocation4 + $0x30] sm:$0xff]  ;;  %v1288_v19 = vld [vmem:[#allocation3 + $0x58] sm:$0xff] }
 0x2c0   : > { %1620 = vperm.xlu1 %2110, %v2483_v28   ;;  %1452 = vst.msk [vmem:[#allocation2 + $0x60] sm:$0xff] %vm662_vm7, %v2213_v62  ;;  %v1261_v24 = vmul.f32 %v1259_v46, %v1242_v16  ;;  %v1222_v62 = vmul.f32 %v1220_v17, %v2816_v53  ;;  %v1246_v38 = vmul.f32 %v1244_v54, %v1241_v25  ;;  %v1268_v46 = vld [vmem:[#allocation4 + $0x40] sm:$0xff] }
 0x2c1   : > { %v1123_v26 = vpop.permute.xlu2 %1122  ;;  %1454 = vst.msk [vmem:[#allocation2 + $0x70] sm:$0xff] %vm662_vm7, %v2215_v21  ;;  %v1284_v15 = vmul.f32 %v1282_v56, %v1265_v50  ;;  %v1200_v56 = vsel %vm662_vm7, %v1198_v9, 0.0  ;;  %v1270_v3 = vmul.f32 %v1268_v46, %v1265_v50  ;;  %v1316_v46 = vld [vmem:[#allocation4 + $0x60] sm:$0xff] }
 0x2c2   : > { %1159 = vst.msk [vmem:[#allocation4 + $0x58] sm:$0xff] %vm662_vm7, %v1123_v26  ;;  %v1266_v40 = vadd.f32 %v1264_v7, %v1261_v24  ;;  %v1245_v34 = vld [vmem:[#allocation4 + $0x38] sm:$0xff]  ;;  %v2069_v26 = vmul.f32 -1.442695, %v2847_v52  ;;  %v1224_v57 = vsel %vm662_vm7, %v1222_v62, 0.0  ;;  %v1248_v47 = vsel %vm662_vm7, %v1246_v38, 0.0 }
 0x2c3   : > { %1455 = vst.msk [vmem:[#allocation2 + $0x78] sm:$0xff] %vm662_vm7, %v2217_v10  ;;  %v1247_v21 = vmul.f32 %v1245_v34, %v1242_v16  ;;  %v1289_v53 = vadd.f32 %v2753_v55, %v1284_v15  ;;  %v1201_v10 = vsel %vm662_vm7, %v1199_v18, 0.0  ;;  %v1269_v16 = vld [vmem:[#allocation4 + $0x48] sm:$0xff]  ;;  %v1226_v24 = vadd.f32 %v1225_v48, %v1224_v57 }
 0x2c4   : > { %v1285_v58 = vmul.f32 %v1283_v14, %v1266_v40  ;;  %2218 = vpow2.f32 %v2069_v26  ;;  %v1271_v63 = vmul.f32 %v1269_v16, %v1266_v40  ;;  %v1202_v25 = vadd.f32 %v1201_v10, %v1200_v56 }
 0x2c5   : > { %v1308_v33 = vmul.f32 %v2833_v36, %v1289_v53  ;;  %v1457_v36 = vrot.slane %v2663_v59, 1  ;;  %v1272_v15 = vsel %vm662_vm7, %v1270_v3, 0.0  ;;  %v2881_v48 = vperm.slane %v2480_v27, 7 }
 0x2c6   : > { %v1273_v40 = vsel %vm662_vm7, %v1271_v63, 0.0  ;;  %v1203_v44 = vrot.slane %v1202_v25, 4 }
 0x2c7   : > { %1626 = vperm.xlu2 %2111, %v2483_v28   ;;  %v1173_v28 = vld [vmem:[#allocation4 + $0x8] sm:$0xff]  ;;  %v1274_v26 = vadd.f32 %v1273_v40, %v1272_v15  ;;  %v2883_v38 = vperm.slane %v1457_v36, 0 }
 0x2c8   : > { %1632 = vperm.xlu1 %2110, %v2622_v23   ;;  %v1175_v11 = vmul.f32 %v1173_v28, %v2766_v2  ;;  %v1249_v2 = vsel %vm662_vm7, %v1247_v21, 0.0 }
 0x2c9   : > { %v1645_v39 = vpop.permute.xlu0 %1644  ;;  %v1293_v17 = vld [vmem:[#allocation4 + $0x58] sm:$0xff]  ;;  %v1250_v28 = vadd.f32 %v1249_v2, %v1248_v47 }
 0x2ca   : > { %v1117_v1 = vpop.permute.xlu1 %1116  ;;  %1716 = vst.msk [vmem:[#allocation4 + $0x20] sm:$0xff] %vm662_vm7, %v1645_v39  ;;  %v1290_v39 = vadd.f32 %v1288_v19, %v1285_v58  ;;  %v1177_v55 = vsel %vm662_vm7, %v1175_v11, 0.0  ;;  %v2219_v9 = vpop.eup %2218  ;;  %v1204_v11 = vadd.f32 %v1203_v44, %v1202_v25 }
 0x2cb   : > { %1158 = vst.msk [vmem:[#allocation4 + $0x50] sm:$0xff] %vm662_vm7, %v1117_v1  ;;  %v2878_v58 = vadd.f32 1.0, %v2219_v9  ;;  %v1958_v9 = vld [vmem:[%s3057_s11 + $0x8] sm:$0xff] }
 0x2cc   : > { %v1295_v7 = vmul.f32 %v1293_v17, %v1290_v39  ;;  %v1309_v18 = vmul.f32 %v2825_v61, %v1290_v39 }
 0x2cd   : > { %2220 = vrcp.f32 %v2878_v58  ;;  %vm1928_vm9 = vweird.f32 %v2878_v58 }
 0x2cf   : > { %1638 = vperm.xlu2 %2111, %v2622_v23   ;;  %v1176_v23 = vsel %vm662_vm7, %v1174_v12, 0.0  ;;  %v1297_v12 = vsel %vm662_vm7, %v1295_v7, 0.0  ;;  %v1335_v7 = vld [vmem:[#allocation3 + $0x70] sm:$0xff] }
 0x2d0   : > { %2113 = vset.pattern.permute.xlu1 %v2492_v29  ;;  %v1178_v20 = vadd.f32 %v1177_v55, %v1176_v23  ;;  %v1314_v23 = vadd.f32 %v2810_v4, %v1309_v18  ;;  %v1205_v4 = vrot.slane %v1204_v11, 2 }
 0x2d1   : > { %v1141_v51 = vpop.permute.xlu2 %1140 }
 0x2d2   : > { %1162 = vst.msk [vmem:[#allocation4 + $0x70] sm:$0xff] %vm662_vm7, %v1141_v51  ;;  %v1292_v14 = vld [vmem:[#allocation4 + $0x50] sm:$0xff]  ;;  %v1227_v51 = vrot.slane %v1226_v24, 4  ;;  %v1179_v54 = vrot.slane %v1178_v20, 4  ;;  %v1333_v3 = vmul.f32 %v2835_v37, %v1314_v23  ;;  %v1336_v37 = vld [vmem:[#allocation3 + $0x78] sm:$0xff] }
 0x2d3   : > { %v1294_v1 = vmul.f32 %v1292_v14, %v1289_v53  ;;  %v1275_v53 = vrot.slane %v1274_v26, 4 }
 0x2d4   : > { %v1228_v56 = vadd.f32 %v1227_v51, %v1226_v24  ;;  %v1180_v61 = vadd.f32 %v1179_v54, %v1178_v20  ;;  %v1338_v51 = vadd.f32 %v1336_v37, %v1333_v3  ;;  %v1459_v37 = vrot.slane %v2663_v59, 3 }
 0x2d5   : > { %v1296_v50 = vsel %vm662_vm7, %v1294_v1, 0.0  ;;  %v1276_v1 = vadd.f32 %v1275_v53, %v1274_v26 }
 0x2d6   : > { %v1298_v21 = vadd.f32 %v1297_v12, %v1296_v50  ;;  %v1229_v39 = vrot.slane %v1228_v56, 2  ;;  %v1181_v55 = vrot.slane %v1180_v61, 2 }
 0x2d7   : > { %2114 = vset.pattern.permute.xlu2 %v2341_v43  ;;  %v1311_v43 = vld [vmem:[#allocation3 + $0x60] sm:$0xff]  ;;  %v1277_v44 = vrot.slane %v1276_v1, 2 }
 0x2d8   : > { %1650 = vperm.xlu1 %2113, %v2495_v30   ;;  %v1313_v62 = vadd.f32 %v1311_v43, %v1308_v33  ;;  %v1251_v30 = vrot.slane %v1250_v28, 4  ;;  %v1299_v17 = vrot.slane %v1298_v21, 4  ;;  %v1230_v40 = vadd.f32 %v1229_v39, %v1228_v56  ;;  %v2905_v43 = vpop.eup %2220 }
 0x2d9   : > { %v1663_v0 = vpop.permute.xlu0 %1662  ;;  %v1340_v33 = vld [vmem:[#allocation4 + $0x70] sm:$0xff]  ;;  %v1182_v26 = vadd.f32 %v1181_v55, %v1180_v61  ;;  %vm1929_vm8 = vweird.f32 %v2905_v43 }
 0x2da   : > { %v1135_v34 = vpop.permute.xlu1 %1134  ;;  %1719 = vst.msk [vmem:[#allocation4 + $0x38] sm:$0xff] %vm662_vm7, %v1663_v0  ;;  %v1318_v10 = vmul.f32 %v1316_v46, %v1313_v62  ;;  %v1252_v57 = vadd.f32 %v1251_v30, %v1250_v28  ;;  %v1332_v63 = vmul.f32 %v2837_v6, %v1313_v62  ;;  %v1300_v47 = vadd.f32 %v1299_v17, %v1298_v21  ;;  %v1960_v6 = vld [vmem:[%s3057_s11 + $0x18] sm:$0xff]  ;;  %v1957_v30 = vld [vmem:[%s3057_s11] sm:$0xff]  ;;  %vm1930_vm10 = vmor %vm1928_vm9, %vm1929_vm8 }
 0x2db   : > { %1161 = vst.msk [vmem:[#allocation4 + $0x68] sm:$0xff] %vm662_vm7, %v1135_v34  ;;  %1981 = vmatpush.msrb.mxu1 %v1960_v6  ;;  %v1959_v34 = vld [vmem:[%s3057_s11 + $0x10] sm:$0xff]  ;;  %v1206_v28 = vadd.f32 %v1205_v4, %v1204_v11  ;;  %v1231_v56 = vrot.slane %v1230_v40, 1 }
 0x2dc   : > { %v1320_v25 = vsel %vm662_vm7, %v1318_v10, 0.0  ;;  %v1337_v20 = vadd.f32 %v1335_v7, %v1332_v63  ;;  %v1301_v18 = vrot.slane %v1300_v47, 2 }
 0x2dd   : > { %1982 = vmatpush.msrb.mxu1 %v1959_v34  ;;  %v1207_v11 = vrot.slane %v1206_v28, 1  ;;  %v1232_v39 = vadd.f32 %v1231_v56, %v1230_v40 }
 0x2de   : > { %v1342_v36 = vmul.f32 %v1340_v33, %v1337_v20 }
 0x2df   : > { %1560 = vperm.xlu2 %2114, %v2881_v48   ;;  %1983 = vmatpush.msrb.mxu1 %v1958_v9  ;;  %v1208_v63 = vadd.f32 %v1207_v11, %v1206_v28 }
 0x2e0   : > { %2115 = vset.pattern.permute.xlu1 %v2349_v45  ;;  %v1253_v45 = vrot.slane %v1252_v57, 2  ;;  %v1344_v10 = vsel %vm662_vm7, %v1342_v36, 0.0 }
 0x2e1   : > { %v1483_v19 = vpop.permute.xlu2 %1482  ;;  %1984 = vmatpush.msrb.mxu1 %v1957_v30 }
 0x2e2   : > { %v1147_v16 = vpop.permute.xlu1 %1146  ;;  %v1586_v14 = vmul.f32 %v2883_v38, %v1483_v19  ;;  %v1317_v2 = vld [vmem:[#allocation4 + $0x68] sm:$0xff]  ;;  %v1254_v12 = vadd.f32 %v1253_v45, %v1252_v57  ;;  %v1183_v57 = vrot.slane %v1182_v26, 1 }
 0x2e3   : > { %1163 = vst.msk [vmem:[#allocation4 + $0x78] sm:$0xff] %vm662_vm7, %v1147_v16  ;;  %v1319_v27 = vmul.f32 %v1317_v2, %v1314_v23  ;;  %v1278_v23 = vadd.f32 %v1277_v44, %v1276_v1  ;;  %v1924_v2 = vmul.f32 %v2905_v43, %v2878_v58 }
 0x2e4   : > { %1602 = vst.msk [vmem:[#allocation3 + $0x10] sm:$0xff] %vm662_vm7, %v1586_v14  ;;  %v1255_v16 = vrot.slane %v1254_v12, 1  ;;  %v1302_v14 = vadd.f32 %v1301_v18, %v1300_v47  ;;  %v1184_v1 = vadd.f32 %v1183_v57, %v1182_v26 }
 0x2e5   : > { %v1321_v24 = vsel %vm662_vm7, %v1319_v27, 0.0  ;;  %v1925_v45 = vsub.f32 1.0, %v1924_v2 }
 0x2e6   : > { %v1322_v0 = vadd.f32 %v1321_v24, %v1320_v25  ;;  %v1256_v25 = vadd.f32 %v1255_v16, %v1254_v12  ;;  %v1303_v24 = vrot.slane %v1302_v14, 1  ;;  %v1354_v7 = vsel %vm1353_vm15, %v1184_v1, %v1208_v63 }
 0x2e7   : > { %2116 = vset.pattern.permute.xlu2 %v2472_v22  ;;  %v1356_v6 = vsel %vm1355_vm1, %v1354_v7, %v1232_v39  ;;  %v1926_v40 = vmul.f32 %v2905_v43, %v1925_v45  ;;  %v1571_v12 = vperm.slane %v1459_v37, 0  ;;  %v1463_v63 = vrot.slane %v2663_v59, 7 }
 0x2e8   : > { %v1323_v50 = vrot.slane %v1322_v0, 4  ;;  %1566 = vperm.xlu1 %2115, %v2881_v48   ;;  %v1358_v34 = vsel %vm1357_vm2, %v1356_v6, %v1256_v25  ;;  %v1728_v25 = vld [vmem:[#allocation2] sm:$0xff] }
 0x2e9   : > { %v1693_v15 = vpop.permute.xlu0 %1692  ;;  %v1496_v46 = vpop.permute.xlu2 %1495 }
 0x2ea   : > { %v1324_v62 = vadd.f32 %v1323_v50, %v1322_v0  ;;  %v1341_v54 = vld [vmem:[#allocation4 + $0x78] sm:$0xff]  ;;  %1724 = vst.msk [vmem:[#allocation4 + $0x60] sm:$0xff] %vm662_vm7, %v1693_v15  ;;  %v1588_v53 = vmul.f32 %v2701_v35, %v1496_v46  ;;  %v1279_v35 = vrot.slane %v1278_v23, 1  ;;  %v1927_v15 = vadd.f32 %v2905_v43, %v1926_v40  ;;  %v2951_v46 = vld [vmem:[%s3056_s10] ss:$0 sm:$0xff] }
 0x2eb   : > { %v1343_v21 = vmul.f32 %v1341_v54, %v1338_v51 }
 0x2ec   : > { %v1325_v19 = vrot.slane %v1324_v62, 2  ;;  %1604 = vst.msk [vmem:[#allocation3 + $0x20] sm:$0xff] %vm662_vm7, %v1588_v53  ;;  %v1280_v20 = vadd.f32 %v1279_v35, %v1278_v23  ;;  %v1931_v56 = vsel %vm1930_vm10, %v2905_v43, %v1927_v15  ;;  %v1911_v43 = vmul.f32 %v2951_v46, %v2440_v5 }
 0x2ed   : > { %v1345_v61 = vsel %vm662_vm7, %v1343_v21, 0.0  ;;  %v1932_v21 = vand.u32 2147483647, %v2878_v58 }
 0x2ee   : > { %v1346_v17 = vadd.f32 %v1345_v61, %v1344_v10  ;;  %v1326_v27 = vadd.f32 %v1325_v19, %v1324_v62  ;;  %v1360_v9 = vsel %vm1359_vm3, %v1358_v34, %v1280_v20  ;;  %v1934_v62 = vand.u32 2147483648, %v2878_v58  ;;  %v1750_v20 = vld [vmem:[#allocation2 + $0x18] sm:$0xff] }
 0x2ef   : > { %1656 = vperm.xlu2 %2116, %v2535_v49   ;;  %v1304_v49 = vadd.f32 %v1303_v24, %v1302_v14  ;;  %vm1933_vm11 = vcmp.eq.f32.partialorder %v1932_v21, 8.507059e+37  ;;  %v1729_v24 = vld [vmem:[#allocation2 + $0x8] sm:$0xff] }
 0x2f0   : > { %v1347_v4 = vrot.slane %v1346_v17, 4  ;;  %v1327_v47 = vrot.slane %v1326_v27, 1  ;;  %2118 = vset.pattern.permute.xlu1 %v2472_v22  ;;  %v1935_v58 = vor.u32 1.1754944e-38, %v1934_v62  ;;  %v1731_v45 = vmul.f32 0.0, %v1729_v24 }
 0x2f1   : > { %v1362_v51 = vsel %vm1361_vm4, %v1360_v9, %v1304_v49  ;;  %v1749_v49 = vld [vmem:[#allocation2 + $0x10] sm:$0xff] }
 0x2f2   : > { %v1348_v3 = vadd.f32 %v1347_v4, %v1346_v17  ;;  %v1476_v55 = vpop.permute.xlu1 %1475  ;;  %v1328_v50 = vadd.f32 %v1327_v47, %v1326_v27  ;;  %v1936_v19 = vsel %vm1933_vm11, %v1935_v58, %v1931_v56  ;;  %v1575_v4 = vperm.slane %v1463_v63, 0  ;;  %v1732_v47 = vld [vmem:[#allocation3] sm:$0xff]  ;;  %v1792_v56 = vld [vmem:[#allocation2 + $0x38] sm:$0xff]  ;;  %v1837_v63 = vld [vmem:[#allocation3 + $0x50] sm:$0xff] }
 0x2f3   : > { %v1585_v0 = vmul.f32 %v1568_v60, %v1476_v55  ;;  %v1953_v61 = vmul.f32 %v1936_v19, %v2847_v52 }
 0x2f4   : > { %v1349_v33 = vrot.slane %v1348_v3, 2  ;;  %v1364_v26 = vsel %vm1363_vm5, %v1362_v51, %v1328_v50  ;;  %v1770_v51 = vld [vmem:[#allocation2 + $0x20] sm:$0xff] }
 0x2f5   : > { %1601 = vst.msk [vmem:[#allocation3 + $0x8] sm:$0xff] %vm662_vm7, %v1585_v0 }
 0x2f6   : > { %v1350_v28 = vadd.f32 %v1349_v33, %v1348_v3  ;;  %v1730_v3 = vmul.f32 0.0, %v1728_v25 }
 0x2f7   : > { %2119 = vset.pattern.permute.xlu2 %v2492_v29 }
 0x2f8   : > { %v1351_v60 = vrot.slane %v1350_v28, 1  ;;  %1668 = vperm.xlu1 %2118, %v2713_v41   ;;  %v1734_v33 = vadd.f32 %v1732_v47, %v1730_v3 }
 0x2f9   : > { %v1515_v30 = vpop.permute.xlu2 %1514 }
 0x2fa   : > { %v1352_v44 = vadd.f32 %v1351_v60, %v1350_v28  ;;  %v1489_v36 = vpop.permute.xlu1 %1488  ;;  %v1591_v11 = vmul.f32 %v1571_v12, %v1515_v30  ;;  %v1753_v28 = vld [vmem:[#allocation3 + $0x10] sm:$0xff]  ;;  %v1751_v50 = vmul.f32 %v1749_v49, %v1734_v33 }
 0x2fb   : > { %v1587_v18 = vmul.f32 %v2883_v38, %v1489_v36  ;;  %v1460_v38 = vrot.slane %v2663_v59, 4  ;;  %v1771_v36 = vld [vmem:[#allocation2 + $0x28] sm:$0xff] }
 0x2fc   : > { %v1366_v54 = vsel %vm1365_vm6, %v1364_v26, %v1352_v44  ;;  %1607 = vst.msk [vmem:[#allocation3 + $0x38] sm:$0xff] %vm662_vm7, %v1591_v11  ;;  %v1733_v55 = vld [vmem:[#allocation3 + $0x8] sm:$0xff]  ;;  %v1755_v60 = vadd.f32 %v1753_v28, %v1751_v50  ;;  %v1774_v44 = vld [vmem:[#allocation3 + $0x20] sm:$0xff] }
 0x2fd   : > { %1367 = vst.msk [vmem:[#allocation5] sm:$0xff] %vm662_vm7, %v1366_v54  ;;  %v1572_v53 = vperm.slane %v1460_v38, 0  ;;  %v2981_v7 = vadd.f32 %v1733_v55, %v1731_v45  ;;  %v1791_v54 = vld [vmem:[#allocation2 + $0x30] sm:$0xff]  ;;  %v1834_v45 = vld [vmem:[#allocation2 + $0x58] sm:$0xff] }
 0x2fe   : > { %1603 = vst.msk [vmem:[#allocation3 + $0x18] sm:$0xff] %vm662_vm7, %v1587_v18  ;;  %v1772_v15 = vmul.f32 %v1770_v51, %v1755_v60  ;;  %v1775_v18 = vld [vmem:[#allocation3 + $0x28] sm:$0xff] }
 0x2ff   : > { %1674 = vperm.xlu2 %2119, %v2713_v41   ;;  %v1752_v40 = vmul.f32 %v1750_v20, %v2981_v7 }
 0x300   : > { %1680 = vperm.xlu1 %2118, %v2501_v31  }
 0x301   : > { %v1528_v23 = vpop.permute.xlu2 %1527 }
 0x302   : > { %v1593_v57 = vmul.f32 %v1572_v53, %v1528_v23 }
 0x303   : > { %v1796_v19 = vld [vmem:[#allocation3 + $0x38] sm:$0xff] }
 0x304   : > { %v1905_v10 = vld [vmem:[#allocation5] sm:$0xff]  ;;  %1609 = vst.msk [vmem:[#allocation3 + $0x48] sm:$0xff] %vm662_vm7, %v1593_v57 }
 0x305   : > { %v1913_v16 = vadd.f32 %v1911_v43, %v1905_v10  ;;  %v1754_v34 = vld [vmem:[#allocation3 + $0x18] sm:$0xff] }
 0x306   : > { %v1756_v37 = vadd.f32 %v1754_v34, %v1752_v40 }
 0x307   : > { %v1955_v14 = vmul.f32 %v1953_v61, %v1913_v16  ;;  %1686 = vperm.xlu2 %2119, %v2501_v31  }
 0x308   : > { %2121 = vset.pattern.permute.xlu1 %v2492_v29  ;;  %v1773_v26 = vmul.f32 %v1771_v36, %v1756_v37 }
 0x309   : > { %2071 = vmatmul.msk.f32.vlgmr.msrb.gmra.mxu1 %vm662_vm7, %v1955_v14  ;;  %v1813_v14 = vld [vmem:[#allocation2 + $0x48] sm:$0xff] }
 0x30a   : > { %v1509_v41 = vpop.permute.xlu1 %1508  ;;  %v1777_v62 = vadd.f32 %v1775_v18, %v1773_v26 }
 0x30b   : > { %v1590_v17 = vmul.f32 %v1571_v12, %v1509_v41  ;;  %v1776_v12 = vadd.f32 %v1774_v44, %v1772_v15 }
 0x30c   : > { %v1794_v58 = vmul.f32 %v1792_v56, %v1777_v62 }
 0x30d   : > { %1606 = vst.msk [vmem:[#allocation3 + $0x30] sm:$0xff] %vm662_vm7, %v1590_v17  ;;  %v1793_v11 = vmul.f32 %v1791_v54, %v1776_v12 }
 0x30e   : > { %v1798_v23 = vadd.f32 %v1796_v19, %v1794_v58 }
 0x30f   : > { %2122 = vset.pattern.permute.xlu2 %v2472_v22 }
 0x310   : > { %1698 = vperm.xlu1 %2121, %v2508_v32   ;;  %v1815_v41 = vmul.f32 %v1813_v14, %v1798_v23 }
 0x311   : > { %v1548_v5 = vpop.permute.xlu2 %1547 }
 0x312   : > { %v1596_v52 = vmul.f32 %v2799_v42, %v1548_v5  ;;  %v1522_v2 = vpop.permute.xlu1 %1521  ;;  %v1833_v5 = vld [vmem:[#allocation2 + $0x50] sm:$0xff] }
 0x313   : > { %v1592_v27 = vmul.f32 %v1572_v53, %v1522_v2  ;;  %v1812_v53 = vld [vmem:[#allocation2 + $0x40] sm:$0xff] }
 0x314   : > { %1612 = vst.msk [vmem:[#allocation3 + $0x60] sm:$0xff] %vm662_vm7, %v1596_v52  ;;  %v1795_v30 = vld [vmem:[#allocation3 + $0x30] sm:$0xff] }
 0x315   : > { %1608 = vst.msk [vmem:[#allocation3 + $0x40] sm:$0xff] %vm662_vm7, %v1592_v27  ;;  %v1797_v38 = vadd.f32 %v1795_v30, %v1793_v11 }
 0x317   : > { %1704 = vperm.xlu2 %2122, %v2881_v48   ;;  %v1814_v10 = vmul.f32 %v1812_v53, %v1797_v38 }
 0x318   : > { %1710 = vperm.xlu1 %2121, %v2881_v48  }
 0x31b   : > { %v1858_v11 = vld [vmem:[#allocation3 + $0x60] sm:$0xff] }
 0x31c   : > { %v1816_v43 = vld [vmem:[#allocation3 + $0x40] sm:$0xff] }
 0x31d   : > { %v1818_v16 = vadd.f32 %v1816_v43, %v1814_v10 }
 0x31f   : > { %v1835_v27 = vmul.f32 %v1833_v5, %v1818_v16 }
 0x321   : > { %v1627_v29 = vpop.permute.xlu2 %1626  ;;  %v1839_v24 = vadd.f32 %v1837_v63, %v1835_v27  ;;  %v1859_v63 = vld [vmem:[#allocation3 + $0x68] sm:$0xff] }
 0x322   : > { %1713 = vst.msk [vmem:[#allocation4 + $0x8] sm:$0xff] %vm662_vm7, %v1627_v29  ;;  %v1541_v31 = vpop.permute.xlu1 %1540 }
 0x323   : > { %v1595_v22 = vmul.f32 %v2740_v8, %v1541_v31  ;;  %v1817_v31 = vld [vmem:[#allocation3 + $0x48] sm:$0xff] }
 0x325   : > { %1611 = vst.msk [vmem:[#allocation3 + $0x58] sm:$0xff] %vm662_vm7, %v1595_v22  ;;  %v2989_v22 = vpop.f32.mrf.mxu1 }
 0x326   : > { %v2070_v3 = vmul.f32 -1.442695, %v2989_v22 }
 0x328   : > { %2222 = vpow2.f32 %v2070_v3 }
 0x329   : > { %v1639_v32 = vpop.permute.xlu2 %1638 }
 0x32a   : > { %1715 = vst.msk [vmem:[#allocation4 + $0x18] sm:$0xff] %vm662_vm7, %v1639_v32 }
 0x331   : > { %v1758_v52 = vld [vmem:[#allocation4 + $0x18] sm:$0xff] }
 0x332   : > { %v1621_v42 = vpop.permute.xlu1 %1620 }
 0x333   : > { %1712 = vst.msk [vmem:[#allocation4] sm:$0xff] %vm662_vm7, %v1621_v42  ;;  %v1819_v42 = vadd.f32 %v1817_v31, %v1815_v41  ;;  %v1862_v31 = vld [vmem:[#allocation4 + $0x60] sm:$0xff] }
 0x335   : > { %v1836_v28 = vmul.f32 %v1834_v45, %v1819_v42 }
 0x339   : > { %v1561_v39 = vpop.permute.xlu2 %1560 }
 0x33a   : > { %v1598_v35 = vmul.f32 %v1575_v4, %v1561_v39  ;;  %v1633_v48 = vpop.permute.xlu1 %1632  ;;  %v1736_v29 = vld [vmem:[#allocation4] sm:$0xff]  ;;  %v1760_v39 = vmul.f32 %v1758_v52, %v1756_v37 }
 0x33b   : > { %1714 = vst.msk [vmem:[#allocation4 + $0x10] sm:$0xff] %vm662_vm7, %v1633_v48 }
 0x33c   : > { %1614 = vst.msk [vmem:[#allocation3 + $0x70] sm:$0xff] %vm662_vm7, %v1598_v35  ;;  %v1762_v40 = vsel %vm662_vm7, %v1760_v39, 0.0 }
 0x342   : > { %v1757_v17 = vld [vmem:[#allocation4 + $0x10] sm:$0xff] }
 0x343   : > { %v1759_v32 = vmul.f32 %v1757_v17, %v1755_v60 }
 0x345   : > { %v1761_v20 = vsel %vm662_vm7, %v1759_v32, 0.0 }
 0x349   : > { %v1657_v1 = vpop.permute.xlu2 %1656 }
 0x34a   : > { %1718 = vst.msk [vmem:[#allocation4 + $0x30] sm:$0xff] %vm662_vm7, %v1657_v1  ;;  %v1651_v8 = vpop.permute.xlu1 %1650  ;;  %v1778_v1 = vld [vmem:[#allocation4 + $0x20] sm:$0xff] }
 0x34b   : > { %1717 = vst.msk [vmem:[#allocation4 + $0x28] sm:$0xff] %vm662_vm7, %v1651_v8  ;;  %v1738_v8 = vmul.f32 %v1736_v29, %v1734_v33  ;;  %v1780_v55 = vmul.f32 %v1778_v1, %v1776_v12 }
 0x34d   : > { %v1740_v44 = vsel %vm662_vm7, %v1738_v8, 0.0  ;;  %v1782_v26 = vsel %vm662_vm7, %v1780_v55, 0.0  ;;  %v1875_v55 = vld [vmem:[#allocation2 + $0x70] sm:$0xff] }
 0x351   : > { %v1799_v35 = vld [vmem:[#allocation4 + $0x30] sm:$0xff] }
 0x352   : > { %v1779_v2 = vld [vmem:[#allocation4 + $0x28] sm:$0xff]  ;;  %v1801_v34 = vmul.f32 %v1799_v35, %v1797_v38 }
 0x353   : > { %v1781_v48 = vmul.f32 %v1779_v2, %v1777_v62  ;;  %v2223_v2 = vpop.eup %2222 }
 0x354   : > { %v1803_v62 = vsel %vm662_vm7, %v1801_v34, 0.0  ;;  %v3016_v1 = vadd.f32 1.0, %v2223_v2 }
 0x355   : > { %v1783_v33 = vsel %vm662_vm7, %v1781_v48, 0.0 }
 0x356   : > { %v1784_v54 = vadd.f32 %v1783_v33, %v1782_v26  ;;  %2224 = vrcp.f32 %v3016_v1  ;;  %vm1943_vm13 = vweird.f32 %v3016_v1 }
 0x358   : > { %v1785_v41 = vrot.slane %v1784_v54, 4 }
 0x359   : > { %v1675_v59 = vpop.permute.xlu2 %1674 }
 0x35a   : > { %1721 = vst.msk [vmem:[#allocation4 + $0x48] sm:$0xff] %vm662_vm7, %v1675_v59  ;;  %v1567_v0 = vpop.permute.xlu1 %1566  ;;  %v1838_v59 = vld [vmem:[#allocation3 + $0x58] sm:$0xff] }
 0x35b   : > { %v1599_v6 = vmul.f32 %v1575_v4, %v1567_v0  ;;  %v1737_v4 = vld [vmem:[#allocation4 + $0x8] sm:$0xff]  ;;  %v1800_v0 = vld [vmem:[#allocation4 + $0x38] sm:$0xff]  ;;  %v1840_v51 = vadd.f32 %v1838_v59, %v1836_v28 }
 0x35c   : > { %v1802_v50 = vmul.f32 %v1800_v0, %v1798_v23 }
 0x35d   : > { %1615 = vst.msk [vmem:[#allocation3 + $0x78] sm:$0xff] %vm662_vm7, %v1599_v6  ;;  %v1739_v6 = vmul.f32 %v1737_v4, %v2981_v7  ;;  %v1763_v7 = vadd.f32 %v1762_v40, %v1761_v20  ;;  %v1786_v4 = vadd.f32 %v1785_v41, %v1784_v54 }
 0x35e   : > { %v1804_v19 = vsel %vm662_vm7, %v1802_v50, 0.0 }
 0x35f   : > { %v1741_v18 = vsel %vm662_vm7, %v1739_v6, 0.0  ;;  %v1764_v10 = vrot.slane %v1763_v7, 4  ;;  %v1879_v6 = vld [vmem:[#allocation3 + $0x70] sm:$0xff]  ;;  %v1787_v20 = vrot.slane %v1786_v4, 2 }
 0x360   : > { %v1742_v56 = vadd.f32 %v1741_v18, %v1740_v44 }
 0x361   : > { %v1687_v9 = vpop.permute.xlu2 %1686  ;;  %v1821_v49 = vld [vmem:[#allocation4 + $0x48] sm:$0xff]  ;;  %v1765_v32 = vadd.f32 %v1764_v10, %v1763_v7  ;;  %v1788_v26 = vadd.f32 %v1787_v20, %v1786_v4 }
 0x362   : > { %1723 = vst.msk [vmem:[#allocation4 + $0x58] sm:$0xff] %vm662_vm7, %v1687_v9  ;;  %v1854_v9 = vld [vmem:[#allocation2 + $0x60] sm:$0xff]  ;;  %v1823_v12 = vmul.f32 %v1821_v49, %v1819_v42  ;;  %v1743_v27 = vrot.slane %v1742_v56, 4 }
 0x363   : > { %v1856_v36 = vmul.f32 %v1854_v9, %v1839_v24  ;;  %v1766_v59 = vrot.slane %v1765_v32, 2 }
 0x364   : > { %v1744_v8 = vadd.f32 %v1743_v27, %v1742_v56  ;;  %v1880_v9 = vld [vmem:[#allocation3 + $0x78] sm:$0xff] }
 0x365   : > { %v1860_v53 = vadd.f32 %v1858_v11, %v1856_v36  ;;  %v1767_v36 = vadd.f32 %v1766_v59, %v1765_v32 }
 0x366   : > { %v1745_v40 = vrot.slane %v1744_v8, 2 }
 0x367   : > { %v1864_v48 = vmul.f32 %v1862_v31, %v1860_v53  ;;  %v1877_v0 = vmul.f32 %v1875_v55, %v1860_v53 }
 0x368   : > { %v1746_v54 = vadd.f32 %v1745_v40, %v1744_v8 }
 0x369   : > { %v1842_v37 = vld [vmem:[#allocation4 + $0x58] sm:$0xff]  ;;  %v1866_v49 = vsel %vm662_vm7, %v1864_v48, 0.0  ;;  %v1881_v44 = vadd.f32 %v1879_v6, %v1877_v0 }
 0x36a   : > { %v1669_v21 = vpop.permute.xlu1 %1668  ;;  %v1844_v30 = vmul.f32 %v1842_v37, %v1840_v51 }
 0x36b   : > { %1720 = vst.msk [vmem:[#allocation4 + $0x40] sm:$0xff] %vm662_vm7, %v1669_v21  ;;  %v1961_v21 = vld [vmem:[%s2316_s27] sm:$0xff] }
 0x36c   : > { %v1846_v17 = vsel %vm662_vm7, %v1844_v30, 0.0 }
 0x371   : > { %v1705_v61 = vpop.permute.xlu2 %1704 }
 0x372   : > { %1726 = vst.msk [vmem:[#allocation4 + $0x70] sm:$0xff] %vm662_vm7, %v1705_v61  ;;  %v1681_v57 = vpop.permute.xlu1 %1680  ;;  %v1820_v25 = vld [vmem:[#allocation4 + $0x40] sm:$0xff]  ;;  %v1805_v61 = vadd.f32 %v1804_v19, %v1803_v62 }
 0x373   : > { %1722 = vst.msk [vmem:[#allocation4 + $0x50] sm:$0xff] %vm662_vm7, %v1681_v57  ;;  %v1822_v60 = vmul.f32 %v1820_v25, %v1818_v16  ;;  %v1825_v57 = vsel %vm662_vm7, %v1823_v12, 0.0  ;;  %v1855_v16 = vld [vmem:[#allocation2 + $0x68] sm:$0xff] }
 0x374   : > { %v1857_v52 = vmul.f32 %v1855_v16, %v1840_v51  ;;  %v1806_v42 = vrot.slane %v1805_v61, 4 }
 0x375   : > { %v1824_v38 = vsel %vm662_vm7, %v1822_v60, 0.0  ;;  %v1876_v60 = vld [vmem:[#allocation2 + $0x78] sm:$0xff] }
 0x376   : > { %v1826_v5 = vadd.f32 %v1825_v57, %v1824_v38  ;;  %v1861_v35 = vadd.f32 %v1859_v63, %v1857_v52  ;;  %v2225_v38 = vpop.eup %2224  ;;  %v1747_v57 = vrot.slane %v1746_v54, 1 }
 0x377   : > { %v1939_v41 = vmul.f32 %v2225_v38, %v3016_v1  ;;  %vm1944_vm12 = vweird.f32 %v2225_v38 }
 0x378   : > { %v1827_v39 = vrot.slane %v1826_v5, 4  ;;  %v1878_v51 = vmul.f32 %v1876_v60, %v1861_v35  ;;  %v1748_v31 = vadd.f32 %v1747_v57, %v1746_v54  ;;  %vm1945_vm14 = vmor %vm1943_vm13, %vm1944_vm12 }
 0x379   : > { %v1883_v33 = vld [vmem:[#allocation4 + $0x70] sm:$0xff]  ;;  %v1940_v63 = vsub.f32 1.0, %v1939_v41 }
 0x37a   : > { %v1841_v47 = vld [vmem:[#allocation4 + $0x50] sm:$0xff]  ;;  %v1828_v34 = vadd.f32 %v1827_v39, %v1826_v5  ;;  %v1885_v18 = vmul.f32 %v1883_v33, %v1881_v44  ;;  %v1882_v62 = vadd.f32 %v1880_v9, %v1878_v51  ;;  %v1947_v33 = vand.u32 2147483647, %v3016_v1 }
 0x37b   : > { %v1843_v15 = vmul.f32 %v1841_v47, %v1839_v24  ;;  %v1807_v47 = vadd.f32 %v1806_v42, %v1805_v61  ;;  %v1941_v55 = vmul.f32 %v2225_v38, %v1940_v63  ;;  %v1912_v9 = vmul.f32 %v2951_v46, %v2456_v13 }
 0x37c   : > { %v1829_v12 = vrot.slane %v1828_v34, 2  ;;  %v1887_v10 = vsel %vm662_vm7, %v1885_v18, 0.0 }
 0x37d   : > { %v1845_v43 = vsel %vm662_vm7, %v1843_v15, 0.0  ;;  %v1808_v15 = vrot.slane %v1807_v47, 2 }
 0x37e   : > { %v1847_v29 = vadd.f32 %v1846_v17, %v1845_v43  ;;  %v1789_v43 = vrot.slane %v1788_v26, 1 }
 0x37f   : > { %v1809_v19 = vadd.f32 %v1808_v15, %v1807_v47 }
 0x380   : > { %v1848_v25 = vrot.slane %v1847_v29, 4  ;;  %v1790_v27 = vadd.f32 %v1789_v43, %v1788_v26 }
 0x381   : > { %v1810_v52 = vrot.slane %v1809_v19, 1 }
 0x382   : > { %v1699_v58 = vpop.permute.xlu1 %1698  ;;  %v1849_v50 = vadd.f32 %v1848_v25, %v1847_v29 }
 0x383   : > { %1725 = vst.msk [vmem:[#allocation4 + $0x68] sm:$0xff] %vm662_vm7, %v1699_v58  ;;  %v1768_v58 = vrot.slane %v1767_v36, 1  ;;  %v1811_v48 = vadd.f32 %v1810_v52, %v1809_v19 }
 0x384   : > { %v1850_v30 = vrot.slane %v1849_v50, 2 }
 0x385   : > { %v1769_v5 = vadd.f32 %v1768_v58, %v1767_v36 }
 0x386   : > { %v1986_v23 = vpop.f32.mrf.mxu1  ;;  %v1851_v16 = vadd.f32 %v1850_v30, %v1849_v50 }
 0x387   : > { %v1987_v14 = vadd.f32 %v1986_v23, %v1961_v21  ;;  %v1830_v23 = vadd.f32 %v1829_v12, %v1828_v34  ;;  %v1896_v39 = vsel %vm1353_vm15, %v1748_v31, %v1769_v5  ;;  %v1942_v34 = vadd.f32 %v2225_v38, %v1941_v55 }
 0x388   : > { %v1852_v32 = vrot.slane %v1851_v16, 1  ;;  %v1897_v8 = vsel %vm1355_vm1, %v1896_v39, %v1790_v27  ;;  %vm1948_vm15 = vcmp.eq.f32.partialorder %v1947_v33, 8.507059e+37 }
 0x389   : > { %1992 = vst.msk [vmem:[%s3010_s20] sm:$0xff] %vm421_vm0, %v1987_v14  ;;  %v1831_v29 = vrot.slane %v1830_v23, 1  ;;  %v1898_v47 = vsel %vm1357_vm2, %v1897_v8, %v1811_v48  ;;  %v1946_v50 = vsel %vm1945_vm14, %v2225_v38, %v1942_v34 }
 0x38a   : > { %v1863_v24 = vld [vmem:[#allocation4 + $0x68] sm:$0xff]  ;;  %v1711_v3 = vpop.permute.xlu1 %1710 }
 0x38b   : > { %v1865_v45 = vmul.f32 %v1863_v24, %v1861_v35  ;;  %1727 = vst.msk [vmem:[#allocation4 + $0x78] sm:$0xff] %vm662_vm7, %v1711_v3  ;;  %v1832_v25 = vadd.f32 %v1831_v29, %v1830_v23  ;;  %v1853_v24 = vadd.f32 %v1852_v32, %v1851_v16 }
 0x38d   : > { %v1867_v28 = vsel %vm662_vm7, %v1865_v45, 0.0  ;;  %v1899_v0 = vsel %vm1359_vm3, %v1898_v47, %v1832_v25 }
 0x38e   : > { %v1868_v37 = vadd.f32 %v1867_v28, %v1866_v49  ;;  %v1900_v20 = vsel %vm1361_vm4, %v1899_v0, %v1853_v24  ;;  %v1949_v28 = vand.u32 2147483648, %v3016_v1 }
 0x390   : > { %v1869_v7 = vrot.slane %v1868_v37, 4 }
 0x392   : > { %v1870_v21 = vadd.f32 %v1869_v7, %v1868_v37  ;;  %v1884_v11 = vld [vmem:[#allocation4 + $0x78] sm:$0xff]  ;;  %v1950_v37 = vor.u32 1.1754944e-38, %v1949_v28  ;;  %v1962_v7 = vld [vmem:[%s2316_s27 + $0x8] sm:$0xff] }
 0x393   : > { %v1886_v56 = vmul.f32 %v1884_v11, %v1882_v62 }
 0x394   : > { %v1871_v53 = vrot.slane %v1870_v21, 2  ;;  %v1951_v60 = vsel %vm1948_vm15, %v1950_v37, %v1946_v50 }
 0x395   : > { %v1888_v61 = vsel %vm662_vm7, %v1886_v56, 0.0  ;;  %v1954_v51 = vmul.f32 %v1951_v60, %v2989_v22 }
 0x396   : > { %v1889_v14 = vadd.f32 %v1888_v61, %v1887_v10  ;;  %v1872_v17 = vadd.f32 %v1871_v53, %v1870_v21 }
 0x398   : > { %v1890_v2 = vrot.slane %v1889_v14, 4  ;;  %v1873_v4 = vrot.slane %v1872_v17, 1 }
 0x39a   : > { %v1891_v42 = vadd.f32 %v1890_v2, %v1889_v14  ;;  %v1874_v45 = vadd.f32 %v1873_v4, %v1872_v17 }
 0x39c   : > { %v1892_v35 = vrot.slane %v1891_v42, 2  ;;  %v1901_v49 = vsel %vm1363_vm5, %v1900_v20, %v1874_v45 }
 0x39e   : > { %v1893_v3 = vadd.f32 %v1892_v35, %v1891_v42 }
 0x3a0   : > { %v1894_v59 = vrot.slane %v1893_v3, 1 }
 0x3a2   : > { %v1895_v6 = vadd.f32 %v1894_v59, %v1893_v3 }
 0x3a4   : > { %v1902_v40 = vsel %vm1365_vm6, %v1901_v49, %v1895_v6 }
 0x3a5   : > { %1904 = vst.msk [vmem:[#allocation5 + $0x8] sm:$0xff] %vm662_vm7, %v1902_v40 }
 0x3ac   : > { %v1906_v44 = vld [vmem:[#allocation5 + $0x8] sm:$0xff] }
 0x3ad   : > { %v1914_v36 = vadd.f32 %v1912_v9, %v1906_v44 }
 0x3af   : > { %v1956_v15 = vmul.f32 %v1954_v51, %v1914_v36 }
 0x3b1   : > { %2072 = vmatmul.msk.f32.gmra.mxu1 %vm662_vm7, %v1956_v15 }
 0x42e   : > { %v1989_v1 = vpop.f32.mrf.mxu1 }
 0x42f   : > { %v1990_v26 = vadd.f32 %v1989_v1, %v1962_v7 }
 0x431   : > { %1993 = vst.msk [vmem:[%s3010_s20 + $0x8] sm:$0xff] %vm421_vm0, %v1990_v26 }
 0x432 PF: > { %s22_s21 = sadd.s32 1, %s2232_s21  }
 0x433   : > { %p19_p4 = scmp.ge.s32.totalorder %s22_s21, 4  }
 0x435   :  { %21 = sbr.rel (!%p19_p4) target bundleno = 1 (0x1), region = 120 }

</bundles_post_ra>
